<compile_context>
chip_gen: v7x
topology: tpu7x:2x2x1
jax: 0.10.0
libtpu: 0.0.40
codegen_flags: <defaults>
</compile_context>

<pallas_src>
import functools

import jax
import jax.numpy as jnp
from jax.experimental import pallas as pl
from jax.experimental.pallas import tpu as pltpu


def _basic_block_kernel(x_ref, w1_ref, s1_ref, b1_ref, w2_ref, s2_ref, b2_ref,
                        out_ref, xpad_sc, hpad_sc, patch_sc):
    """Fused conv3x3+bn1+relu -> conv3x3+bn2 -> +residual -> relu for one batch tile.

    x_ref:   (H, W, C)        input tile (also the residual)
    w1_ref:  (9*C, C)         conv1 weights, im2col layout [(kh*3+kw)*C + cin, cout]
    w2_ref:  (9*C, C)         conv2 weights, same layout
    s*_ref:  (1, C) f32       folded BN scale / bias
    out_ref: (H, W, C)        output tile
    scratch: xpad_sc/hpad_sc (H+2, W+2, C), patch_sc (H, W, 9*C)
    """
    H, W, C = x_ref.shape
    K = 9 * C
    cdt = patch_sc.dtype

    # ---------------- conv1 + bn1 + relu ----------------
    # zero-padded input staged in VMEM (halo handled in-kernel, no HBM jnp.pad)
    xpad_sc[...] = jnp.zeros(xpad_sc.shape, cdt)
    xpad_sc[1:H + 1, 1:W + 1, :] = x_ref[...].astype(cdt)

    # im2col: 9 shifted copies -> ONE MXU matmul with K = 9*C
    for kh in range(3):
        for kw in range(3):
            t = kh * 3 + kw
            patch_sc[:, :, t * C:(t + 1) * C] = xpad_sc[kh:kh + H, kw:kw + W, :]

    h = jnp.dot(patch_sc[...].reshape(H * W, K), w1_ref[...],
                preferred_element_type=jnp.float32).reshape(H, W, C)
    h = h * s1_ref[...].reshape(1, 1, C) + b1_ref[...].reshape(1, 1, C)
    h = jnp.maximum(h, 0.0)

    # ---------------- conv2 + bn2 + residual + relu ----------------
    # intermediate kept entirely in VMEM (no HBM round trip)
    hpad_sc[...] = jnp.zeros(hpad_sc.shape, cdt)
    hpad_sc[1:H + 1, 1:W + 1, :] = h.astype(cdt)

    for kh in range(3):
        for kw in range(3):
            t = kh * 3 + kw
            patch_sc[:, :, t * C:(t + 1) * C] = hpad_sc[kh:kh + H, kw:kw + W, :]

    o = jnp.dot(patch_sc[...].reshape(H * W, K), w2_ref[...],
                preferred_element_type=jnp.float32).reshape(H, W, C)
    o = o * s2_ref[...].reshape(1, 1, C) + b2_ref[...].reshape(1, 1, C)
    o = o + x_ref[...].astype(jnp.float32)           # identity residual
    o = jnp.maximum(o, 0.0)
    out_ref[...] = o.astype(out_ref.dtype)


def _fold_bn(gamma, beta, mean, var, eps=1e-5):
    scale = gamma / jnp.sqrt(var + eps)
    bias = beta - mean * scale
    return scale.reshape(1, -1).astype(jnp.float32), bias.reshape(1, -1).astype(jnp.float32)


def basic_block_forward(x_nchw, params, *, compute_dtype=None):
    """BasicBlock forward (stride=1, downsample=None). x is NCHW like PyTorch."""
    N, C, H, W = x_nchw.shape
    assert params["conv1_w"].shape[0] == C, "identity residual requires planes == inplanes"

    x = jnp.transpose(x_nchw, (0, 2, 3, 1))          # -> NHWC (lane = channels)
    cdt = x.dtype if compute_dtype is None else compute_dtype

    s1, b1 = _fold_bn(params["bn1_gamma"], params["bn1_beta"],
                      params["bn1_mean"], params["bn1_var"])
    s2, b2 = _fold_bn(params["bn2_gamma"], params["bn2_beta"],
                      params["bn2_mean"], params["bn2_var"])

    # conv weights: PyTorch (Cout,Cin,3,3) -> (3,3,Cin,Cout) -> im2col (9*Cin, Cout)
    w1 = jnp.transpose(params["conv1_w"], (2, 3, 1, 0)).reshape(9 * C, C).astype(cdt)
    w2 = jnp.transpose(params["conv2_w"], (2, 3, 1, 0)).reshape(9 * C, C).astype(cdt)

    # Derive a VMEM budget from the actual tile sizes (double-buffered I/O tiles,
    # weights, and the three in-kernel scratch buffers), capped for v7x (64 MiB).
    isz_in = jnp.dtype(x.dtype).itemsize
    isz_c = jnp.dtype(cdt).itemsize
    est = (2 * H * W * C * isz_in                    # input tile, double-buffered
           + 2 * H * W * C * isz_in                  # output tile, double-buffered
           + 2 * 9 * C * C * isz_c                   # w1 + w2
           + 4 * C * 4                               # scale / bias
           + 2 * (H + 2) * (W + 2) * C * isz_c       # x_pad + h_pad scratch
           + H * W * 9 * C * isz_c)                  # im2col scratch
    vmem_limit = int(min(max(2 * est, 16 * 2**20), 64 * 2**20))

    vec_spec = pl.BlockSpec((1, C), lambda n: (0, 0))
    w_spec = pl.BlockSpec((9 * C, C), lambda n: (0, 0))

    out = pl.pallas_call(
        _basic_block_kernel,
        out_shape=jax.ShapeDtypeStruct((N, H, W, C), x.dtype),
        grid_spec=pltpu.PrefetchScalarGridSpec(
            num_scalar_prefetch=0,
            grid=(N,),
            in_specs=[
                pl.BlockSpec((None, H, W, C), lambda n: (n, 0, 0, 0)),   # x (batch squeezed)
                w_spec, vec_spec, vec_spec,                              # conv1 / bn1
                w_spec, vec_spec, vec_spec,                              # conv2 / bn2
            ],
            out_specs=pl.BlockSpec((None, H, W, C), lambda n: (n, 0, 0, 0)),
            scratch_shapes=[
                pltpu.VMEM((H + 2, W + 2, C), cdt),      # x_pad
                pltpu.VMEM((H + 2, W + 2, C), cdt),      # h_pad
                pltpu.VMEM((H, W, 9 * C), cdt),          # im2col patches (reused by both convs)
            ],
        ),
        compiler_params=pltpu.CompilerParams(
            dimension_semantics=("parallel",),           # shards batch across TCs on v7x
            vmem_limit_bytes=vmem_limit,
        ),
    )(x, w1, s1, b1, w2, s2, b2)

    return jnp.transpose(out, (0, 3, 1, 2))              # -> NCHW


def _reference_forward(x_nchw, params):
    """Pure-JAX reference (lax conv) for correctness checking."""
    x = x_nchw
    dn = jax.lax.conv_dimension_numbers(x.shape, params["conv1_w"].shape,
                                        ("NCHW", "OIHW", "NCHW"))

    def conv_bn(h, w, g, b, m, v):
        y = jax.lax.conv_general_dilated(h, w, (1, 1), ((1, 1), (1, 1)),
                                         dimension_numbers=dn)
        scale = (g / jnp.sqrt(v + 1e-5)).reshape(1, -1, 1, 1)
        bias = (b - m * g / jnp.sqrt(v + 1e-5)).reshape(1, -1, 1, 1)
        return y * scale + bias

    h = jnp.maximum(conv_bn(x, params["conv1_w"], params["bn1_gamma"],
                            params["bn1_beta"], params["bn1_mean"],
                            params["bn1_var"]), 0.0)
    h = conv_bn(h, params["conv2_w"], params["bn2_gamma"], params["bn2_beta"],
                params["bn2_mean"], params["bn2_var"])
    return jnp.maximum(h + x, 0.0)


if __name__ == "__main__":
    key = jax.random.PRNGKey(0)
    N, C, H, W = 2, 4, 16, 16          # inplanes == planes, stride=1
    planes = C

    ks = jax.random.split(key, 10)
    x = jax.random.normal(ks[0], (N, C, H, W), dtype=jnp.float32)

    params = {
        "conv1_w": jax.random.normal(ks[1], (planes, C, 3, 3), jnp.float32) * 0.1,
        "conv2_w": jax.random.normal(ks[2], (planes, planes, 3, 3), jnp.float32) * 0.1,
        "bn1_gamma": 1.0 + 0.1 * jax.random.normal(ks[3], (planes,), jnp.float32),
        "bn1_beta": 0.1 * jax.random.normal(ks[4], (planes,), jnp.float32),
        "bn1_mean": 0.1 * jax.random.normal(ks[5], (planes,), jnp.float32),
        "bn1_var": jnp.abs(1.0 + 0.1 * jax.random.normal(ks[6], (planes,), jnp.float32)),
        "bn2_gamma": 1.0 + 0.1 * jax.random.normal(ks[7], (planes,), jnp.float32),
        "bn2_beta": 0.1 * jax.random.normal(ks[8], (planes,), jnp.float32),
        "bn2_mean": 0.1 * jax.random.normal(ks[9], (planes,), jnp.float32),
        "bn2_var": jnp.ones((planes,), jnp.float32),
    }

    out = jax.block_until_ready(basic_block_forward(x, params))
    ref = jax.block_until_ready(_reference_forward(x, params))

    assert out.shape == (N, C, H, W)
    assert jnp.allclose(out, ref, atol=1e-3, rtol=1e-3)

    print("KERNEL_OK")
</pallas_src>

<mosaic_0001>
module attributes {stable_mosaic.version = 11 : i64} {
  func.func @_basic_block_kernel(%arg0: i32, %arg1: memref<1x16x16x4xf32, #tpu.memory_space<vmem>>, %arg2: memref<36x4xf32, #tpu.memory_space<vmem>>, %arg3: memref<1x4xf32, #tpu.memory_space<vmem>>, %arg4: memref<1x4xf32, #tpu.memory_space<vmem>>, %arg5: memref<36x4xf32, #tpu.memory_space<vmem>>, %arg6: memref<1x4xf32, #tpu.memory_space<vmem>>, %arg7: memref<1x4xf32, #tpu.memory_space<vmem>>, %arg8: memref<1x16x16x4xf32, #tpu.memory_space<vmem>>, %arg9: memref<18x18x4xf32, #tpu.memory_space<vmem>>, %arg10: memref<18x18x4xf32, #tpu.memory_space<vmem>>, %arg11: memref<16x16x36xf32, #tpu.memory_space<vmem>>) attributes {dimension_semantics = [#tpu.dimension_semantics<parallel>], iteration_bounds = array<i64: 2>, scalar_prefetch = 0 : i64, scratch_operands = 3 : i64, tpu.core_type = #tpu.core_type<tc>, window_params = [{transform_indices = @transform_0, window_bounds = array<i64: 1, 16, 16, 4>}, {pipeline_mode = #tpu.pipeline_mode<synchronous>, transform_indices = @transform_1, window_bounds = array<i64: 36, 4>}, {pipeline_mode = #tpu.pipeline_mode<synchronous>, transform_indices = @transform_2, window_bounds = array<i64: 1, 4>}, {pipeline_mode = #tpu.pipeline_mode<synchronous>, transform_indices = @transform_3, window_bounds = array<i64: 1, 4>}, {pipeline_mode = #tpu.pipeline_mode<synchronous>, transform_indices = @transform_4, window_bounds = array<i64: 36, 4>}, {pipeline_mode = #tpu.pipeline_mode<synchronous>, transform_indices = @transform_5, window_bounds = array<i64: 1, 4>}, {pipeline_mode = #tpu.pipeline_mode<synchronous>, transform_indices = @transform_6, window_bounds = array<i64: 1, 4>}, {transform_indices = @transform_7, window_bounds = array<i64: 1, 16, 16, 4>}]} {
    %cst = arith.constant 0.000000e+00 : f32
    %0 = vector.broadcast %cst : f32 to vector<18x18x4xf32>
    %c0 = arith.constant 0 : index
    %c0_0 = arith.constant 0 : index
    %c0_1 = arith.constant 0 : index
    %1 = vector.load %arg9[%c0, %c0_0, %c0_1] : memref<18x18x4xf32, #tpu.memory_space<vmem>>, vector<18x18x4xf32>
    tpu.vector_store %arg9[%c0, %c0_0, %c0_1], %0 {strides = array<i32>} : memref<18x18x4xf32, #tpu.memory_space<vmem>>, vector<18x18x4xf32>,
    %c0_2 = arith.constant 0 : index
    %c0_3 = arith.constant 0 : index
    %c0_4 = arith.constant 0 : index
    %c0_5 = arith.constant 0 : index
    %2 = vector.load %arg1[%c0_2, %c0_3, %c0_4, %c0_5] : memref<1x16x16x4xf32, #tpu.memory_space<vmem>>, vector<1x16x16x4xf32>
    %3 = vector.shape_cast %2 : vector<1x16x16x4xf32> to vector<16x16x4xf32>
    %c1 = arith.constant 1 : index
    %c1_6 = arith.constant 1 : index
    %c0_7 = arith.constant 0 : index
    %4 = vector.load %arg9[%c1, %c1_6, %c0_7] : memref<18x18x4xf32, #tpu.memory_space<vmem>>, vector<16x16x4xf32>
    tpu.vector_store %arg9[%c1, %c1_6, %c0_7], %3 {strides = array<i32>} : memref<18x18x4xf32, #tpu.memory_space<vmem>>, vector<16x16x4xf32>,
    %c0_8 = arith.constant 0 : index
    %c0_9 = arith.constant 0 : index
    %c0_10 = arith.constant 0 : index
    %5 = vector.load %arg9[%c0_8, %c0_9, %c0_10] : memref<18x18x4xf32, #tpu.memory_space<vmem>>, vector<16x16x4xf32>
    %c0_11 = arith.constant 0 : index
    %c0_12 = arith.constant 0 : index
    %c0_13 = arith.constant 0 : index
    %6 = vector.load %arg11[%c0_11, %c0_12, %c0_13] : memref<16x16x36xf32, #tpu.memory_space<vmem>>, vector<16x16x4xf32>
    tpu.vector_store %arg11[%c0_11, %c0_12, %c0_13], %5 {strides = array<i32>} : memref<16x16x36xf32, #tpu.memory_space<vmem>>, vector<16x16x4xf32>,
    %c0_14 = arith.constant 0 : index
    %c1_15 = arith.constant 1 : index
    %c0_16 = arith.constant 0 : index
    %7 = vector.load %arg9[%c0_14, %c1_15, %c0_16] : memref<18x18x4xf32, #tpu.memory_space<vmem>>, vector<16x16x4xf32>
    %c0_17 = arith.constant 0 : index
    %c0_18 = arith.constant 0 : index
    %c4 = arith.constant 4 : index
    %8 = vector.load %arg11[%c0_17, %c0_18, %c4] : memref<16x16x36xf32, #tpu.memory_space<vmem>>, vector<16x16x4xf32>
    tpu.vector_store %arg11[%c0_17, %c0_18, %c4], %7 {strides = array<i32>} : memref<16x16x36xf32, #tpu.memory_space<vmem>>, vector<16x16x4xf32>,
    %c0_19 = arith.constant 0 : index
    %c2 = arith.constant 2 : index
    %c0_20 = arith.constant 0 : index
    %9 = vector.load %arg9[%c0_19, %c2, %c0_20] : memref<18x18x4xf32, #tpu.memory_space<vmem>>, vector<16x16x4xf32>
    %c0_21 = arith.constant 0 : index
    %c0_22 = arith.constant 0 : index
    %c8 = arith.constant 8 : index
    %10 = vector.load %arg11[%c0_21, %c0_22, %c8] : memref<16x16x36xf32, #tpu.memory_space<vmem>>, vector<16x16x4xf32>
    tpu.vector_store %arg11[%c0_21, %c0_22, %c8], %9 {strides = array<i32>} : memref<16x16x36xf32, #tpu.memory_space<vmem>>, vector<16x16x4xf32>,
    %c1_23 = arith.constant 1 : index
    %c0_24 = arith.constant 0 : index
    %c0_25 = arith.constant 0 : index
    %11 = vector.load %arg9[%c1_23, %c0_24, %c0_25] : memref<18x18x4xf32, #tpu.memory_space<vmem>>, vector<16x16x4xf32>
    %c0_26 = arith.constant 0 : index
    %c0_27 = arith.constant 0 : index
    %c12 = arith.constant 12 : index
    %12 = vector.load %arg11[%c0_26, %c0_27, %c12] : memref<16x16x36xf32, #tpu.memory_space<vmem>>, vector<16x16x4xf32>
    tpu.vector_store %arg11[%c0_26, %c0_27, %c12], %11 {strides = array<i32>} : memref<16x16x36xf32, #tpu.memory_space<vmem>>, vector<16x16x4xf32>,
    %c1_28 = arith.constant 1 : index
    %c1_29 = arith.constant 1 : index
    %c0_30 = arith.constant 0 : index
    %13 = vector.load %arg9[%c1_28, %c1_29, %c0_30] : memref<18x18x4xf32, #tpu.memory_space<vmem>>, vector<16x16x4xf32>
    %c0_31 = arith.constant 0 : index
    %c0_32 = arith.constant 0 : index
    %c16 = arith.constant 16 : index
    %14 = vector.load %arg11[%c0_31, %c0_32, %c16] : memref<16x16x36xf32, #tpu.memory_space<vmem>>, vector<16x16x4xf32>
    tpu.vector_store %arg11[%c0_31, %c0_32, %c16], %13 {strides = array<i32>} : memref<16x16x36xf32, #tpu.memory_space<vmem>>, vector<16x16x4xf32>,
    %c1_33 = arith.constant 1 : index
    %c2_34 = arith.constant 2 : index
    %c0_35 = arith.constant 0 : index
    %15 = vector.load %arg9[%c1_33, %c2_34, %c0_35] : memref<18x18x4xf32, #tpu.memory_space<vmem>>, vector<16x16x4xf32>
    %c0_36 = arith.constant 0 : index
    %c0_37 = arith.constant 0 : index
    %c20 = arith.constant 20 : index
    %16 = vector.load %arg11[%c0_36, %c0_37, %c20] : memref<16x16x36xf32, #tpu.memory_space<vmem>>, vector<16x16x4xf32>
    tpu.vector_store %arg11[%c0_36, %c0_37, %c20], %15 {strides = array<i32>} : memref<16x16x36xf32, #tpu.memory_space<vmem>>, vector<16x16x4xf32>,
    %c2_38 = arith.constant 2 : index
    %c0_39 = arith.constant 0 : index
    %c0_40 = arith.constant 0 : index
    %17 = vector.load %arg9[%c2_38, %c0_39, %c0_40] : memref<18x18x4xf32, #tpu.memory_space<vmem>>, vector<16x16x4xf32>
    %c0_41 = arith.constant 0 : index
    %c0_42 = arith.constant 0 : index
    %c24 = arith.constant 24 : index
    %18 = vector.load %arg11[%c0_41, %c0_42, %c24] : memref<16x16x36xf32, #tpu.memory_space<vmem>>, vector<16x16x4xf32>
    tpu.vector_store %arg11[%c0_41, %c0_42, %c24], %17 {strides = array<i32>} : memref<16x16x36xf32, #tpu.memory_space<vmem>>, vector<16x16x4xf32>,
    %c2_43 = arith.constant 2 : index
    %c1_44 = arith.constant 1 : index
    %c0_45 = arith.constant 0 : index
    %19 = vector.load %arg9[%c2_43, %c1_44, %c0_45] : memref<18x18x4xf32, #tpu.memory_space<vmem>>, vector<16x16x4xf32>
    %c0_46 = arith.constant 0 : index
    %c0_47 = arith.constant 0 : index
    %c28 = arith.constant 28 : index
    %20 = vector.load %arg11[%c0_46, %c0_47, %c28] : memref<16x16x36xf32, #tpu.memory_space<vmem>>, vector<16x16x4xf32>
    tpu.vector_store %arg11[%c0_46, %c0_47, %c28], %19 {strides = array<i32>} : memref<16x16x36xf32, #tpu.memory_space<vmem>>, vector<16x16x4xf32>,
    %c2_48 = arith.constant 2 : index
    %c2_49 = arith.constant 2 : index
    %c0_50 = arith.constant 0 : index
    %21 = vector.load %arg9[%c2_48, %c2_49, %c0_50] : memref<18x18x4xf32, #tpu.memory_space<vmem>>, vector<16x16x4xf32>
    %c0_51 = arith.constant 0 : index
    %c0_52 = arith.constant 0 : index
    %c32 = arith.constant 32 : index
    %22 = vector.load %arg11[%c0_51, %c0_52, %c32] : memref<16x16x36xf32, #tpu.memory_space<vmem>>, vector<16x16x4xf32>
    tpu.vector_store %arg11[%c0_51, %c0_52, %c32], %21 {strides = array<i32>} : memref<16x16x36xf32, #tpu.memory_space<vmem>>, vector<16x16x4xf32>,
    %c0_53 = arith.constant 0 : index
    %c0_54 = arith.constant 0 : index
    %c0_55 = arith.constant 0 : index
    %23 = vector.load %arg11[%c0_53, %c0_54, %c0_55] : memref<16x16x36xf32, #tpu.memory_space<vmem>>, vector<16x16x36xf32>
    %24 = vector.shape_cast %23 : vector<16x16x36xf32> to vector<256x36xf32>
    %c0_56 = arith.constant 0 : index
    %c0_57 = arith.constant 0 : index
    %25 = vector.load %arg2[%c0_56, %c0_57] : memref<36x4xf32, #tpu.memory_space<vmem>>, vector<36x4xf32>
    %cst_58 = arith.constant dense<0.000000e+00> : vector<256x4xf32>
    %26 = tpu.matmul %24, %25, %cst_58 {dimension_numbers = #tpu.dot_dimension_numbers<[1], [0], [0], [1], [0, 0, 1, 1], [], []>} : vector<256x36xf32>, vector<36x4xf32>, vector<256x4xf32> -> vector<256x4xf32>
    %27 = vector.shape_cast %26 : vector<256x4xf32> to vector<16x16x4xf32>
    %c0_59 = arith.constant 0 : index
    %c0_60 = arith.constant 0 : index
    %28 = vector.load %arg3[%c0_59, %c0_60] : memref<1x4xf32, #tpu.memory_space<vmem>>, vector<1x4xf32>
    %29 = vector.shape_cast %28 : vector<1x4xf32> to vector<1x1x4xf32>
    %30 = vector.broadcast %29 : vector<1x1x4xf32> to vector<16x16x4xf32>
    %31 = arith.mulf %27, %30 : vector<16x16x4xf32>
    %c0_61 = arith.constant 0 : index
    %c0_62 = arith.constant 0 : index
    %32 = vector.load %arg4[%c0_61, %c0_62] : memref<1x4xf32, #tpu.memory_space<vmem>>, vector<1x4xf32>
    %33 = vector.shape_cast %32 : vector<1x4xf32> to vector<1x1x4xf32>
    %34 = vector.broadcast %33 : vector<1x1x4xf32> to vector<16x16x4xf32>
    %35 = arith.addf %31, %34 : vector<16x16x4xf32>
    %cst_63 = arith.constant 0.000000e+00 : f32
    %36 = vector.broadcast %cst_63 : f32 to vector<16x16x4xf32>
    %37 = arith.maximumf %35, %36 : vector<16x16x4xf32>
    %cst_64 = arith.constant 0.000000e+00 : f32
    %38 = vector.broadcast %cst_64 : f32 to vector<18x18x4xf32>
    %c0_65 = arith.constant 0 : index
    %c0_66 = arith.constant 0 : index
    %c0_67 = arith.constant 0 : index
    %39 = vector.load %arg10[%c0_65, %c0_66, %c0_67] : memref<18x18x4xf32, #tpu.memory_space<vmem>>, vector<18x18x4xf32>
    tpu.vector_store %arg10[%c0_65, %c0_66, %c0_67], %38 {strides = array<i32>} : memref<18x18x4xf32, #tpu.memory_space<vmem>>, vector<18x18x4xf32>,
    %c1_68 = arith.constant 1 : index
    %c1_69 = arith.constant 1 : index
    %c0_70 = arith.constant 0 : index
    %40 = vector.load %arg10[%c1_68, %c1_69, %c0_70] : memref<18x18x4xf32, #tpu.memory_space<vmem>>, vector<16x16x4xf32>
    tpu.vector_store %arg10[%c1_68, %c1_69, %c0_70], %37 {strides = array<i32>} : memref<18x18x4xf32, #tpu.memory_space<vmem>>, vector<16x16x4xf32>,
    %c0_71 = arith.constant 0 : index
    %c0_72 = arith.constant 0 : index
    %c0_73 = arith.constant 0 : index
    %41 = vector.load %arg10[%c0_71, %c0_72, %c0_73] : memref<18x18x4xf32, #tpu.memory_space<vmem>>, vector<16x16x4xf32>
    %c0_74 = arith.constant 0 : index
    %c0_75 = arith.constant 0 : index
    %c0_76 = arith.constant 0 : index
    %42 = vector.load %arg11[%c0_74, %c0_75, %c0_76] : memref<16x16x36xf32, #tpu.memory_space<vmem>>, vector<16x16x4xf32>
    tpu.vector_store %arg11[%c0_74, %c0_75, %c0_76], %41 {strides = array<i32>} : memref<16x16x36xf32, #tpu.memory_space<vmem>>, vector<16x16x4xf32>,
    %c0_77 = arith.constant 0 : index
    %c1_78 = arith.constant 1 : index
    %c0_79 = arith.constant 0 : index
    %43 = vector.load %arg10[%c0_77, %c1_78, %c0_79] : memref<18x18x4xf32, #tpu.memory_space<vmem>>, vector<16x16x4xf32>
    %c0_80 = arith.constant 0 : index
    %c0_81 = arith.constant 0 : index
    %c4_82 = arith.constant 4 : index
    %44 = vector.load %arg11[%c0_80, %c0_81, %c4_82] : memref<16x16x36xf32, #tpu.memory_space<vmem>>, vector<16x16x4xf32>
    tpu.vector_store %arg11[%c0_80, %c0_81, %c4_82], %43 {strides = array<i32>} : memref<16x16x36xf32, #tpu.memory_space<vmem>>, vector<16x16x4xf32>,
    %c0_83 = arith.constant 0 : index
    %c2_84 = arith.constant 2 : index
    %c0_85 = arith.constant 0 : index
    %45 = vector.load %arg10[%c0_83, %c2_84, %c0_85] : memref<18x18x4xf32, #tpu.memory_space<vmem>>, vector<16x16x4xf32>
    %c0_86 = arith.constant 0 : index
    %c0_87 = arith.constant 0 : index
    %c8_88 = arith.constant 8 : index
    %46 = vector.load %arg11[%c0_86, %c0_87, %c8_88] : memref<16x16x36xf32, #tpu.memory_space<vmem>>, vector<16x16x4xf32>
    tpu.vector_store %arg11[%c0_86, %c0_87, %c8_88], %45 {strides = array<i32>} : memref<16x16x36xf32, #tpu.memory_space<vmem>>, vector<16x16x4xf32>,
    %c1_89 = arith.constant 1 : index
    %c0_90 = arith.constant 0 : index
    %c0_91 = arith.constant 0 : index
    %47 = vector.load %arg10[%c1_89, %c0_90, %c0_91] : memref<18x18x4xf32, #tpu.memory_space<vmem>>, vector<16x16x4xf32>
    %c0_92 = arith.constant 0 : index
    %c0_93 = arith.constant 0 : index
    %c12_94 = arith.constant 12 : index
    %48 = vector.load %arg11[%c0_92, %c0_93, %c12_94] : memref<16x16x36xf32, #tpu.memory_space<vmem>>, vector<16x16x4xf32>
    tpu.vector_store %arg11[%c0_92, %c0_93, %c12_94], %47 {strides = array<i32>} : memref<16x16x36xf32, #tpu.memory_space<vmem>>, vector<16x16x4xf32>,
    %c1_95 = arith.constant 1 : index
    %c1_96 = arith.constant 1 : index
    %c0_97 = arith.constant 0 : index
    %49 = vector.load %arg10[%c1_95, %c1_96, %c0_97] : memref<18x18x4xf32, #tpu.memory_space<vmem>>, vector<16x16x4xf32>
    %c0_98 = arith.constant 0 : index
    %c0_99 = arith.constant 0 : index
    %c16_100 = arith.constant 16 : index
    %50 = vector.load %arg11[%c0_98, %c0_99, %c16_100] : memref<16x16x36xf32, #tpu.memory_space<vmem>>, vector<16x16x4xf32>
    tpu.vector_store %arg11[%c0_98, %c0_99, %c16_100], %49 {strides = array<i32>} : memref<16x16x36xf32, #tpu.memory_space<vmem>>, vector<16x16x4xf32>,
    %c1_101 = arith.constant 1 : index
    %c2_102 = arith.constant 2 : index
    %c0_103 = arith.constant 0 : index
    %51 = vector.load %arg10[%c1_101, %c2_102, %c0_103] : memref<18x18x4xf32, #tpu.memory_space<vmem>>, vector<16x16x4xf32>
    %c0_104 = arith.constant 0 : index
    %c0_105 = arith.constant 0 : index
    %c20_106 = arith.constant 20 : index
    %52 = vector.load %arg11[%c0_104, %c0_105, %c20_106] : memref<16x16x36xf32, #tpu.memory_space<vmem>>, vector<16x16x4xf32>
    tpu.vector_store %arg11[%c0_104, %c0_105, %c20_106], %51 {strides = array<i32>} : memref<16x16x36xf32, #tpu.memory_space<vmem>>, vector<16x16x4xf32>,
    %c2_107 = arith.constant 2 : index
    %c0_108 = arith.constant 0 : index
    %c0_109 = arith.constant 0 : index
    %53 = vector.load %arg10[%c2_107, %c0_108, %c0_109] : memref<18x18x4xf32, #tpu.memory_space<vmem>>, vector<16x16x4xf32>
    %c0_110 = arith.constant 0 : index
    %c0_111 = arith.constant 0 : index
    %c24_112 = arith.constant 24 : index
    %54 = vector.load %arg11[%c0_110, %c0_111, %c24_112] : memref<16x16x36xf32, #tpu.memory_space<vmem>>, vector<16x16x4xf32>
    tpu.vector_store %arg11[%c0_110, %c0_111, %c24_112], %53 {strides = array<i32>} : memref<16x16x36xf32, #tpu.memory_space<vmem>>, vector<16x16x4xf32>,
    %c2_113 = arith.constant 2 : index
    %c1_114 = arith.constant 1 : index
    %c0_115 = arith.constant 0 : index
    %55 = vector.load %arg10[%c2_113, %c1_114, %c0_115] : memref<18x18x4xf32, #tpu.memory_space<vmem>>, vector<16x16x4xf32>
    %c0_116 = arith.constant 0 : index
    %c0_117 = arith.constant 0 : index
    %c28_118 = arith.constant 28 : index
    %56 = vector.load %arg11[%c0_116, %c0_117, %c28_118] : memref<16x16x36xf32, #tpu.memory_space<vmem>>, vector<16x16x4xf32>
    tpu.vector_store %arg11[%c0_116, %c0_117, %c28_118], %55 {strides = array<i32>} : memref<16x16x36xf32, #tpu.memory_space<vmem>>, vector<16x16x4xf32>,
    %c2_119 = arith.constant 2 : index
    %c2_120 = arith.constant 2 : index
    %c0_121 = arith.constant 0 : index
    %57 = vector.load %arg10[%c2_119, %c2_120, %c0_121] : memref<18x18x4xf32, #tpu.memory_space<vmem>>, vector<16x16x4xf32>
    %c0_122 = arith.constant 0 : index
    %c0_123 = arith.constant 0 : index
    %c32_124 = arith.constant 32 : index
    %58 = vector.load %arg11[%c0_122, %c0_123, %c32_124] : memref<16x16x36xf32, #tpu.memory_space<vmem>>, vector<16x16x4xf32>
    tpu.vector_store %arg11[%c0_122, %c0_123, %c32_124], %57 {strides = array<i32>} : memref<16x16x36xf32, #tpu.memory_space<vmem>>, vector<16x16x4xf32>,
    %c0_125 = arith.constant 0 : index
    %c0_126 = arith.constant 0 : index
    %c0_127 = arith.constant 0 : index
    %59 = vector.load %arg11[%c0_125, %c0_126, %c0_127] : memref<16x16x36xf32, #tpu.memory_space<vmem>>, vector<16x16x36xf32>
    %60 = vector.shape_cast %59 : vector<16x16x36xf32> to vector<256x36xf32>
    %c0_128 = arith.constant 0 : index
    %c0_129 = arith.constant 0 : index
    %61 = vector.load %arg5[%c0_128, %c0_129] : memref<36x4xf32, #tpu.memory_space<vmem>>, vector<36x4xf32>
    %cst_130 = arith.constant dense<0.000000e+00> : vector<256x4xf32>
    %62 = tpu.matmul %60, %61, %cst_130 {dimension_numbers = #tpu.dot_dimension_numbers<[1], [0], [0], [1], [0, 0, 1, 1], [], []>} : vector<256x36xf32>, vector<36x4xf32>, vector<256x4xf32> -> vector<256x4xf32>
    %63 = vector.shape_cast %62 : vector<256x4xf32> to vector<16x16x4xf32>
    %c0_131 = arith.constant 0 : index
    %c0_132 = arith.constant 0 : index
    %64 = vector.load %arg6[%c0_131, %c0_132] : memref<1x4xf32, #tpu.memory_space<vmem>>, vector<1x4xf32>
    %65 = vector.shape_cast %64 : vector<1x4xf32> to vector<1x1x4xf32>
    %66 = vector.broadcast %65 : vector<1x1x4xf32> to vector<16x16x4xf32>
    %67 = arith.mulf %63, %66 : vector<16x16x4xf32>
    %c0_133 = arith.constant 0 : index
    %c0_134 = arith.constant 0 : index
    %68 = vector.load %arg7[%c0_133, %c0_134] : memref<1x4xf32, #tpu.memory_space<vmem>>, vector<1x4xf32>
    %69 = vector.shape_cast %68 : vector<1x4xf32> to vector<1x1x4xf32>
    %70 = vector.broadcast %69 : vector<1x1x4xf32> to vector<16x16x4xf32>
    %71 = arith.addf %67, %70 : vector<16x16x4xf32>
    %c0_135 = arith.constant 0 : index
    %c0_136 = arith.constant 0 : index
    %c0_137 = arith.constant 0 : index
    %c0_138 = arith.constant 0 : index
    %72 = vector.load %arg1[%c0_135, %c0_136, %c0_137, %c0_138] : memref<1x16x16x4xf32, #tpu.memory_space<vmem>>, vector<1x16x16x4xf32>
    %73 = vector.shape_cast %72 : vector<1x16x16x4xf32> to vector<16x16x4xf32>
    %74 = arith.addf %71, %73 : vector<16x16x4xf32>
    %cst_139 = arith.constant 0.000000e+00 : f32
    %75 = vector.broadcast %cst_139 : f32 to vector<16x16x4xf32>
    %76 = arith.maximumf %74, %75 : vector<16x16x4xf32>
    %c0_140 = arith.constant 0 : index
    %c0_141 = arith.constant 0 : index
    %c0_142 = arith.constant 0 : index
    %c0_143 = arith.constant 0 : index
    %77 = vector.load %arg8[%c0_140, %c0_141, %c0_142, %c0_143] : memref<1x16x16x4xf32, #tpu.memory_space<vmem>>, vector<1x16x16x4xf32>
    %78 = vector.shape_cast %77 : vector<1x16x16x4xf32> to vector<16x16x4xf32>
    %79 = vector.shape_cast %76 : vector<16x16x4xf32> to vector<1x16x16x4xf32>
    tpu.vector_store %arg8[%c0_140, %c0_141, %c0_142, %c0_143], %79 {strides = array<i32>} : memref<1x16x16x4xf32, #tpu.memory_space<vmem>>, vector<1x16x16x4xf32>,
    return
  }
  func.func @transform_0(%arg0: i32) -> (i32, i32, i32, i32) {
    %c0_i32 = arith.constant 0 : i32
    %c0_i32_0 = arith.constant 0 : i32
    %c0_i32_1 = arith.constant 0 : i32
    %c0_i32_2 = arith.constant 0 : i32
    return %arg0, %c0_i32, %c0_i32_0, %c0_i32_1 : i32, i32, i32, i32
  }
  func.func @transform_1(%arg0: i32) -> (i32, i32) {
    %c0_i32 = arith.constant 0 : i32
    %c0_i32_0 = arith.constant 0 : i32
    %c0_i32_1 = arith.constant 0 : i32
    return %c0_i32, %c0_i32_0 : i32, i32
  }
  func.func @transform_2(%arg0: i32) -> (i32, i32) {
    %c0_i32 = arith.constant 0 : i32
    %c0_i32_0 = arith.constant 0 : i32
    %c0_i32_1 = arith.constant 0 : i32
    return %c0_i32, %c0_i32_0 : i32, i32
  }
  func.func @transform_3(%arg0: i32) -> (i32, i32) {
    %c0_i32 = arith.constant 0 : i32
    %c0_i32_0 = arith.constant 0 : i32
    %c0_i32_1 = arith.constant 0 : i32
    return %c0_i32, %c0_i32_0 : i32, i32
  }
  func.func @transform_4(%arg0: i32) -> (i32, i32) {
    %c0_i32 = arith.constant 0 : i32
    %c0_i32_0 = arith.constant 0 : i32
    %c0_i32_1 = arith.constant 0 : i32
    return %c0_i32, %c0_i32_0 : i32, i32
  }
  func.func @transform_5(%arg0: i32) -> (i32, i32) {
    %c0_i32 = arith.constant 0 : i32
    %c0_i32_0 = arith.constant 0 : i32
    %c0_i32_1 = arith.constant 0 : i32
    return %c0_i32, %c0_i32_0 : i32, i32
  }
  func.func @transform_6(%arg0: i32) -> (i32, i32) {
    %c0_i32 = arith.constant 0 : i32
    %c0_i32_0 = arith.constant 0 : i32
    %c0_i32_1 = arith.constant 0 : i32
    return %c0_i32, %c0_i32_0 : i32, i32
  }
  func.func @transform_7(%arg0: i32) -> (i32, i32, i32, i32) {
    %c0_i32 = arith.constant 0 : i32
    %c0_i32_0 = arith.constant 0 : i32
    %c0_i32_1 = arith.constant 0 : i32
    %c0_i32_2 = arith.constant 0 : i32
    return %arg0, %c0_i32, %c0_i32_0, %c0_i32_1 : i32, i32, i32, i32
  }
}

</mosaic_0001>

<bundles_post_ra>
// kernel: tpu_custom_call.1
= control target key start
LH: loop header
LB: loop body
LE: loop exit
PB: predicated region body
PF: predicated region fallthrough
CT: control target
= control target key end

     0   :  { %s5155_s24 = smov 0   ;;  %s7587_s0 = inlined_call_operand.vmem [shape: f32[2,16,16,4], index: 0, kind: input, shape index: {}]   ;;  %s7588_s1 = inlined_call_operand.vmem [shape: f32[36,4], index: 1, kind: input, shape index: {}]   ;;  %s7589_s2 = inlined_call_operand.vmem [shape: f32[1,4], index: 2, kind: input, shape index: {}]   ;;  %s7590_s3 = inlined_call_operand.vmem [shape: f32[1,4], index: 3, kind: input, shape index: {}]   ;;  %s7591_s4 = inlined_call_operand.vmem [shape: f32[36,4], index: 4, kind: input, shape index: {}]   ;;  %s7592_s5 = inlined_call_operand.vmem [shape: f32[1,4], index: 5, kind: input, shape index: {}]   ;;  %s7593_s6 = inlined_call_operand.vmem [shape: f32[1,4], index: 6, kind: input, shape index: {}]   ;;  %s7594_s7 = inlined_call_operand.vmem [shape: f32[2,16,16,4], index: 7, kind: output, shape index: {}]  }
   0x1 LB: > { %s4792_s25 = sadd.s32 4294967295, %s5104_s24   ;;  %p4796_p0 = scmp.ge.s32.totalorder %s5104_s24, 1  ;;  %s5104_s24 = sphi %s5155_s24, %s17_s24  }
   0x2   : > { %p237_p1 = scmp.lt.s32.totalorder %s5104_s24, 3 }
   0x4   : > { %p238_p2 = pnand %p4796_p0, %p237_p1 }
   0x6   : > { %241 = sbr.rel (%p238_p2) target bundleno = 1716 (0x6b4), region = 48 }
   0xd   : > { %vm279_vm0 = vcmask 31744   ;;  %p5165_p3 = scmp.lt.s32.totalorder %s4792_s25, 1  ;;  %vm282_vm1 = vcmask 25600   ;;  %v5106_v0 = vmov 0.0   ;;  %s5107_s8 = smov 4   ;;  %vm624_vm2 = vcmask 64544  }
   0xe   : > { %280 = vst.msk [vmem:[#allocation2] sm:$0xff] %vm279_vm0, %v5106_v0  ;;  %281 = vst.msk [vmem:[#allocation2 + $0x8] sm:$0xff] %vm279_vm0, %v5106_v0  ;;  %s5108_s9 = smov 8   ;;  %s5109_s10 = smov 12   ;;  %vm817_vm3 = vcmask 97344   ;;  %vm1010_vm4 = vcmask 130144  }
   0xf   : > { %284 = vst.msk [vmem:[#allocation2 + $0x18] sm:$0xff] %vm279_vm0, %v5106_v0  ;;  %285 = vst.msk [vmem:[#allocation2 + $0x20] sm:$0xff] %vm279_vm0, %v5106_v0  ;;  %s7687_s25 = smov (!%p5165_p3, %s4792_s25), 1  ;;  %s5110_s11 = smov 16   ;;  %vm1203_vm5 = vcmask 162944   ;;  %vm1396_vm6 = vcmask 195744  }
  0x10   : > { %287 = vst.msk [vmem:[#allocation2 + $0x30] sm:$0xff] %vm279_vm0, %v5106_v0  ;;  %288 = vst.msk [vmem:[#allocation2 + $0x38] sm:$0xff] %vm279_vm0, %v5106_v0  ;;  %s4873_s27 = sshll.u32 %s7687_s25, 8  ;;  %s5111_s12 = smov 20   ;;  %vm2143_vm7 = vcmask 1043456   ;;  %vm1590_vm8 = vcmask 228544  }
  0x11   : > { %290 = vst.msk [vmem:[#allocation2 + $0x48] sm:$0xff] %vm279_vm0, %v5106_v0  ;;  %291 = vst.msk [vmem:[#allocation2 + $0x50] sm:$0xff] %vm279_vm0, %v5106_v0  ;;  %s5397_s30 = scalar_lea.vmem %s7587_s0, %s4873_s27  ;;  %s5112_s13 = smov 24   ;;  %vm1783_vm9 = vcmask 261344   ;;  %vm1976_vm10 = vcmask 294144   ;;  %vm2046_vm11 = vcmask 293888  }
  0x12   : > { %293 = vst.msk [vmem:[#allocation2 + $0x60] sm:$0xff] %vm279_vm0, %v5106_v0  ;;  %294 = vst.msk [vmem:[#allocation2 + $0x68] sm:$0xff] %vm279_vm0, %v5106_v0  ;;  %v335_v1 = vld [vmem:[%s5397_s30] sm:$0xff]  ;;  %v336_v2 = vld [vmem:[%s5397_s30 + $0x8] sm:$0xff]  ;;  %s5113_s22 = smov 28   ;;  %s5114_s28 = smov 32  }
  0x13   : > { %296 = vst.msk [vmem:[#allocation2 + $0x78] sm:$0xff] %vm279_vm0, %v5106_v0  ;;  %297 = vst.msk [vmem:[#allocation2 + $0x80] sm:$0xff] %vm279_vm0, %v5106_v0  ;;  %v337_v3 = vld [vmem:[%s5397_s30 + $0x10] sm:$0xff]  ;;  %v338_v4 = vld [vmem:[%s5397_s30 + $0x18] sm:$0xff]  ;;  %s7368_s14 = scalar_lea.vmem %s7594_s7, %s4873_s27 }
  0x14   : > { %299 = vst.msk [vmem:[#allocation2 + $0x90] sm:$0xff] %vm279_vm0, %v5106_v0  ;;  %300 = vst.msk [vmem:[#allocation2 + $0x98] sm:$0xff] %vm279_vm0, %v5106_v0  ;;  %v339_v5 = vld [vmem:[%s5397_s30 + $0x20] sm:$0xff]  ;;  %v340_v6 = vld [vmem:[%s5397_s30 + $0x28] sm:$0xff] }
  0x15   : > { %302 = vst.msk [vmem:[#allocation2 + $0xa8] sm:$0xff] %vm279_vm0, %v5106_v0  ;;  %303 = vst.msk [vmem:[#allocation2 + $0xb0] sm:$0xff] %vm279_vm0, %v5106_v0  ;;  %v464_v7 = vld [vmem:[#allocation2 + $0x1] sm:$0xff]  ;;  %v341_v9 = vld [vmem:[%s5397_s30 + $0x30] sm:$0xff] }
  0x16   : > { %305 = vst.msk [vmem:[#allocation2 + $0xc0] sm:$0xff] %vm279_vm0, %v5106_v0  ;;  %306 = vst.msk [vmem:[#allocation2 + $0xc8] sm:$0xff] %vm279_vm0, %v5106_v0  ;;  %528 = vrot.lane.b32.xlu0 %v464_v7, %s5107_s8  ;;  %v342_v10 = vld [vmem:[%s5397_s30 + $0x38] sm:$0xff]  ;;  %v343_v11 = vld [vmem:[%s5397_s30 + $0x40] sm:$0xff] }
  0x17   : > { %308 = vst.msk [vmem:[#allocation2 + $0xd8] sm:$0xff] %vm279_vm0, %v5106_v0  ;;  %309 = vst.msk [vmem:[#allocation2 + $0xe0] sm:$0xff] %vm279_vm0, %v5106_v0  ;;  %v344_v12 = vld [vmem:[%s5397_s30 + $0x48] sm:$0xff]  ;;  %v345_v13 = vld [vmem:[%s5397_s30 + $0x50] sm:$0xff] }
  0x18   : > { %311 = vst.msk [vmem:[#allocation2 + $0xf0] sm:$0xff] %vm279_vm0, %v5106_v0  ;;  %312 = vst.msk [vmem:[#allocation2 + $0xf8] sm:$0xff] %vm279_vm0, %v5106_v0  ;;  %v346_v14 = vld [vmem:[%s5397_s30 + $0x58] sm:$0xff]  ;;  %v347_v15 = vld [vmem:[%s5397_s30 + $0x60] sm:$0xff] }
  0x19   : > { %314 = vst.msk [vmem:[#allocation2 + $0x108] sm:$0xff] %vm279_vm0, %v5106_v0  ;;  %315 = vst.msk [vmem:[#allocation2 + $0x110] sm:$0xff] %vm279_vm0, %v5106_v0  ;;  %v348_v16 = vld [vmem:[%s5397_s30 + $0x68] sm:$0xff]  ;;  %v349_v17 = vld [vmem:[%s5397_s30 + $0x70] sm:$0xff] }
  0x1a   : > { %317 = vst.msk [vmem:[#allocation2 + $0x120] sm:$0xff] %vm279_vm0, %v5106_v0  ;;  %318 = vst.msk [vmem:[#allocation2 + $0x128] sm:$0xff] %vm279_vm0, %v5106_v0  ;;  %v350_v18 = vld [vmem:[%s5397_s30 + $0x78] sm:$0xff]  ;;  %v351_v19 = vld [vmem:[%s5397_s30 + $0x80] sm:$0xff] }
  0x1b   : > { %320 = vst.msk [vmem:[#allocation2 + $0x138] sm:$0xff] %vm279_vm0, %v5106_v0  ;;  %321 = vst.msk [vmem:[#allocation2 + $0x140] sm:$0xff] %vm279_vm0, %v5106_v0  ;;  %v352_v20 = vld [vmem:[%s5397_s30 + $0x88] sm:$0xff]  ;;  %v353_v21 = vld [vmem:[%s5397_s30 + $0x90] sm:$0xff] }
  0x1c   : > { %323 = vst.msk [vmem:[#allocation2 + $0x150] sm:$0xff] %vm279_vm0, %v5106_v0  ;;  %324 = vst.msk [vmem:[#allocation2 + $0x158] sm:$0xff] %vm279_vm0, %v5106_v0  ;;  %v354_v22 = vld [vmem:[%s5397_s30 + $0x98] sm:$0xff]  ;;  %v355_v23 = vld [vmem:[%s5397_s30 + $0xa0] sm:$0xff] }
  0x1d   : > { %326 = vst.msk [vmem:[#allocation2 + $0x168] sm:$0xff] %vm279_vm0, %v5106_v0  ;;  %327 = vst.msk [vmem:[#allocation2 + $0x170] sm:$0xff] %vm279_vm0, %v5106_v0  ;;  %v356_v24 = vld [vmem:[%s5397_s30 + $0xa8] sm:$0xff]  ;;  %v357_v28 = vld [vmem:[%s5397_s30 + $0xb0] sm:$0xff] }
  0x1e   : > { %329 = vst.msk [vmem:[#allocation2 + $0x180] sm:$0xff] %vm279_vm0, %v5106_v0  ;;  %330 = vst.msk [vmem:[#allocation2 + $0x188] sm:$0xff] %vm279_vm0, %v5106_v0  ;;  %v358_v29 = vld [vmem:[%s5397_s30 + $0xb8] sm:$0xff]  ;;  %v359_v33 = vld [vmem:[%s5397_s30 + $0xc0] sm:$0xff] }
  0x1f   : > { %332 = vst.msk [vmem:[#allocation2 + $0x198] sm:$0xff] %vm279_vm0, %v5106_v0  ;;  %333 = vst.msk [vmem:[#allocation2 + $0x1a0] sm:$0xff] %vm279_vm0, %v5106_v0  ;;  %v360_v34 = vld [vmem:[%s5397_s30 + $0xc8] sm:$0xff]  ;;  %v361_v35 = vld [vmem:[%s5397_s30 + $0xd0] sm:$0xff] }
  0x20   : > { %2482 = vst.msk [vmem:[#allocation3] sm:$0xff] %vm279_vm0, %v5106_v0  ;;  %2483 = vst.msk [vmem:[#allocation3 + $0x8] sm:$0xff] %vm279_vm0, %v5106_v0  ;;  %v362_v36 = vld [vmem:[%s5397_s30 + $0xd8] sm:$0xff]  ;;  %v363_v37 = vld [vmem:[%s5397_s30 + $0xe0] sm:$0xff] }
  0x21   : > { %2485 = vst.msk [vmem:[#allocation3 + $0x18] sm:$0xff] %vm279_vm0, %v5106_v0  ;;  %2486 = vst.msk [vmem:[#allocation3 + $0x20] sm:$0xff] %vm279_vm0, %v5106_v0  ;;  %v364_v38 = vld [vmem:[%s5397_s30 + $0xe8] sm:$0xff]  ;;  %v400_v45 = vld [vmem:[#allocation2] sm:$0xff] }
  0x22   : > { %2488 = vst.msk [vmem:[#allocation3 + $0x30] sm:$0xff] %vm279_vm0, %v5106_v0  ;;  %2489 = vst.msk [vmem:[#allocation3 + $0x38] sm:$0xff] %vm279_vm0, %v5106_v0  ;;  %v401_v48 = vld [vmem:[#allocation2 + $0x8] sm:$0xff] }
  0x23   : > { %2491 = vst.msk [vmem:[#allocation3 + $0x48] sm:$0xff] %vm279_vm0, %v5106_v0  ;;  %2492 = vst.msk [vmem:[#allocation3 + $0x50] sm:$0xff] %vm279_vm0, %v5106_v0 }
  0x24   : > { %2494 = vst.msk [vmem:[#allocation3 + $0x60] sm:$0xff] %vm279_vm0, %v5106_v0  ;;  %2495 = vst.msk [vmem:[#allocation3 + $0x68] sm:$0xff] %vm279_vm0, %v5106_v0 }
  0x25   : > { %2497 = vst.msk [vmem:[#allocation3 + $0x78] sm:$0xff] %vm279_vm0, %v5106_v0  ;;  %2498 = vst.msk [vmem:[#allocation3 + $0x80] sm:$0xff] %vm279_vm0, %v5106_v0 }
  0x26   : > { %2500 = vst.msk [vmem:[#allocation3 + $0x90] sm:$0xff] %vm279_vm0, %v5106_v0  ;;  %2501 = vst.msk [vmem:[#allocation3 + $0x98] sm:$0xff] %vm279_vm0, %v5106_v0 }
  0x27   : > { %2503 = vst.msk [vmem:[#allocation3 + $0xa8] sm:$0xff] %vm279_vm0, %v5106_v0  ;;  %2504 = vst.msk [vmem:[#allocation3 + $0xb0] sm:$0xff] %vm279_vm0, %v5106_v0 }
  0x28   : > { %2506 = vst.msk [vmem:[#allocation3 + $0xc0] sm:$0xff] %vm279_vm0, %v5106_v0  ;;  %2507 = vst.msk [vmem:[#allocation3 + $0xc8] sm:$0xff] %vm279_vm0, %v5106_v0 }
  0x29   : > { %2509 = vst.msk [vmem:[#allocation3 + $0xd8] sm:$0xff] %vm279_vm0, %v5106_v0  ;;  %2510 = vst.msk [vmem:[#allocation3 + $0xe0] sm:$0xff] %vm279_vm0, %v5106_v0 }
  0x2a   : > { %2512 = vst.msk [vmem:[#allocation3 + $0xf0] sm:$0xff] %vm279_vm0, %v5106_v0  ;;  %2513 = vst.msk [vmem:[#allocation3 + $0xf8] sm:$0xff] %vm279_vm0, %v5106_v0 }
  0x2b   : > { %2515 = vst.msk [vmem:[#allocation3 + $0x108] sm:$0xff] %vm279_vm0, %v5106_v0  ;;  %2516 = vst.msk [vmem:[#allocation3 + $0x110] sm:$0xff] %vm279_vm0, %v5106_v0 }
  0x2c   : > { %2518 = vst.msk [vmem:[#allocation3 + $0x120] sm:$0xff] %vm279_vm0, %v5106_v0  ;;  %2519 = vst.msk [vmem:[#allocation3 + $0x128] sm:$0xff] %vm279_vm0, %v5106_v0 }
  0x2d   : > { %2521 = vst.msk [vmem:[#allocation3 + $0x138] sm:$0xff] %vm279_vm0, %v5106_v0  ;;  %2522 = vst.msk [vmem:[#allocation3 + $0x140] sm:$0xff] %vm279_vm0, %v5106_v0 }
  0x2e   : > { %2524 = vst.msk [vmem:[#allocation3 + $0x150] sm:$0xff] %vm279_vm0, %v5106_v0  ;;  %2525 = vst.msk [vmem:[#allocation3 + $0x158] sm:$0xff] %vm279_vm0, %v5106_v0 }
  0x2f   : > { %2527 = vst.msk [vmem:[#allocation3 + $0x168] sm:$0xff] %vm279_vm0, %v5106_v0  ;;  %2528 = vst.msk [vmem:[#allocation3 + $0x170] sm:$0xff] %vm279_vm0, %v5106_v0 }
  0x30   : > { %2530 = vst.msk [vmem:[#allocation3 + $0x180] sm:$0xff] %vm279_vm0, %v5106_v0  ;;  %2531 = vst.msk [vmem:[#allocation3 + $0x188] sm:$0xff] %vm279_vm0, %v5106_v0 }
  0x31   : > { %2533 = vst.msk [vmem:[#allocation3 + $0x198] sm:$0xff] %vm279_vm0, %v5106_v0  ;;  %2534 = vst.msk [vmem:[#allocation3 + $0x1a0] sm:$0xff] %vm279_vm0, %v5106_v0 }
  0x32   : > { %283 = vst.msk [vmem:[#allocation2 + $0x10] sm:$0x3] %vm282_vm1, %v5106_v0  ;;  %286 = vst.msk [vmem:[#allocation2 + $0x28] sm:$0x3] %vm282_vm1, %v5106_v0 }
  0x33   : > { %289 = vst.msk [vmem:[#allocation2 + $0x40] sm:$0x3] %vm282_vm1, %v5106_v0  ;;  %292 = vst.msk [vmem:[#allocation2 + $0x58] sm:$0x3] %vm282_vm1, %v5106_v0 }
  0x34   : > { %295 = vst.msk [vmem:[#allocation2 + $0x70] sm:$0x3] %vm282_vm1, %v5106_v0  ;;  %298 = vst.msk [vmem:[#allocation2 + $0x88] sm:$0x3] %vm282_vm1, %v5106_v0 }
  0x35   : > { %301 = vst.msk [vmem:[#allocation2 + $0xa0] sm:$0x3] %vm282_vm1, %v5106_v0  ;;  %304 = vst.msk [vmem:[#allocation2 + $0xb8] sm:$0x3] %vm282_vm1, %v5106_v0 }
  0x36   : > { %307 = vst.msk [vmem:[#allocation2 + $0xd0] sm:$0x3] %vm282_vm1, %v5106_v0  ;;  %310 = vst.msk [vmem:[#allocation2 + $0xe8] sm:$0x3] %vm282_vm1, %v5106_v0 }
  0x37   : > { %313 = vst.msk [vmem:[#allocation2 + $0x100] sm:$0x3] %vm282_vm1, %v5106_v0  ;;  %316 = vst.msk [vmem:[#allocation2 + $0x118] sm:$0x3] %vm282_vm1, %v5106_v0 }
  0x38   : > { %319 = vst.msk [vmem:[#allocation2 + $0x130] sm:$0x3] %vm282_vm1, %v5106_v0  ;;  %322 = vst.msk [vmem:[#allocation2 + $0x148] sm:$0x3] %vm282_vm1, %v5106_v0 }
  0x39   : > { %325 = vst.msk [vmem:[#allocation2 + $0x160] sm:$0x3] %vm282_vm1, %v5106_v0  ;;  %328 = vst.msk [vmem:[#allocation2 + $0x178] sm:$0x3] %vm282_vm1, %v5106_v0  ;;  %v465_v8 = vld [vmem:[#allocation2 + $0x9] sm:$0xff] }
  0x3a   : > { %331 = vst.msk [vmem:[#allocation2 + $0x190] sm:$0x3] %vm282_vm1, %v5106_v0  ;;  %334 = vst.msk [vmem:[#allocation2 + $0x1a8] sm:$0x3] %vm282_vm1, %v5106_v0  ;;  %530 = vrot.lane.b32.xlu0 %v465_v8, %s5107_s8 }
  0x3b   : > { %2484 = vst.msk [vmem:[#allocation3 + $0x10] sm:$0x3] %vm282_vm1, %v5106_v0  ;;  %2487 = vst.msk [vmem:[#allocation3 + $0x28] sm:$0x3] %vm282_vm1, %v5106_v0 }
  0x3c   : > { %2490 = vst.msk [vmem:[#allocation3 + $0x40] sm:$0x3] %vm282_vm1, %v5106_v0  ;;  %2493 = vst.msk [vmem:[#allocation3 + $0x58] sm:$0x3] %vm282_vm1, %v5106_v0 }
  0x3d   : > { %2496 = vst.msk [vmem:[#allocation3 + $0x70] sm:$0x3] %vm282_vm1, %v5106_v0  ;;  %2499 = vst.msk [vmem:[#allocation3 + $0x88] sm:$0x3] %vm282_vm1, %v5106_v0 }
  0x3e   : > { %2502 = vst.msk [vmem:[#allocation3 + $0xa0] sm:$0x3] %vm282_vm1, %v5106_v0  ;;  %2505 = vst.msk [vmem:[#allocation3 + $0xb8] sm:$0x3] %vm282_vm1, %v5106_v0 }
  0x3f   : > { %2508 = vst.msk [vmem:[#allocation3 + $0xd0] sm:$0x3] %vm282_vm1, %v5106_v0  ;;  %2511 = vst.msk [vmem:[#allocation3 + $0xe8] sm:$0x3] %vm282_vm1, %v5106_v0 }
  0x40   : > { %2514 = vst.msk [vmem:[#allocation3 + $0x100] sm:$0x3] %vm282_vm1, %v5106_v0  ;;  %2517 = vst.msk [vmem:[#allocation3 + $0x118] sm:$0x3] %vm282_vm1, %v5106_v0 }
  0x41   : > { %2520 = vst.msk [vmem:[#allocation3 + $0x130] sm:$0x3] %vm282_vm1, %v5106_v0  ;;  %2523 = vst.msk [vmem:[#allocation3 + $0x148] sm:$0x3] %vm282_vm1, %v5106_v0 }
  0x42   : > { %2526 = vst.msk [vmem:[#allocation3 + $0x160] sm:$0x3] %vm282_vm1, %v5106_v0  ;;  %2529 = vst.msk [vmem:[#allocation3 + $0x178] sm:$0x3] %vm282_vm1, %v5106_v0 }
  0x43   : > { %2532 = vst.msk [vmem:[#allocation3 + $0x190] sm:$0x3] %vm282_vm1, %v5106_v0  ;;  %2535 = vst.msk [vmem:[#allocation3 + $0x1a8] sm:$0x3] %vm282_vm1, %v5106_v0 }
  0x44   : > { %368 = vst.msk [vmem:[#allocation2 + $0x19] sm:$0xff] %vm279_vm0, %v335_v1  ;;  %369 = vst.msk [vmem:[#allocation2 + $0x21] sm:$0xff] %vm279_vm0, %v336_v2 }
  0x45   : > { %370 = vst.msk [vmem:[#allocation2 + $0x31] sm:$0xff] %vm279_vm0, %v337_v3  ;;  %371 = vst.msk [vmem:[#allocation2 + $0x39] sm:$0xff] %vm279_vm0, %v338_v4 }
  0x46   : > { %372 = vst.msk [vmem:[#allocation2 + $0x49] sm:$0xff] %vm279_vm0, %v339_v5  ;;  %373 = vst.msk [vmem:[#allocation2 + $0x51] sm:$0xff] %vm279_vm0, %v340_v6 }
  0x47   : > { %374 = vst.msk [vmem:[#allocation2 + $0x61] sm:$0xff] %vm279_vm0, %v341_v9  ;;  %375 = vst.msk [vmem:[#allocation2 + $0x69] sm:$0xff] %vm279_vm0, %v342_v10 }
  0x48   : > { %376 = vst.msk [vmem:[#allocation2 + $0x79] sm:$0xff] %vm279_vm0, %v343_v11  ;;  %377 = vst.msk [vmem:[#allocation2 + $0x81] sm:$0xff] %vm279_vm0, %v344_v12 }
  0x49   : > { %378 = vst.msk [vmem:[#allocation2 + $0x91] sm:$0xff] %vm279_vm0, %v345_v13  ;;  %379 = vst.msk [vmem:[#allocation2 + $0x99] sm:$0xff] %vm279_vm0, %v346_v14 }
  0x4a   : > { %380 = vst.msk [vmem:[#allocation2 + $0xa9] sm:$0xff] %vm279_vm0, %v347_v15  ;;  %381 = vst.msk [vmem:[#allocation2 + $0xb1] sm:$0xff] %vm279_vm0, %v348_v16 }
  0x4b   : > { %382 = vst.msk [vmem:[#allocation2 + $0xc1] sm:$0xff] %vm279_vm0, %v349_v17  ;;  %383 = vst.msk [vmem:[#allocation2 + $0xc9] sm:$0xff] %vm279_vm0, %v350_v18  ;;  %v5442_v25 = vld [vmem:[#allocation2 + $0x19] sm:$0xff]  ;;  %v5451_v27 = vld [vmem:[#allocation2 + $0x21] sm:$0xff] }
  0x4c   : > { %384 = vst.msk [vmem:[#allocation2 + $0xd9] sm:$0xff] %vm279_vm0, %v351_v19  ;;  %385 = vst.msk [vmem:[#allocation2 + $0xe1] sm:$0xff] %vm279_vm0, %v352_v20  ;;  %v5444_v26 = vld [vmem:[#allocation2 + $0x31] sm:$0xff]  ;;  %532 = vrot.lane.b32.xlu1 %v5442_v25, %s5107_s8  ;;  %v5463_v31 = vld [vmem:[#allocation2 + $0x39] sm:$0xff] }
  0x4d   : > { %386 = vst.msk [vmem:[#allocation2 + $0xf1] sm:$0xff] %vm279_vm0, %v353_v21  ;;  %387 = vst.msk [vmem:[#allocation2 + $0xf9] sm:$0xff] %vm279_vm0, %v354_v22  ;;  %536 = vrot.lane.b32.xlu0 %v5444_v26, %s5107_s8  ;;  %v5459_v30 = vld [vmem:[#allocation2 + $0x49] sm:$0xff]  ;;  %v5480_v39 = vld [vmem:[#allocation2 + $0x51] sm:$0xff] }
  0x4e   : > { %388 = vst.msk [vmem:[#allocation2 + $0x109] sm:$0xff] %vm279_vm0, %v355_v23  ;;  %389 = vst.msk [vmem:[#allocation2 + $0x111] sm:$0xff] %vm279_vm0, %v356_v24  ;;  %v5467_v32 = vld [vmem:[#allocation2 + $0x61] sm:$0xff]  ;;  %v5491_v41 = vld [vmem:[#allocation2 + $0x69] sm:$0xff] }
  0x4f   : > { %390 = vst.msk [vmem:[#allocation2 + $0x121] sm:$0xff] %vm279_vm0, %v357_v28  ;;  %391 = vst.msk [vmem:[#allocation2 + $0x129] sm:$0xff] %vm279_vm0, %v358_v29  ;;  %v5487_v40 = vld [vmem:[#allocation2 + $0x79] sm:$0xff]  ;;  %v5499_v43 = vld [vmem:[#allocation2 + $0x81] sm:$0xff] }
  0x50   : > { %534 = vrot.lane.b32.xlu1 %v5451_v27, %s5107_s8  ;;  %392 = vst.msk [vmem:[#allocation2 + $0x139] sm:$0xff] %vm279_vm0, %v359_v33  ;;  %393 = vst.msk [vmem:[#allocation2 + $0x141] sm:$0xff] %vm279_vm0, %v360_v34  ;;  %v5495_v42 = vld [vmem:[#allocation2 + $0x91] sm:$0xff]  ;;  %v5509_v47 = vld [vmem:[#allocation2 + $0x99] sm:$0xff] }
  0x51   : > { %540 = vrot.lane.b32.xlu0 %v5459_v30, %s5107_s8  ;;  %394 = vst.msk [vmem:[#allocation2 + $0x151] sm:$0xff] %vm279_vm0, %v361_v35  ;;  %395 = vst.msk [vmem:[#allocation2 + $0x159] sm:$0xff] %vm279_vm0, %v362_v36  ;;  %v5503_v44 = vld [vmem:[#allocation2 + $0xa9] sm:$0xff]  ;;  %v5507_v46 = vld [vmem:[#allocation2 + $0x18] sm:$0xff] }
  0x52   : > { %396 = vst.msk [vmem:[#allocation2 + $0x169] sm:$0xff] %vm279_vm0, %v363_v37  ;;  %397 = vst.msk [vmem:[#allocation2 + $0x171] sm:$0xff] %vm279_vm0, %v364_v38  ;;  %v5517_v49 = vld [vmem:[#allocation2 + $0x20] sm:$0xff]  ;;  %v5523_v51 = vld [vmem:[#allocation2 + $0x30] sm:$0xff] }
  0x53   : > { %432 = vst.msk [vmem:[#allocation4] sm:$0xff] %vm279_vm0, %v400_v45  ;;  %434 = vst.msk [vmem:[#allocation4 + $0x10] sm:$0xff] %vm279_vm0, %v5507_v46  ;;  %v5519_v50 = vld [vmem:[#allocation2 + $0xc1] sm:$0xff]  ;;  %v5525_v52 = vld [vmem:[#allocation2 + $0x38] sm:$0xff] }
  0x54   : > { %538 = vrot.lane.b32.xlu1 %v5463_v31, %s5107_s8  ;;  %433 = vst.msk [vmem:[#allocation4 + $0x8] sm:$0xff] %vm279_vm0, %v401_v48  ;;  %435 = vst.msk [vmem:[#allocation4 + $0x18] sm:$0xff] %vm279_vm0, %v5517_v49  ;;  %v5529_v53 = vld [vmem:[#allocation2 + $0xb1] sm:$0xff]  ;;  %v5535_v54 = vld [vmem:[#allocation2 + $0x48] sm:$0xff] }
  0x55   : > { %544 = vrot.lane.b32.xlu0 %v5467_v32, %s5107_s8  ;;  %436 = vst.msk [vmem:[#allocation4 + $0x20] sm:$0xff] %vm279_vm0, %v5523_v51  ;;  %437 = vst.msk [vmem:[#allocation4 + $0x28] sm:$0xff] %vm279_vm0, %v5525_v52  ;;  %v5537_v55 = vld [vmem:[#allocation2 + $0x50] sm:$0xff]  ;;  %v5539_v56 = vld [vmem:[#allocation2 + $0xd9] sm:$0xff] }
  0x56   : > { %438 = vst.msk [vmem:[#allocation4 + $0x30] sm:$0xff] %vm279_vm0, %v5535_v54  ;;  %439 = vst.msk [vmem:[#allocation4 + $0x38] sm:$0xff] %vm279_vm0, %v5537_v55  ;;  %v5545_v57 = vld [vmem:[#allocation2 + $0x60] sm:$0xff]  ;;  %v5547_v58 = vld [vmem:[#allocation2 + $0x68] sm:$0xff] }
  0x57   : > { %v5549_v59 = vld [vmem:[#allocation2 + $0x78] sm:$0xff]  ;;  %440 = vst.msk [vmem:[#allocation4 + $0x40] sm:$0xff] %vm279_vm0, %v5545_v57  ;;  %441 = vst.msk [vmem:[#allocation4 + $0x48] sm:$0xff] %vm279_vm0, %v5547_v58  ;;  %v5559_v60 = vld [vmem:[#allocation2 + $0x80] sm:$0xff] }
  0x58   : > { %542 = vrot.lane.b32.xlu1 %v5480_v39, %s5107_s8  ;;  %442 = vst.msk [vmem:[#allocation4 + $0x50] sm:$0xff] %vm279_vm0, %v5549_v59  ;;  %v5561_v61 = vld [vmem:[#allocation2 + $0x90] sm:$0xff]  ;;  %v5563_v62 = vld [vmem:[#allocation2 + $0x98] sm:$0xff]  ;;  %443 = vst.msk [vmem:[#allocation4 + $0x58] sm:$0xff] %vm279_vm0, %v5559_v60 }
  0x59   : > { %548 = vrot.lane.b32.xlu0 %v5487_v40, %s5107_s8  ;;  %v5565_v63 = vld [vmem:[#allocation2 + $0xc9] sm:$0xff]  ;;  %444 = vst.msk [vmem:[#allocation4 + $0x60] sm:$0xff] %vm279_vm0, %v5561_v61  ;;  %445 = vst.msk [vmem:[#allocation4 + $0x68] sm:$0xff] %vm279_vm0, %v5563_v62  ;;  %v5577_v2 = vld [vmem:[#allocation2 + $0xc0] sm:$0xff] }
  0x5a   : > { %v5573_v0 = vld [vmem:[#allocation2 + $0xa8] sm:$0xff]  ;;  %v5575_v1 = vld [vmem:[#allocation2 + $0xb0] sm:$0xff]  ;;  %448 = vst.msk [vmem:[#allocation4 + $0x80] sm:$0xff] %vm279_vm0, %v5577_v2  ;;  %v5589_v4 = vld [vmem:[#allocation2 + $0xd8] sm:$0xff] }
  0x5b   : > { %446 = vst.msk [vmem:[#allocation4 + $0x70] sm:$0xff] %vm279_vm0, %v5573_v0  ;;  %447 = vst.msk [vmem:[#allocation4 + $0x78] sm:$0xff] %vm279_vm0, %v5575_v1  ;;  %v5587_v3 = vld [vmem:[#allocation2 + $0xc8] sm:$0xff]  ;;  %v5591_v5 = vld [vmem:[#allocation2 + $0xe0] sm:$0xff] }
  0x5c   : > { %546 = vrot.lane.b32.xlu1 %v5491_v41, %s5107_s8  ;;  %449 = vst.msk [vmem:[#allocation4 + $0x88] sm:$0xff] %vm279_vm0, %v5587_v3  ;;  %450 = vst.msk [vmem:[#allocation4 + $0x90] sm:$0xff] %vm279_vm0, %v5589_v4  ;;  %v5599_v6 = vld [vmem:[#allocation2 + $0xf0] sm:$0xff]  ;;  %v5601_v7 = vld [vmem:[#allocation2 + $0xf8] sm:$0xff] }
  0x5d   : > { %552 = vrot.lane.b32.xlu0 %v5495_v42, %s5107_s8  ;;  %451 = vst.msk [vmem:[#allocation4 + $0x98] sm:$0xff] %vm279_vm0, %v5591_v5  ;;  %v5603_v8 = vld [vmem:[#allocation2 + $0x108] sm:$0xff]  ;;  %452 = vst.msk [vmem:[#allocation4 + $0xa0] sm:$0xff] %vm279_vm0, %v5599_v6  ;;  %v5613_v9 = vld [vmem:[#allocation2 + $0x110] sm:$0xff] }
  0x5e   : > { %453 = vst.msk [vmem:[#allocation4 + $0xa8] sm:$0xff] %vm279_vm0, %v5601_v7  ;;  %454 = vst.msk [vmem:[#allocation4 + $0xb0] sm:$0xff] %vm279_vm0, %v5603_v8  ;;  %v5615_v10 = vld [vmem:[#allocation2 + $0xf1] sm:$0xff]  ;;  %v5621_v11 = vld [vmem:[#allocation2 + $0x120] sm:$0xff] }
  0x5f   : > { %455 = vst.msk [vmem:[#allocation4 + $0xb8] sm:$0xff] %vm279_vm0, %v5613_v9  ;;  %v5623_v12 = vld [vmem:[#allocation2 + $0x128] sm:$0xff]  ;;  %456 = vst.msk [vmem:[#allocation4 + $0xc0] sm:$0xff] %vm279_vm0, %v5621_v11  ;;  %v5637_v15 = vld [vmem:[#allocation2 + $0x138] sm:$0xff] }
  0x60   : > { %550 = vrot.lane.b32.xlu1 %v5499_v43, %s5107_s8  ;;  %v5625_v13 = vld [vmem:[#allocation2 + $0xe1] sm:$0xff]  ;;  %457 = vst.msk [vmem:[#allocation4 + $0xc8] sm:$0xff] %vm279_vm0, %v5623_v12  ;;  %v5633_v14 = vld [vmem:[#allocation2 + $0x109] sm:$0xff]  ;;  %v5641_v17 = vld [vmem:[#allocation2 + $0xf9] sm:$0xff] }
  0x61   : > { %556 = vrot.lane.b32.xlu0 %v5503_v44, %s5107_s8  ;;  %v5639_v16 = vld [vmem:[#allocation2 + $0x140] sm:$0xff]  ;;  %458 = vst.msk [vmem:[#allocation4 + $0xd0] sm:$0xff] %vm279_vm0, %v5637_v15  ;;  %v5653_v19 = vld [vmem:[#allocation2 + $0x150] sm:$0xff]  ;;  %v5655_v20 = vld [vmem:[#allocation2 + $0x158] sm:$0xff] }
  0x62   : > { %459 = vst.msk [vmem:[#allocation4 + $0xd8] sm:$0xff] %vm279_vm0, %v5639_v16  ;;  %v5649_v18 = vld [vmem:[#allocation2 + $0x121] sm:$0xff]  ;;  %v5657_v21 = vld [vmem:[#allocation2 + $0x111] sm:$0xff]  ;;  %460 = vst.msk [vmem:[#allocation4 + $0xe0] sm:$0xff] %vm279_vm0, %v5653_v19 }
  0x63   : > { %461 = vst.msk [vmem:[#allocation4 + $0xe8] sm:$0xff] %vm279_vm0, %v5655_v20  ;;  %v5665_v22 = vld [vmem:[#allocation2 + $0x139] sm:$0xff]  ;;  %v5669_v23 = vld [vmem:[#allocation2 + $0x168] sm:$0xff]  ;;  %v5671_v24 = vld [vmem:[#allocation2 + $0x170] sm:$0xff] }
  0x64   : > { %554 = vrot.lane.b32.xlu1 %v5509_v47, %s5107_s8  ;;  %v5673_v28 = vld [vmem:[#allocation2 + $0x129] sm:$0xff]  ;;  %462 = vst.msk [vmem:[#allocation4 + $0xf0] sm:$0xff] %vm279_vm0, %v5669_v23  ;;  %463 = vst.msk [vmem:[#allocation4 + $0xf8] sm:$0xff] %vm279_vm0, %v5671_v24  ;;  %v5681_v29 = vld [vmem:[#allocation2 + $0x151] sm:$0xff] }
  0x65   : > { %560 = vrot.lane.b32.xlu0 %v5519_v50, %s5107_s8  ;;  %v5685_v33 = vld [vmem:[#allocation2 + $0x141] sm:$0xff]  ;;  %v365_v34 = vld [vmem:[%s5397_s30 + $0xf0] sm:$0xff]  ;;  %v366_v36 = vld [vmem:[%s5397_s30 + $0xf8] sm:$0xff] }
  0x66   : > { %7626 = vst [vmem:[#allocation5_spill] sm:$0xff] %v5685_v33  ;;  %v5690_v35 = vld [vmem:[#allocation2 + $0x169] sm:$0xff]  ;;  %398 = vst.msk [vmem:[#allocation2 + $0x181] sm:$0xff] %vm279_vm0, %v365_v34  ;;  %v5697_v37 = vld [vmem:[#allocation2 + $0x159] sm:$0xff] }
  0x67   : > { %7627 = vst [vmem:[#allocation6_spill] sm:$0xff] %v5690_v35  ;;  %399 = vst.msk [vmem:[#allocation2 + $0x189] sm:$0xff] %vm279_vm0, %v366_v36  ;;  %v657_v38 = vld [vmem:[#allocation2 + $0x2] sm:$0xff]  ;;  %v5703_v45 = vld [vmem:[#allocation2 + $0x171] sm:$0xff] }
  0x68   : > { %558 = vrot.lane.b32.xlu1 %v5529_v53, %s5107_s8  ;;  %7628 = vst [vmem:[#allocation7_spill] sm:$0xff] %v5697_v37  ;;  %7629 = vst [vmem:[#allocation8_spill] sm:$0xff] %v5703_v45  ;;  %v5706_v48 = vld [vmem:[#allocation2 + $0x1a] sm:$0xff]  ;;  %v658_v34 = vld [vmem:[#allocation2 + $0xa] sm:$0xff] }
  0x69   : > { %564 = vrot.lane.b32.xlu0 %v5539_v56, %s5107_s8  ;;  %7630 = vst [vmem:[#allocation9_spill] sm:$0xff] %v5706_v48  ;;  %v5712_v36 = vld [vmem:[#allocation2 + $0x32] sm:$0xff] }
  0x6a   : > { %7631 = vst [vmem:[#allocation10_spill] sm:$0xff] %v5712_v36 }
  0x6c   : > { %562 = vrot.lane.b32.xlu1 %v5565_v63, %s5107_s8 }
  0x6d   : > { %568 = vrot.lane.b32.xlu0 %v5615_v10, %s5107_s8 }
  0x70   : > { %566 = vrot.lane.b32.xlu1 %v5625_v13, %s5107_s8 }
  0x71   : > { %572 = vrot.lane.b32.xlu0 %v5633_v14, %s5107_s8 }
  0x74   : > { %570 = vrot.lane.b32.xlu1 %v5641_v17, %s5107_s8 }
  0x75   : > { %576 = vrot.lane.b32.xlu0 %v5649_v18, %s5107_s8 }
  0x78   : > { %574 = vrot.lane.b32.xlu1 %v5657_v21, %s5107_s8 }
  0x79   : > { %580 = vrot.lane.b32.xlu0 %v5665_v22, %s5107_s8 }
  0x7c   : > { %578 = vrot.lane.b32.xlu1 %v5673_v28, %s5107_s8 }
  0x7d   : > { %584 = vrot.lane.b32.xlu0 %v5681_v29, %s5107_s8 }
  0x80   : > { %582 = vrot.lane.b32.xlu1 %v5685_v33, %s5107_s8 }
  0x81   : > { %588 = vrot.lane.b32.xlu0 %v5690_v35, %s5107_s8  ;;  %v5715_v35 = vld [vmem:[#allocation2 + $0x22] sm:$0xff] }
  0x82   : > { %7632 = vst [vmem:[#allocation11_spill] sm:$0xff] %v5715_v35 }
  0x84   : > { %586 = vrot.lane.b32.xlu1 %v5697_v37, %s5107_s8  ;;  %v5719_v37 = vld [vmem:[#allocation2 + $0x4a] sm:$0xff] }
  0x85   : > { %721 = vrot.lane.b32.xlu0 %v657_v38, %s5108_s9  ;;  %7633 = vst [vmem:[#allocation12_spill] sm:$0xff] %v5719_v37  ;;  %v5723_v38 = vld [vmem:[#allocation2 + $0x3a] sm:$0xff] }
  0x86   : > { %7634 = vst [vmem:[#allocation13_spill] sm:$0xff] %v5723_v38 }
  0x88   : > { %590 = vrot.lane.b32.xlu1 %v5703_v45, %s5107_s8  ;;  %v5803_v45 = vld [vmem:[#allocation2 + $0x12a] sm:$0xff] }
  0x89   : > { %725 = vrot.lane.b32.xlu0 %v5706_v48, %s5108_s9  ;;  %v5727_v48 = vld [vmem:[#allocation2 + $0x62] sm:$0xff]  ;;  %7654 = vst [vmem:[#allocation33_spill] sm:$0xff] %v5803_v45 }
  0x8a   : > { %7635 = vst [vmem:[#allocation14_spill] sm:$0xff] %v5727_v48 }
  0x8c   : > { %723 = vrot.lane.b32.xlu1 %v658_v34, %s5108_s9  ;;  %v5731_v34 = vld [vmem:[#allocation2 + $0x52] sm:$0xff] }
  0x8d   : > { %729 = vrot.lane.b32.xlu0 %v5712_v36, %s5108_s9  ;;  %7636 = vst [vmem:[#allocation15_spill] sm:$0xff] %v5731_v34  ;;  %v5735_v36 = vld [vmem:[#allocation2 + $0x7a] sm:$0xff] }
  0x8e   : > { %7637 = vst [vmem:[#allocation16_spill] sm:$0xff] %v5735_v36 }
  0x90   : > { %727 = vrot.lane.b32.xlu1 %v5715_v35, %s5108_s9  ;;  %v5739_v35 = vld [vmem:[#allocation2 + $0x6a] sm:$0xff] }
  0x91   : > { %733 = vrot.lane.b32.xlu0 %v5719_v37, %s5108_s9  ;;  %7638 = vst [vmem:[#allocation17_spill] sm:$0xff] %v5739_v35  ;;  %v5743_v37 = vld [vmem:[#allocation2 + $0x92] sm:$0xff] }
  0x92   : > { %7639 = vst [vmem:[#allocation18_spill] sm:$0xff] %v5743_v37 }
  0x94   : > { %731 = vrot.lane.b32.xlu1 %v5723_v38, %s5108_s9  ;;  %v5747_v38 = vld [vmem:[#allocation2 + $0x82] sm:$0xff] }
  0x95   : > { %737 = vrot.lane.b32.xlu0 %v5727_v48, %s5108_s9  ;;  %7640 = vst [vmem:[#allocation19_spill] sm:$0xff] %v5747_v38  ;;  %v5751_v48 = vld [vmem:[#allocation2 + $0xaa] sm:$0xff] }
  0x96   : > { %7641 = vst [vmem:[#allocation20_spill] sm:$0xff] %v5751_v48 }
  0x98   : > { %735 = vrot.lane.b32.xlu1 %v5731_v34, %s5108_s9  ;;  %v5755_v34 = vld [vmem:[#allocation2 + $0x9a] sm:$0xff] }
  0x99   : > { %741 = vrot.lane.b32.xlu0 %v5735_v36, %s5108_s9  ;;  %7642 = vst [vmem:[#allocation21_spill] sm:$0xff] %v5755_v34  ;;  %v5759_v36 = vld [vmem:[#allocation2 + $0xc2] sm:$0xff] }
  0x9a   : > { %7643 = vst [vmem:[#allocation22_spill] sm:$0xff] %v5759_v36 }
  0x9c   : > { %739 = vrot.lane.b32.xlu1 %v5739_v35, %s5108_s9  ;;  %v5763_v35 = vld [vmem:[#allocation2 + $0xb2] sm:$0xff] }
  0x9d   : > { %745 = vrot.lane.b32.xlu0 %v5743_v37, %s5108_s9  ;;  %7644 = vst [vmem:[#allocation23_spill] sm:$0xff] %v5763_v35  ;;  %v5767_v37 = vld [vmem:[#allocation2 + $0xda] sm:$0xff] }
  0x9e   : > { %7645 = vst [vmem:[#allocation24_spill] sm:$0xff] %v5767_v37 }
  0xa0   : > { %743 = vrot.lane.b32.xlu1 %v5747_v38, %s5108_s9  ;;  %v5771_v38 = vld [vmem:[#allocation2 + $0xca] sm:$0xff] }
  0xa1   : > { %749 = vrot.lane.b32.xlu0 %v5751_v48, %s5108_s9  ;;  %7646 = vst [vmem:[#allocation25_spill] sm:$0xff] %v5771_v38  ;;  %v5775_v48 = vld [vmem:[#allocation2 + $0xf2] sm:$0xff] }
  0xa2   : > { %7647 = vst [vmem:[#allocation26_spill] sm:$0xff] %v5775_v48 }
  0xa4   : > { %747 = vrot.lane.b32.xlu1 %v5755_v34, %s5108_s9  ;;  %v5779_v34 = vld [vmem:[#allocation2 + $0xe2] sm:$0xff] }
  0xa5   : > { %753 = vrot.lane.b32.xlu0 %v5759_v36, %s5108_s9  ;;  %7648 = vst [vmem:[#allocation27_spill] sm:$0xff] %v5779_v34  ;;  %v5783_v36 = vld [vmem:[#allocation2 + $0x10a] sm:$0xff] }
  0xa6   : > { %7649 = vst [vmem:[#allocation28_spill] sm:$0xff] %v5783_v36 }
  0xa8   : > { %751 = vrot.lane.b32.xlu1 %v5763_v35, %s5108_s9  ;;  %v5787_v35 = vld [vmem:[#allocation2 + $0xfa] sm:$0xff] }
  0xa9   : > { %757 = vrot.lane.b32.xlu0 %v5767_v37, %s5108_s9  ;;  %7650 = vst [vmem:[#allocation29_spill] sm:$0xff] %v5787_v35  ;;  %v5791_v37 = vld [vmem:[#allocation2 + $0x122] sm:$0xff] }
  0xaa   : > { %7651 = vst [vmem:[#allocation30_spill] sm:$0xff] %v5791_v37 }
  0xac   : > { %755 = vrot.lane.b32.xlu1 %v5771_v38, %s5108_s9  ;;  %v5795_v38 = vld [vmem:[#allocation2 + $0x112] sm:$0xff] }
  0xad   : > { %761 = vrot.lane.b32.xlu0 %v5775_v48, %s5108_s9  ;;  %7652 = vst [vmem:[#allocation31_spill] sm:$0xff] %v5795_v38  ;;  %v5799_v48 = vld [vmem:[#allocation2 + $0x13a] sm:$0xff] }
  0xae   : > { %7653 = vst [vmem:[#allocation32_spill] sm:$0xff] %v5799_v48 }
  0xb0   : > { %759 = vrot.lane.b32.xlu1 %v5779_v34, %s5108_s9  ;;  %v529_v34 = vpop.permute.xlu0 %528 }
  0xb1   : > { %765 = vrot.lane.b32.xlu0 %v5783_v36, %s5108_s9  ;;  %625 = vst.msk [vmem:[#allocation4] sm:$0xff] %vm624_vm2, %v529_v34  ;;  %v5812_v36 = vld [vmem:[#allocation2 + $0x142] sm:$0xff]  ;;  %v5818_v34 = vld [vmem:[#allocation2 + $0x16a] sm:$0xff] }
  0xb2   : > { %7655 = vst [vmem:[#allocation34_spill] sm:$0xff] %v5812_v36 }
  0xb4   : > { %763 = vrot.lane.b32.xlu1 %v5787_v35, %s5108_s9  ;;  %v5808_v35 = vld [vmem:[#allocation2 + $0x152] sm:$0xff] }
  0xb5   : > { %769 = vrot.lane.b32.xlu0 %v5791_v37, %s5108_s9  ;;  %v531_v37 = vpop.permute.xlu0 %530 }
  0xb6   : > { %626 = vst.msk [vmem:[#allocation4 + $0x8] sm:$0xff] %vm624_vm2, %v531_v37  ;;  %v5830_v37 = vld [vmem:[#allocation2 + $0x172] sm:$0xff] }
  0xb8   : > { %767 = vrot.lane.b32.xlu1 %v5795_v38, %s5108_s9  ;;  %v5822_v38 = vld [vmem:[#allocation2 + $0x15a] sm:$0xff] }
  0xb9   : > { %773 = vrot.lane.b32.xlu0 %v5799_v48, %s5108_s9 }
  0xbc   : > { %771 = vrot.lane.b32.xlu1 %v5803_v45, %s5108_s9 }
  0xbd   : > { %777 = vrot.lane.b32.xlu0 %v5808_v35, %s5108_s9 }
  0xbe   : > { %v533_v33 = vpop.permute.xlu1 %532 }
  0xbf   : > { %627 = vst.msk [vmem:[#allocation4 + $0x10] sm:$0xff] %vm624_vm2, %v533_v33  ;;  %v537_v48 = vpop.permute.xlu0 %536 }
  0xc0   : > { %775 = vrot.lane.b32.xlu1 %v5812_v36, %s5108_s9  ;;  %629 = vst.msk [vmem:[#allocation4 + $0x20] sm:$0xff] %vm624_vm2, %v537_v48 }
  0xc1   : > { %781 = vrot.lane.b32.xlu0 %v5818_v34, %s5108_s9 }
  0xc2   : > { %v535_v45 = vpop.permute.xlu1 %534 }
  0xc3   : > { %628 = vst.msk [vmem:[#allocation4 + $0x18] sm:$0xff] %vm624_vm2, %v535_v45  ;;  %v541_v33 = vpop.permute.xlu0 %540 }
  0xc4   : > { %779 = vrot.lane.b32.xlu1 %v5822_v38, %s5108_s9  ;;  %631 = vst.msk [vmem:[#allocation4 + $0x30] sm:$0xff] %vm624_vm2, %v541_v33 }
  0xc5   : > { %914 = vrot.lane.b32.xlu0 %v5507_v46, %s5109_s10 }
  0xc6   : > { %v539_v36 = vpop.permute.xlu1 %538 }
  0xc7   : > { %630 = vst.msk [vmem:[#allocation4 + $0x28] sm:$0xff] %vm624_vm2, %v539_v36  ;;  %v545_v48 = vpop.permute.xlu0 %544 }
  0xc8   : > { %783 = vrot.lane.b32.xlu1 %v5830_v37, %s5108_s9  ;;  %633 = vst.msk [vmem:[#allocation4 + $0x40] sm:$0xff] %vm624_vm2, %v545_v48 }
  0xc9   : > { %918 = vrot.lane.b32.xlu0 %v5523_v51, %s5109_s10 }
  0xca   : > { %v543_v45 = vpop.permute.xlu1 %542 }
  0xcb   : > { %632 = vst.msk [vmem:[#allocation4 + $0x38] sm:$0xff] %vm624_vm2, %v543_v45  ;;  %v549_v33 = vpop.permute.xlu0 %548 }
  0xcc   : > { %916 = vrot.lane.b32.xlu1 %v5517_v49, %s5109_s10  ;;  %635 = vst.msk [vmem:[#allocation4 + $0x50] sm:$0xff] %vm624_vm2, %v549_v33 }
  0xcd   : > { %922 = vrot.lane.b32.xlu0 %v5535_v54, %s5109_s10 }
  0xce   : > { %v547_v46 = vpop.permute.xlu1 %546 }
  0xcf   : > { %634 = vst.msk [vmem:[#allocation4 + $0x48] sm:$0xff] %vm624_vm2, %v547_v46  ;;  %v553_v36 = vpop.permute.xlu0 %552 }
  0xd0   : > { %920 = vrot.lane.b32.xlu1 %v5525_v52, %s5109_s10  ;;  %637 = vst.msk [vmem:[#allocation4 + $0x60] sm:$0xff] %vm624_vm2, %v553_v36 }
  0xd1   : > { %926 = vrot.lane.b32.xlu0 %v5545_v57, %s5109_s10 }
  0xd2   : > { %v551_v48 = vpop.permute.xlu1 %550 }
  0xd3   : > { %636 = vst.msk [vmem:[#allocation4 + $0x58] sm:$0xff] %vm624_vm2, %v551_v48  ;;  %v557_v49 = vpop.permute.xlu0 %556 }
  0xd4   : > { %924 = vrot.lane.b32.xlu1 %v5537_v55, %s5109_s10  ;;  %639 = vst.msk [vmem:[#allocation4 + $0x70] sm:$0xff] %vm624_vm2, %v557_v49 }
  0xd5   : > { %930 = vrot.lane.b32.xlu0 %v5549_v59, %s5109_s10 }
  0xd6   : > { %v555_v45 = vpop.permute.xlu1 %554 }
  0xd7   : > { %638 = vst.msk [vmem:[#allocation4 + $0x68] sm:$0xff] %vm624_vm2, %v555_v45  ;;  %v561_v33 = vpop.permute.xlu0 %560 }
  0xd8   : > { %928 = vrot.lane.b32.xlu1 %v5547_v58, %s5109_s10  ;;  %641 = vst.msk [vmem:[#allocation4 + $0x80] sm:$0xff] %vm624_vm2, %v561_v33 }
  0xd9   : > { %934 = vrot.lane.b32.xlu0 %v5561_v61, %s5109_s10 }
  0xda   : > { %v559_v46 = vpop.permute.xlu1 %558 }
  0xdb   : > { %640 = vst.msk [vmem:[#allocation4 + $0x78] sm:$0xff] %vm624_vm2, %v559_v46  ;;  %v565_v36 = vpop.permute.xlu0 %564 }
  0xdc   : > { %932 = vrot.lane.b32.xlu1 %v5559_v60, %s5109_s10  ;;  %643 = vst.msk [vmem:[#allocation4 + $0x90] sm:$0xff] %vm624_vm2, %v565_v36 }
  0xdd   : > { %938 = vrot.lane.b32.xlu0 %v5573_v0, %s5109_s10 }
  0xde   : > { %v563_v48 = vpop.permute.xlu1 %562 }
  0xdf   : > { %642 = vst.msk [vmem:[#allocation4 + $0x88] sm:$0xff] %vm624_vm2, %v563_v48  ;;  %v569_v49 = vpop.permute.xlu0 %568 }
  0xe0   : > { %936 = vrot.lane.b32.xlu1 %v5563_v62, %s5109_s10  ;;  %645 = vst.msk [vmem:[#allocation4 + $0xa0] sm:$0xff] %vm624_vm2, %v569_v49 }
  0xe1   : > { %942 = vrot.lane.b32.xlu0 %v5577_v2, %s5109_s10 }
  0xe2   : > { %v567_v45 = vpop.permute.xlu1 %566 }
  0xe3   : > { %644 = vst.msk [vmem:[#allocation4 + $0x98] sm:$0xff] %vm624_vm2, %v567_v45  ;;  %v573_v33 = vpop.permute.xlu0 %572 }
  0xe4   : > { %940 = vrot.lane.b32.xlu1 %v5575_v1, %s5109_s10  ;;  %647 = vst.msk [vmem:[#allocation4 + $0xb0] sm:$0xff] %vm624_vm2, %v573_v33 }
  0xe5   : > { %946 = vrot.lane.b32.xlu0 %v5589_v4, %s5109_s10 }
  0xe6   : > { %v571_v46 = vpop.permute.xlu1 %570 }
  0xe7   : > { %646 = vst.msk [vmem:[#allocation4 + $0xa8] sm:$0xff] %vm624_vm2, %v571_v46  ;;  %v577_v36 = vpop.permute.xlu0 %576 }
  0xe8   : > { %944 = vrot.lane.b32.xlu1 %v5587_v3, %s5109_s10  ;;  %649 = vst.msk [vmem:[#allocation4 + $0xc0] sm:$0xff] %vm624_vm2, %v577_v36 }
  0xe9   : > { %950 = vrot.lane.b32.xlu0 %v5599_v6, %s5109_s10 }
  0xea   : > { %v575_v48 = vpop.permute.xlu1 %574 }
  0xeb   : > { %648 = vst.msk [vmem:[#allocation4 + $0xb8] sm:$0xff] %vm624_vm2, %v575_v48  ;;  %v581_v49 = vpop.permute.xlu0 %580 }
  0xec   : > { %948 = vrot.lane.b32.xlu1 %v5591_v5, %s5109_s10  ;;  %651 = vst.msk [vmem:[#allocation4 + $0xd0] sm:$0xff] %vm624_vm2, %v581_v49 }
  0xed   : > { %954 = vrot.lane.b32.xlu0 %v5603_v8, %s5109_s10 }
  0xee   : > { %v579_v45 = vpop.permute.xlu1 %578 }
  0xef   : > { %650 = vst.msk [vmem:[#allocation4 + $0xc8] sm:$0xff] %vm624_vm2, %v579_v45  ;;  %v585_v33 = vpop.permute.xlu0 %584 }
  0xf0   : > { %952 = vrot.lane.b32.xlu1 %v5601_v7, %s5109_s10  ;;  %653 = vst.msk [vmem:[#allocation4 + $0xe0] sm:$0xff] %vm624_vm2, %v585_v33 }
  0xf1   : > { %958 = vrot.lane.b32.xlu0 %v5621_v11, %s5109_s10 }
  0xf2   : > { %v583_v46 = vpop.permute.xlu1 %582 }
  0xf3   : > { %652 = vst.msk [vmem:[#allocation4 + $0xd8] sm:$0xff] %vm624_vm2, %v583_v46  ;;  %v589_v36 = vpop.permute.xlu0 %588 }
  0xf4   : > { %956 = vrot.lane.b32.xlu1 %v5613_v9, %s5109_s10  ;;  %655 = vst.msk [vmem:[#allocation4 + $0xf0] sm:$0xff] %vm624_vm2, %v589_v36  ;;  %v880_v36 = vld [vmem:[#allocation2 + $0x180] sm:$0xff] }
  0xf5   : > { %962 = vrot.lane.b32.xlu0 %v5637_v15, %s5109_s10 }
  0xf6   : > { %v587_v48 = vpop.permute.xlu1 %586 }
  0xf7   : > { %654 = vst.msk [vmem:[#allocation4 + $0xe8] sm:$0xff] %vm624_vm2, %v587_v48  ;;  %v722_v49 = vpop.permute.xlu0 %721 }
  0xf8   : > { %960 = vrot.lane.b32.xlu1 %v5623_v12, %s5109_s10  ;;  %818 = vst.msk [vmem:[#allocation4] sm:$0xff] %vm817_vm3, %v722_v49 }
  0xf9   : > { %966 = vrot.lane.b32.xlu0 %v5653_v19, %s5109_s10 }
  0xfa   : > { %v591_v45 = vpop.permute.xlu1 %590 }
  0xfb   : > { %656 = vst.msk [vmem:[#allocation4 + $0xf8] sm:$0xff] %vm624_vm2, %v591_v45  ;;  %v726_v33 = vpop.permute.xlu0 %725 }
  0xfc   : > { %964 = vrot.lane.b32.xlu1 %v5639_v16, %s5109_s10  ;;  %820 = vst.msk [vmem:[#allocation4 + $0x10] sm:$0xff] %vm817_vm3, %v726_v33  ;;  %v881_v33 = vld [vmem:[#allocation2 + $0x188] sm:$0xff] }
  0xfd   : > { %970 = vrot.lane.b32.xlu0 %v5669_v23, %s5109_s10 }
  0xfe   : > { %v724_v46 = vpop.permute.xlu1 %723 }
  0xff   : > { %819 = vst.msk [vmem:[#allocation4 + $0x8] sm:$0xff] %vm817_vm3, %v724_v46  ;;  %v730_v48 = vpop.permute.xlu0 %729 }
 0x100   : > { %968 = vrot.lane.b32.xlu1 %v5655_v20, %s5109_s10  ;;  %822 = vst.msk [vmem:[#allocation4 + $0x20] sm:$0xff] %vm817_vm3, %v730_v48 }
 0x101   : > { %974 = vrot.lane.b32.xlu0 %v880_v36, %s5109_s10 }
 0x102   : > { %v728_v49 = vpop.permute.xlu1 %727 }
 0x103   : > { %821 = vst.msk [vmem:[#allocation4 + $0x18] sm:$0xff] %vm817_vm3, %v728_v49  ;;  %v734_v45 = vpop.permute.xlu0 %733 }
 0x104   : > { %972 = vrot.lane.b32.xlu1 %v5671_v24, %s5109_s10  ;;  %824 = vst.msk [vmem:[#allocation4 + $0x30] sm:$0xff] %vm817_vm3, %v734_v45 }
 0x105   : > { %1107 = vrot.lane.b32.xlu0 %v5442_v25, %s5110_s11 }
 0x106   : > { %v732_v46 = vpop.permute.xlu1 %731 }
 0x107   : > { %823 = vst.msk [vmem:[#allocation4 + $0x28] sm:$0xff] %vm817_vm3, %v732_v46  ;;  %v738_v48 = vpop.permute.xlu0 %737  ;;  %v7657_v46 = vld [vmem:[#allocation6_spill] sm:$0xff] }
 0x108   : > { %976 = vrot.lane.b32.xlu1 %v881_v33, %s5109_s10  ;;  %826 = vst.msk [vmem:[#allocation4 + $0x40] sm:$0xff] %vm817_vm3, %v738_v48  ;;  %v7658_v48 = vld [vmem:[#allocation7_spill] sm:$0xff] }
 0x109   : > { %1111 = vrot.lane.b32.xlu0 %v5444_v26, %s5110_s11 }
 0x10a   : > { %v736_v36 = vpop.permute.xlu1 %735 }
 0x10b   : > { %825 = vst.msk [vmem:[#allocation4 + $0x38] sm:$0xff] %vm817_vm3, %v736_v36  ;;  %v742_v49 = vpop.permute.xlu0 %741 }
 0x10c   : > { %1109 = vrot.lane.b32.xlu1 %v5451_v27, %s5110_s11  ;;  %828 = vst.msk [vmem:[#allocation4 + $0x50] sm:$0xff] %vm817_vm3, %v742_v49  ;;  %v7659_v49 = vld [vmem:[#allocation8_spill] sm:$0xff] }
 0x10d   : > { %1115 = vrot.lane.b32.xlu0 %v5459_v30, %s5110_s11 }
 0x10e   : > { %v740_v25 = vpop.permute.xlu1 %739 }
 0x10f   : > { %827 = vst.msk [vmem:[#allocation4 + $0x48] sm:$0xff] %vm817_vm3, %v740_v25  ;;  %v746_v45 = vpop.permute.xlu0 %745 }
 0x110   : > { %1113 = vrot.lane.b32.xlu1 %v5463_v31, %s5110_s11  ;;  %830 = vst.msk [vmem:[#allocation4 + $0x60] sm:$0xff] %vm817_vm3, %v746_v45  ;;  %v6024_v45 = vld [vmem:[#allocation2 + $0x189] sm:$0xff] }
 0x111   : > { %1119 = vrot.lane.b32.xlu0 %v5467_v32, %s5110_s11 }
 0x112   : > { %v744_v26 = vpop.permute.xlu1 %743 }
 0x113   : > { %829 = vst.msk [vmem:[#allocation4 + $0x58] sm:$0xff] %vm817_vm3, %v744_v26  ;;  %v750_v27 = vpop.permute.xlu0 %749 }
 0x114   : > { %1117 = vrot.lane.b32.xlu1 %v5480_v39, %s5110_s11  ;;  %832 = vst.msk [vmem:[#allocation4 + $0x70] sm:$0xff] %vm817_vm3, %v750_v27  ;;  %v7660_v27 = vld [vmem:[#allocation9_spill] sm:$0xff] }
 0x115   : > { %1123 = vrot.lane.b32.xlu0 %v5487_v40, %s5110_s11 }
 0x116   : > { %v748_v30 = vpop.permute.xlu1 %747 }
 0x117   : > { %831 = vst.msk [vmem:[#allocation4 + $0x68] sm:$0xff] %vm817_vm3, %v748_v30  ;;  %v754_v31 = vpop.permute.xlu0 %753 }
 0x118   : > { %1121 = vrot.lane.b32.xlu1 %v5491_v41, %s5110_s11  ;;  %834 = vst.msk [vmem:[#allocation4 + $0x80] sm:$0xff] %vm817_vm3, %v754_v31 }
 0x119   : > { %1127 = vrot.lane.b32.xlu0 %v5495_v42, %s5110_s11 }
 0x11a   : > { %v752_v32 = vpop.permute.xlu1 %751 }
 0x11b   : > { %833 = vst.msk [vmem:[#allocation4 + $0x78] sm:$0xff] %vm817_vm3, %v752_v32  ;;  %v758_v39 = vpop.permute.xlu0 %757  ;;  %v7661_v32 = vld [vmem:[#allocation10_spill] sm:$0xff] }
 0x11c   : > { %1125 = vrot.lane.b32.xlu1 %v5499_v43, %s5110_s11  ;;  %836 = vst.msk [vmem:[#allocation4 + $0x90] sm:$0xff] %vm817_vm3, %v758_v39  ;;  %v7662_v39 = vld [vmem:[#allocation11_spill] sm:$0xff] }
 0x11d   : > { %1131 = vrot.lane.b32.xlu0 %v5503_v44, %s5110_s11 }
 0x11e   : > { %v756_v40 = vpop.permute.xlu1 %755 }
 0x11f   : > { %835 = vst.msk [vmem:[#allocation4 + $0x88] sm:$0xff] %vm817_vm3, %v756_v40  ;;  %v762_v41 = vpop.permute.xlu0 %761 }
 0x120   : > { %1129 = vrot.lane.b32.xlu1 %v5509_v47, %s5110_s11  ;;  %838 = vst.msk [vmem:[#allocation4 + $0xa0] sm:$0xff] %vm817_vm3, %v762_v41 }
 0x121   : > { %1135 = vrot.lane.b32.xlu0 %v5519_v50, %s5110_s11 }
 0x122   : > { %v760_v42 = vpop.permute.xlu1 %759 }
 0x123   : > { %837 = vst.msk [vmem:[#allocation4 + $0x98] sm:$0xff] %vm817_vm3, %v760_v42  ;;  %v766_v43 = vpop.permute.xlu0 %765  ;;  %v7663_v42 = vld [vmem:[#allocation12_spill] sm:$0xff] }
 0x124   : > { %1133 = vrot.lane.b32.xlu1 %v5529_v53, %s5110_s11  ;;  %840 = vst.msk [vmem:[#allocation4 + $0xb0] sm:$0xff] %vm817_vm3, %v766_v43  ;;  %v7664_v43 = vld [vmem:[#allocation13_spill] sm:$0xff] }
 0x125   : > { %1139 = vrot.lane.b32.xlu0 %v5539_v56, %s5110_s11 }
 0x126   : > { %v764_v44 = vpop.permute.xlu1 %763 }
 0x127   : > { %839 = vst.msk [vmem:[#allocation4 + $0xa8] sm:$0xff] %vm817_vm3, %v764_v44  ;;  %v770_v47 = vpop.permute.xlu0 %769 }
 0x128   : > { %1137 = vrot.lane.b32.xlu1 %v5565_v63, %s5110_s11  ;;  %842 = vst.msk [vmem:[#allocation4 + $0xc0] sm:$0xff] %vm817_vm3, %v770_v47 }
 0x129   : > { %1143 = vrot.lane.b32.xlu0 %v5615_v10, %s5110_s11 }
 0x12a   : > { %v768_v50 = vpop.permute.xlu1 %767 }
 0x12b   : > { %841 = vst.msk [vmem:[#allocation4 + $0xb8] sm:$0xff] %vm817_vm3, %v768_v50  ;;  %v774_v53 = vpop.permute.xlu0 %773  ;;  %v7665_v50 = vld [vmem:[#allocation14_spill] sm:$0xff] }
 0x12c   : > { %1141 = vrot.lane.b32.xlu1 %v5625_v13, %s5110_s11  ;;  %844 = vst.msk [vmem:[#allocation4 + $0xd0] sm:$0xff] %vm817_vm3, %v774_v53  ;;  %v7666_v53 = vld [vmem:[#allocation15_spill] sm:$0xff] }
 0x12d   : > { %1147 = vrot.lane.b32.xlu0 %v5633_v14, %s5110_s11 }
 0x12e   : > { %v772_v56 = vpop.permute.xlu1 %771 }
 0x12f   : > { %843 = vst.msk [vmem:[#allocation4 + $0xc8] sm:$0xff] %vm817_vm3, %v772_v56  ;;  %v778_v63 = vpop.permute.xlu0 %777 }
 0x130   : > { %1145 = vrot.lane.b32.xlu1 %v5641_v17, %s5110_s11  ;;  %846 = vst.msk [vmem:[#allocation4 + $0xe0] sm:$0xff] %vm817_vm3, %v778_v63 }
 0x131   : > { %1151 = vrot.lane.b32.xlu0 %v5649_v18, %s5110_s11 }
 0x132   : > { %v776_v10 = vpop.permute.xlu1 %775 }
 0x133   : > { %845 = vst.msk [vmem:[#allocation4 + $0xd8] sm:$0xff] %vm817_vm3, %v776_v10  ;;  %v782_v13 = vpop.permute.xlu0 %781  ;;  %v7667_v10 = vld [vmem:[#allocation16_spill] sm:$0xff] }
 0x134   : > { %1149 = vrot.lane.b32.xlu1 %v5657_v21, %s5110_s11  ;;  %848 = vst.msk [vmem:[#allocation4 + $0xf0] sm:$0xff] %vm817_vm3, %v782_v13  ;;  %v7656_v21 = vld [vmem:[#allocation5_spill] sm:$0xff] }
 0x135   : > { %1155 = vrot.lane.b32.xlu0 %v5665_v22, %s5110_s11  ;;  %v7668_v13 = vld [vmem:[#allocation17_spill] sm:$0xff] }
 0x136   : > { %v780_v14 = vpop.permute.xlu1 %779 }
 0x137   : > { %847 = vst.msk [vmem:[#allocation4 + $0xe8] sm:$0xff] %vm817_vm3, %v780_v14  ;;  %v915_v17 = vpop.permute.xlu0 %914 }
 0x138   : > { %1153 = vrot.lane.b32.xlu1 %v5673_v28, %s5110_s11  ;;  %1011 = vst.msk [vmem:[#allocation4] sm:$0xff] %vm1010_vm4, %v915_v17  ;;  %v6014_v28 = vld [vmem:[#allocation2 + $0x181] sm:$0xff] }
 0x139   : > { %1159 = vrot.lane.b32.xlu0 %v5681_v29, %s5110_s11 }
 0x13a   : > { %v784_v18 = vpop.permute.xlu1 %783 }
 0x13b   : > { %849 = vst.msk [vmem:[#allocation4 + $0xf8] sm:$0xff] %vm817_vm3, %v784_v18  ;;  %v919_v33 = vpop.permute.xlu0 %918  ;;  %v7669_v18 = vld [vmem:[#allocation18_spill] sm:$0xff] }
 0x13c   : > { %1157 = vrot.lane.b32.xlu1 %v7656_v21, %s5110_s11  ;;  %1013 = vst.msk [vmem:[#allocation4 + $0x10] sm:$0xff] %vm1010_vm4, %v919_v33  ;;  %v7670_v21 = vld [vmem:[#allocation19_spill] sm:$0xff] }
 0x13d   : > { %1163 = vrot.lane.b32.xlu0 %v7657_v46, %s5110_s11  ;;  %v7671_v46 = vld [vmem:[#allocation20_spill] sm:$0xff] }
 0x13e   : > { %v917_v22 = vpop.permute.xlu1 %916 }
 0x13f   : > { %1012 = vst.msk [vmem:[#allocation4 + $0x8] sm:$0xff] %vm1010_vm4, %v917_v22  ;;  %v923_v29 = vpop.permute.xlu0 %922 }
 0x140   : > { %1161 = vrot.lane.b32.xlu1 %v7658_v48, %s5110_s11  ;;  %1015 = vst.msk [vmem:[#allocation4 + $0x20] sm:$0xff] %vm1010_vm4, %v923_v29  ;;  %v7672_v48 = vld [vmem:[#allocation21_spill] sm:$0xff] }
 0x141   : > { %1167 = vrot.lane.b32.xlu0 %v6014_v28, %s5110_s11 }
 0x142   : > { %v921_v36 = vpop.permute.xlu1 %920 }
 0x143   : > { %1014 = vst.msk [vmem:[#allocation4 + $0x18] sm:$0xff] %vm1010_vm4, %v921_v36  ;;  %v927_v25 = vpop.permute.xlu0 %926 }
 0x144   : > { %1165 = vrot.lane.b32.xlu1 %v7659_v49, %s5110_s11  ;;  %1017 = vst.msk [vmem:[#allocation4 + $0x30] sm:$0xff] %vm1010_vm4, %v927_v25  ;;  %v7673_v49 = vld [vmem:[#allocation22_spill] sm:$0xff]  ;;  %v7674_v25 = vld [vmem:[#allocation23_spill] sm:$0xff] }
 0x145   : > { %1300 = vrot.lane.b32.xlu0 %v7660_v27, %s5111_s12 }
 0x146   : > { %v925_v26 = vpop.permute.xlu1 %924 }
 0x147   : > { %1016 = vst.msk [vmem:[#allocation4 + $0x28] sm:$0xff] %vm1010_vm4, %v925_v26  ;;  %v931_v30 = vpop.permute.xlu0 %930 }
 0x148   : > { %1169 = vrot.lane.b32.xlu1 %v6024_v45, %s5110_s11  ;;  %1019 = vst.msk [vmem:[#allocation4 + $0x40] sm:$0xff] %vm1010_vm4, %v931_v30  ;;  %v7675_v30 = vld [vmem:[#allocation24_spill] sm:$0xff] }
 0x149   : > { %1304 = vrot.lane.b32.xlu0 %v7661_v32, %s5111_s12 }
 0x14a   : > { %v929_v31 = vpop.permute.xlu1 %928 }
 0x14b   : > { %1018 = vst.msk [vmem:[#allocation4 + $0x38] sm:$0xff] %vm1010_vm4, %v929_v31  ;;  %v935_v40 = vpop.permute.xlu0 %934  ;;  %v7676_v31 = vld [vmem:[#allocation25_spill] sm:$0xff] }
 0x14c   : > { %1302 = vrot.lane.b32.xlu1 %v7662_v39, %s5111_s12  ;;  %1021 = vst.msk [vmem:[#allocation4 + $0x50] sm:$0xff] %vm1010_vm4, %v935_v40  ;;  %v7677_v40 = vld [vmem:[#allocation26_spill] sm:$0xff] }
 0x14d   : > { %1308 = vrot.lane.b32.xlu0 %v7663_v42, %s5111_s12 }
 0x14e   : > { %v933_v41 = vpop.permute.xlu1 %932 }
 0x14f   : > { %1020 = vst.msk [vmem:[#allocation4 + $0x48] sm:$0xff] %vm1010_vm4, %v933_v41  ;;  %v939_v44 = vpop.permute.xlu0 %938  ;;  %v7678_v41 = vld [vmem:[#allocation27_spill] sm:$0xff] }
 0x150   : > { %1306 = vrot.lane.b32.xlu1 %v7664_v43, %s5111_s12  ;;  %1023 = vst.msk [vmem:[#allocation4 + $0x60] sm:$0xff] %vm1010_vm4, %v939_v44  ;;  %v7679_v44 = vld [vmem:[#allocation28_spill] sm:$0xff] }
 0x151   : > { %1312 = vrot.lane.b32.xlu0 %v7665_v50, %s5111_s12 }
 0x152   : > { %v937_v47 = vpop.permute.xlu1 %936 }
 0x153   : > { %1022 = vst.msk [vmem:[#allocation4 + $0x58] sm:$0xff] %vm1010_vm4, %v937_v47  ;;  %v943_v56 = vpop.permute.xlu0 %942  ;;  %v7680_v47 = vld [vmem:[#allocation29_spill] sm:$0xff] }
 0x154   : > { %1310 = vrot.lane.b32.xlu1 %v7666_v53, %s5111_s12  ;;  %1025 = vst.msk [vmem:[#allocation4 + $0x70] sm:$0xff] %vm1010_vm4, %v943_v56  ;;  %v7681_v56 = vld [vmem:[#allocation30_spill] sm:$0xff] }
 0x155   : > { %1316 = vrot.lane.b32.xlu0 %v7667_v10, %s5111_s12 }
 0x156   : > { %v941_v63 = vpop.permute.xlu1 %940 }
 0x157   : > { %1024 = vst.msk [vmem:[#allocation4 + $0x68] sm:$0xff] %vm1010_vm4, %v941_v63  ;;  %v947_v14 = vpop.permute.xlu0 %946  ;;  %v7682_v63 = vld [vmem:[#allocation31_spill] sm:$0xff] }
 0x158   : > { %1314 = vrot.lane.b32.xlu1 %v7668_v13, %s5111_s12  ;;  %1027 = vst.msk [vmem:[#allocation4 + $0x80] sm:$0xff] %vm1010_vm4, %v947_v14  ;;  %v7683_v14 = vld [vmem:[#allocation32_spill] sm:$0xff] }
 0x159   : > { %1320 = vrot.lane.b32.xlu0 %v7669_v18, %s5111_s12 }
 0x15a   : > { %v945_v17 = vpop.permute.xlu1 %944 }
 0x15b   : > { %1026 = vst.msk [vmem:[#allocation4 + $0x78] sm:$0xff] %vm1010_vm4, %v945_v17  ;;  %v951_v33 = vpop.permute.xlu0 %950  ;;  %v7684_v17 = vld [vmem:[#allocation33_spill] sm:$0xff] }
 0x15c   : > { %1318 = vrot.lane.b32.xlu1 %v7670_v21, %s5111_s12  ;;  %1029 = vst.msk [vmem:[#allocation4 + $0x90] sm:$0xff] %vm1010_vm4, %v951_v33  ;;  %v7685_v33 = vld [vmem:[#allocation34_spill] sm:$0xff] }
 0x15d   : > { %1324 = vrot.lane.b32.xlu0 %v7671_v46, %s5111_s12 }
 0x15e   : > { %v949_v22 = vpop.permute.xlu1 %948 }
 0x15f   : > { %1028 = vst.msk [vmem:[#allocation4 + $0x88] sm:$0xff] %vm1010_vm4, %v949_v22  ;;  %v955_v29 = vpop.permute.xlu0 %954 }
 0x160   : > { %1322 = vrot.lane.b32.xlu1 %v7672_v48, %s5111_s12  ;;  %1031 = vst.msk [vmem:[#allocation4 + $0xa0] sm:$0xff] %vm1010_vm4, %v955_v29  ;;  %v6114_v48 = vld [vmem:[#allocation2 + $0x182] sm:$0xff] }
 0x161   : > { %1328 = vrot.lane.b32.xlu0 %v7673_v49, %s5111_s12 }
 0x162   : > { %v953_v36 = vpop.permute.xlu1 %952 }
 0x163   : > { %1030 = vst.msk [vmem:[#allocation4 + $0x98] sm:$0xff] %vm1010_vm4, %v953_v36  ;;  %v959_v26 = vpop.permute.xlu0 %958  ;;  %v6124_v36 = vld [vmem:[#allocation2 + $0x18a] sm:$0xff] }
 0x164   : > { %1326 = vrot.lane.b32.xlu1 %v7674_v25, %s5111_s12  ;;  %1033 = vst.msk [vmem:[#allocation4 + $0xb0] sm:$0xff] %vm1010_vm4, %v959_v26 }
 0x165   : > { %1332 = vrot.lane.b32.xlu0 %v7675_v30, %s5111_s12  ;;  %v2043_v30 = vld [vmem:[%s7588_s1 + $0x10] sm:$0xff] }
 0x166   : > { %v957_v27 = vpop.permute.xlu1 %956 }
 0x167   : > { %1032 = vst.msk [vmem:[#allocation4 + $0xa8] sm:$0xff] %vm1010_vm4, %v957_v27  ;;  %v963_v32 = vpop.permute.xlu0 %962 }
 0x168   : > { %1330 = vrot.lane.b32.xlu1 %v7676_v31, %s5111_s12  ;;  %1035 = vst.msk [vmem:[#allocation4 + $0xc0] sm:$0xff] %vm1010_vm4, %v963_v32  ;;  %v2044_v31 = vld [vmem:[%s7588_s1 + $0x18] sm:$0xff] }
 0x169   : > { %1336 = vrot.lane.b32.xlu0 %v7677_v40, %s5111_s12  ;;  %v5069_v32 = vpack.c.bf16 %v2044_v31, %v2043_v30  ;;  %v1816_v40 = vld [vmem:[#allocation2 + $0x32] sm:$0xff]  ;;  %v1829_v31 = vld [vmem:[#allocation2 + $0xca] sm:$0xff] }
 0x16a   : > { %v961_v39 = vpop.permute.xlu1 %960 }
 0x16b   : > { %1034 = vst.msk [vmem:[#allocation4 + $0xb8] sm:$0xff] %vm1010_vm4, %v961_v39  ;;  %v967_v42 = vpop.permute.xlu0 %966 }
 0x16c   : > { %1334 = vrot.lane.b32.xlu1 %v7678_v41, %s5111_s12  ;;  %1037 = vst.msk [vmem:[#allocation4 + $0xd0] sm:$0xff] %vm1010_vm4, %v967_v42  ;;  %v2045_v41 = vld [vmem:[%s7588_s1 + $0x20] sm:$0xf] }
 0x16d   : > { %1340 = vrot.lane.b32.xlu0 %v7679_v44, %s5111_s12  ;;  %v1624_v42 = vld [vmem:[#allocation2 + $0x39] sm:$0xff]  ;;  %v1625_v44 = vld [vmem:[#allocation2 + $0x49] sm:$0xff] }
 0x16e   : > { %v965_v43 = vpop.permute.xlu1 %964 }
 0x16f   : > { %1036 = vst.msk [vmem:[#allocation4 + $0xc8] sm:$0xff] %vm1010_vm4, %v965_v43  ;;  %v971_v50 = vpop.permute.xlu0 %970 }
 0x170   : > { %1338 = vrot.lane.b32.xlu1 %v7680_v47, %s5111_s12  ;;  %1039 = vst.msk [vmem:[#allocation4 + $0xe0] sm:$0xff] %vm1010_vm4, %v971_v50  ;;  %v1817_v50 = vld [vmem:[#allocation2 + $0x3a] sm:$0xff] }
 0x171   : > { %1344 = vrot.lane.b32.xlu0 %v7681_v56, %s5111_s12 }
 0x172   : > { %v969_v53 = vpop.permute.xlu1 %968 }
 0x173   : > { %1038 = vst.msk [vmem:[#allocation4 + $0xd8] sm:$0xff] %vm1010_vm4, %v969_v53  ;;  %v975_v10 = vpop.permute.xlu0 %974  ;;  %v1818_v53 = vld [vmem:[#allocation2 + $0x4a] sm:$0xff] }
 0x174   : > { %1342 = vrot.lane.b32.xlu1 %v7682_v63, %s5111_s12  ;;  %1041 = vst.msk [vmem:[#allocation4 + $0xf0] sm:$0xff] %vm1010_vm4, %v975_v10  ;;  %v1626_v63 = vld [vmem:[#allocation2 + $0x51] sm:$0xff] }
 0x175   : > { %1348 = vrot.lane.b32.xlu0 %v7683_v14, %s5111_s12 }
 0x176   : > { %v973_v13 = vpop.permute.xlu1 %972 }
 0x177   : > { %1040 = vst.msk [vmem:[#allocation4 + $0xe8] sm:$0xff] %vm1010_vm4, %v973_v13  ;;  %v1108_v18 = vpop.permute.xlu0 %1107  ;;  %v1627_v13 = vld [vmem:[#allocation2 + $0x61] sm:$0xff] }
 0x178   : > { %1346 = vrot.lane.b32.xlu1 %v7684_v17, %s5111_s12  ;;  %1204 = vst.msk [vmem:[#allocation4] sm:$0xff] %vm1203_vm5, %v1108_v18  ;;  %v1819_v17 = vld [vmem:[#allocation2 + $0x52] sm:$0xff] }
 0x179   : > { %1352 = vrot.lane.b32.xlu0 %v5808_v35, %s5111_s12 }
 0x17a   : > { %v977_v21 = vpop.permute.xlu1 %976 }
 0x17b   : > { %1042 = vst.msk [vmem:[#allocation4 + $0xf8] sm:$0xff] %vm1010_vm4, %v977_v21  ;;  %v1112_v22 = vpop.permute.xlu0 %1111  ;;  %v1820_v21 = vld [vmem:[#allocation2 + $0x62] sm:$0xff] }
 0x17c   : > { %1350 = vrot.lane.b32.xlu1 %v7685_v33, %s5111_s12  ;;  %1206 = vst.msk [vmem:[#allocation4 + $0x10] sm:$0xff] %vm1203_vm5, %v1112_v22  ;;  %v1628_v22 = vld [vmem:[#allocation2 + $0x69] sm:$0xff] }
 0x17d   : > { %1356 = vrot.lane.b32.xlu0 %v5818_v34, %s5111_s12 }
 0x17e   : > { %v1110_v46 = vpop.permute.xlu1 %1109 }
 0x17f   : > { %1205 = vst.msk [vmem:[#allocation4 + $0x8] sm:$0xff] %vm1203_vm5, %v1110_v46  ;;  %v1116_v35 = vpop.permute.xlu0 %1115 }
 0x180   : > { %1354 = vrot.lane.b32.xlu1 %v5822_v38, %s5111_s12  ;;  %1208 = vst.msk [vmem:[#allocation4 + $0x20] sm:$0xff] %vm1203_vm5, %v1116_v35  ;;  %v1629_v35 = vld [vmem:[#allocation2 + $0x79] sm:$0xff] }
 0x181   : > { %1360 = vrot.lane.b32.xlu0 %v6114_v48, %s5111_s12 }
 0x182   : > { %v1114_v29 = vpop.permute.xlu1 %1113 }
 0x183   : > { %1207 = vst.msk [vmem:[#allocation4 + $0x18] sm:$0xff] %vm1203_vm5, %v1114_v29  ;;  %v1120_v34 = vpop.permute.xlu0 %1119 }
 0x184   : > { %1358 = vrot.lane.b32.xlu1 %v5830_v37, %s5111_s12  ;;  %1210 = vst.msk [vmem:[#allocation4 + $0x30] sm:$0xff] %vm1203_vm5, %v1120_v34  ;;  %v1821_v34 = vld [vmem:[#allocation2 + $0x6a] sm:$0xff] }
 0x185   : > { %1494 = vrot.lane.b32.xlu0 %v5523_v51, %s5112_s13 }
 0x186   : > { %v1118_v49 = vpop.permute.xlu1 %1117 }
 0x187   : > { %1209 = vst.msk [vmem:[#allocation4 + $0x28] sm:$0xff] %vm1203_vm5, %v1118_v49  ;;  %v1124_v38 = vpop.permute.xlu0 %1123 }
 0x188   : > { %1362 = vrot.lane.b32.xlu1 %v6124_v36, %s5111_s12  ;;  %1212 = vst.msk [vmem:[#allocation4 + $0x40] sm:$0xff] %vm1203_vm5, %v1124_v38  ;;  %v1822_v38 = vld [vmem:[#allocation2 + $0x7a] sm:$0xff] }
 0x189   : > { %1498 = vrot.lane.b32.xlu0 %v5535_v54, %s5112_s13 }
 0x18a   : > { %v1122_v25 = vpop.permute.xlu1 %1121 }
 0x18b   : > { %1211 = vst.msk [vmem:[#allocation4 + $0x38] sm:$0xff] %vm1203_vm5, %v1122_v25  ;;  %v1128_v37 = vpop.permute.xlu0 %1127 }
 0x18c   : > { %1496 = vrot.lane.b32.xlu1 %v5525_v52, %s5112_s13  ;;  %1214 = vst.msk [vmem:[#allocation4 + $0x50] sm:$0xff] %vm1203_vm5, %v1128_v37  ;;  %v1630_v37 = vld [vmem:[#allocation2 + $0x81] sm:$0xff] }
 0x18d   : > { %1502 = vrot.lane.b32.xlu0 %v5545_v57, %s5112_s13 }
 0x18e   : > { %v1126_v51 = vpop.permute.xlu1 %1125 }
 0x18f   : > { %1213 = vst.msk [vmem:[#allocation4 + $0x48] sm:$0xff] %vm1203_vm5, %v1126_v51  ;;  %v1132_v26 = vpop.permute.xlu0 %1131 }
 0x190   : > { %1500 = vrot.lane.b32.xlu1 %v5537_v55, %s5112_s13  ;;  %1216 = vst.msk [vmem:[#allocation4 + $0x60] sm:$0xff] %vm1203_vm5, %v1132_v26  ;;  %v1631_v26 = vld [vmem:[#allocation2 + $0x91] sm:$0xff] }
 0x191   : > { %1506 = vrot.lane.b32.xlu0 %v5549_v59, %s5112_s13 }
 0x192   : > { %v1130_v54 = vpop.permute.xlu1 %1129 }
 0x193   : > { %1215 = vst.msk [vmem:[#allocation4 + $0x58] sm:$0xff] %vm1203_vm5, %v1130_v54  ;;  %v1136_v52 = vpop.permute.xlu0 %1135 }
 0x194   : > { %1504 = vrot.lane.b32.xlu1 %v5547_v58, %s5112_s13  ;;  %1218 = vst.msk [vmem:[#allocation4 + $0x70] sm:$0xff] %vm1203_vm5, %v1136_v52  ;;  %v1823_v52 = vld [vmem:[#allocation2 + $0x82] sm:$0xff] }
 0x195   : > { %1510 = vrot.lane.b32.xlu0 %v5561_v61, %s5112_s13 }
 0x196   : > { %v1134_v57 = vpop.permute.xlu1 %1133 }
 0x197   : > { %1217 = vst.msk [vmem:[#allocation4 + $0x68] sm:$0xff] %vm1203_vm5, %v1134_v57  ;;  %v1140_v55 = vpop.permute.xlu0 %1139 }
 0x198   : > { %1508 = vrot.lane.b32.xlu1 %v5559_v60, %s5112_s13  ;;  %1220 = vst.msk [vmem:[#allocation4 + $0x80] sm:$0xff] %vm1203_vm5, %v1140_v55  ;;  %v1824_v55 = vld [vmem:[#allocation2 + $0x92] sm:$0xff] }
 0x199   : > { %1514 = vrot.lane.b32.xlu0 %v5573_v0, %s5112_s13 }
 0x19a   : > { %v1138_v59 = vpop.permute.xlu1 %1137 }
 0x19b   : > { %1219 = vst.msk [vmem:[#allocation4 + $0x78] sm:$0xff] %vm1203_vm5, %v1138_v59  ;;  %v1144_v58 = vpop.permute.xlu0 %1143 }
 0x19c   : > { %1512 = vrot.lane.b32.xlu1 %v5563_v62, %s5112_s13  ;;  %1222 = vst.msk [vmem:[#allocation4 + $0x90] sm:$0xff] %vm1203_vm5, %v1144_v58  ;;  %v1632_v58 = vld [vmem:[#allocation2 + $0x99] sm:$0xff] }
 0x19d   : > { %1518 = vrot.lane.b32.xlu0 %v5577_v2, %s5112_s13 }
 0x19e   : > { %v1142_v61 = vpop.permute.xlu1 %1141 }
 0x19f   : > { %1221 = vst.msk [vmem:[#allocation4 + $0x88] sm:$0xff] %vm1203_vm5, %v1142_v61  ;;  %v1148_v60 = vpop.permute.xlu0 %1147 }
 0x1a0   : > { %1516 = vrot.lane.b32.xlu1 %v5575_v1, %s5112_s13  ;;  %1224 = vst.msk [vmem:[#allocation4 + $0xa0] sm:$0xff] %vm1203_vm5, %v1148_v60  ;;  %v1633_v60 = vld [vmem:[#allocation2 + $0xa9] sm:$0xff] }
 0x1a1   : > { %1522 = vrot.lane.b32.xlu0 %v5589_v4, %s5112_s13 }
 0x1a2   : > { %v1146_v0 = vpop.permute.xlu1 %1145 }
 0x1a3   : > { %1223 = vst.msk [vmem:[#allocation4 + $0x98] sm:$0xff] %vm1203_vm5, %v1146_v0  ;;  %v1152_v62 = vpop.permute.xlu0 %1151 }
 0x1a4   : > { %1520 = vrot.lane.b32.xlu1 %v5587_v3, %s5112_s13  ;;  %1226 = vst.msk [vmem:[#allocation4 + $0xb0] sm:$0xff] %vm1203_vm5, %v1152_v62  ;;  %v1825_v62 = vld [vmem:[#allocation2 + $0x9a] sm:$0xff] }
 0x1a5   : > { %1526 = vrot.lane.b32.xlu0 %v5599_v6, %s5112_s13 }
 0x1a6   : > { %v1150_v2 = vpop.permute.xlu1 %1149 }
 0x1a7   : > { %1225 = vst.msk [vmem:[#allocation4 + $0xa8] sm:$0xff] %vm1203_vm5, %v1150_v2  ;;  %v1156_v1 = vpop.permute.xlu0 %1155 }
 0x1a8   : > { %1524 = vrot.lane.b32.xlu1 %v5591_v5, %s5112_s13  ;;  %1228 = vst.msk [vmem:[#allocation4 + $0xc0] sm:$0xff] %vm1203_vm5, %v1156_v1  ;;  %v1826_v1 = vld [vmem:[#allocation2 + $0xaa] sm:$0xff] }
 0x1a9   : > { %1530 = vrot.lane.b32.xlu0 %v5603_v8, %s5112_s13 }
 0x1aa   : > { %v1154_v4 = vpop.permute.xlu1 %1153 }
 0x1ab   : > { %1227 = vst.msk [vmem:[#allocation4 + $0xb8] sm:$0xff] %vm1203_vm5, %v1154_v4  ;;  %v1160_v3 = vpop.permute.xlu0 %1159 }
 0x1ac   : > { %1528 = vrot.lane.b32.xlu1 %v5601_v7, %s5112_s13  ;;  %1230 = vst.msk [vmem:[#allocation4 + $0xd0] sm:$0xff] %vm1203_vm5, %v1160_v3  ;;  %v1634_v3 = vld [vmem:[#allocation2 + $0xb1] sm:$0xff] }
 0x1ad   : > { %1534 = vrot.lane.b32.xlu0 %v5621_v11, %s5112_s13 }
 0x1ae   : > { %v1158_v6 = vpop.permute.xlu1 %1157 }
 0x1af   : > { %1229 = vst.msk [vmem:[#allocation4 + $0xc8] sm:$0xff] %vm1203_vm5, %v1158_v6  ;;  %v1164_v5 = vpop.permute.xlu0 %1163 }
 0x1b0   : > { %1532 = vrot.lane.b32.xlu1 %v5613_v9, %s5112_s13  ;;  %1232 = vst.msk [vmem:[#allocation4 + $0xe0] sm:$0xff] %vm1203_vm5, %v1164_v5  ;;  %v2041_v9 = vld [vmem:[%s7588_s1] sm:$0xff] }
 0x1b1   : > { %1538 = vrot.lane.b32.xlu0 %v5637_v15, %s5112_s13  ;;  %v2042_v15 = vld [vmem:[%s7588_s1 + $0x8] sm:$0xff] }
 0x1b2   : > { %v1162_v8 = vpop.permute.xlu1 %1161  ;;  %v5065_v27 = vpack.c.bf16 %v2042_v15, %v2041_v9  ;;  %v1635_v5 = vld [vmem:[#allocation2 + $0xc1] sm:$0xff] }
 0x1b3   : > { %1231 = vst.msk [vmem:[#allocation4 + $0xd8] sm:$0xff] %vm1203_vm5, %v1162_v8  ;;  %v1168_v7 = vpop.permute.xlu0 %1167  ;;  %v1828_v9 = vld [vmem:[#allocation2 + $0xc2] sm:$0xff] }
 0x1b4   : > { %1536 = vrot.lane.b32.xlu1 %v5623_v12, %s5112_s13  ;;  %1234 = vst.msk [vmem:[#allocation4 + $0xf0] sm:$0xff] %vm1203_vm5, %v1168_v7  ;;  %5066 = vmatprep.subr.bf16.mxu0 %v5065_v27  ;;  %v1827_v7 = vld [vmem:[#allocation2 + $0xb2] sm:$0xff] }
 0x1b5   : > { %1542 = vrot.lane.b32.xlu0 %v5653_v19, %s5112_s13  ;;  %5068 = vmatpush3.bf16.msra.mxu0 %v5065_v27  ;;  %v1636_v27 = vld [vmem:[#allocation2 + $0xc9] sm:$0xff] }
 0x1b6   : > { %v1166_v11 = vpop.permute.xlu1 %1165  ;;  %5070 = vmatprep.subr.bf16.mxu0 %v5069_v32 }
 0x1b7   : > { %1233 = vst.msk [vmem:[#allocation4 + $0xe8] sm:$0xff] %vm1203_vm5, %v1166_v11  ;;  %v1301_v12 = vpop.permute.xlu0 %1300 }
 0x1b8   : > { %1540 = vrot.lane.b32.xlu1 %v5639_v16, %s5112_s13  ;;  %1397 = vst.msk [vmem:[#allocation4] sm:$0xff] %vm1396_vm6, %v1301_v12  ;;  %v1623_v16 = vld [vmem:[#allocation2 + $0x31] sm:$0xff] }
 0x1b9   : > { %1546 = vrot.lane.b32.xlu0 %v5669_v23, %s5112_s13  ;;  %5072 = vmatpush3.bf16.msra.mxu0 %v5069_v32  ;;  %v1830_v32 = vld [vmem:[#allocation2 + $0xda] sm:$0xff] }
 0x1ba   : > { %v1170_v19 = vpop.permute.xlu1 %1169  ;;  %4957 = vmatprep.subr.msk.mxu0 %vm2143_vm7, %v2045_v41 }
 0x1bb   : > { %1235 = vst.msk [vmem:[#allocation4 + $0xf8] sm:$0xff] %vm1203_vm5, %v1170_v19  ;;  %v1305_v39 = vpop.permute.xlu0 %1304  ;;  %v1637_v19 = vld [vmem:[#allocation2 + $0xd9] sm:$0xff] }
 0x1bc   : > { %1544 = vrot.lane.b32.xlu1 %v5655_v20, %s5112_s13  ;;  %1399 = vst.msk [vmem:[#allocation4 + $0x10] sm:$0xff] %vm1396_vm6, %v1305_v39 }
 0x1bd   : > { %1687 = vrot.lane.b32.xlu0 %v1623_v16, %s5113_s22  ;;  %4958 = vmatpush3.msk.msra.mxu0 %vm2143_vm7, %v2045_v41  ;;  %v1639_v41 = vld [vmem:[#allocation2 + $0xf1] sm:$0xff] }
 0x1be   : > { %v1303_v23 = vpop.permute.xlu1 %1302 }
 0x1bf   : > { %1398 = vst.msk [vmem:[#allocation4 + $0x8] sm:$0xff] %vm1396_vm6, %v1303_v23  ;;  %v1309_v20 = vpop.permute.xlu0 %1308  ;;  %v1638_v23 = vld [vmem:[#allocation2 + $0xe1] sm:$0xff] }
 0x1c0   : > { %1548 = vrot.lane.b32.xlu1 %v5671_v24, %s5112_s13  ;;  %1401 = vst.msk [vmem:[#allocation4 + $0x20] sm:$0xff] %vm1396_vm6, %v1309_v20 }
 0x1c1   : > { %1880 = vrot.lane.b32.xlu0 %v1816_v40, %s5114_s28 }
 0x1c2   : > { %v1307_v43 = vpop.permute.xlu1 %1306 }
 0x1c3   : > { %1400 = vst.msk [vmem:[#allocation4 + $0x18] sm:$0xff] %vm1396_vm6, %v1307_v43  ;;  %v1313_v47 = vpop.permute.xlu0 %1312 }
 0x1c4   : > { %1689 = vrot.lane.b32.xlu1 %v1624_v42, %s5113_s22  ;;  %1403 = vst.msk [vmem:[#allocation4 + $0x30] sm:$0xff] %vm1396_vm6, %v1313_v47  ;;  %v1831_v42 = vld [vmem:[#allocation2 + $0xe2] sm:$0xff] }
 0x1c5   : > { %1691 = vrot.lane.b32.xlu0 %v1625_v44, %s5113_s22  ;;  %v1832_v44 = vld [vmem:[#allocation2 + $0xf2] sm:$0xff] }
 0x1c6   : > { %v1311_v24 = vpop.permute.xlu1 %1310 }
 0x1c7   : > { %1402 = vst.msk [vmem:[#allocation4 + $0x28] sm:$0xff] %vm1396_vm6, %v1311_v24  ;;  %v1317_v56 = vpop.permute.xlu0 %1316 }
 0x1c8   : > { %1882 = vrot.lane.b32.xlu1 %v1817_v50, %s5114_s28  ;;  %1405 = vst.msk [vmem:[#allocation4 + $0x40] sm:$0xff] %vm1396_vm6, %v1317_v56  ;;  %v1640_v50 = vld [vmem:[#allocation2 + $0xf9] sm:$0xff] }
 0x1c9   : > { %1884 = vrot.lane.b32.xlu0 %v1818_v53, %s5114_s28  ;;  %v1641_v53 = vld [vmem:[#allocation2 + $0x109] sm:$0xff] }
 0x1ca   : > { %v1315_v10 = vpop.permute.xlu1 %1314 }
 0x1cb   : > { %1404 = vst.msk [vmem:[#allocation4 + $0x38] sm:$0xff] %vm1396_vm6, %v1315_v10  ;;  %v1321_v14 = vpop.permute.xlu0 %1320 }
 0x1cc   : > { %1693 = vrot.lane.b32.xlu1 %v1626_v63, %s5113_s22  ;;  %1407 = vst.msk [vmem:[#allocation4 + $0x50] sm:$0xff] %vm1396_vm6, %v1321_v14  ;;  %v1833_v63 = vld [vmem:[#allocation2 + $0xfa] sm:$0xff] }
 0x1cd   : > { %1695 = vrot.lane.b32.xlu0 %v1627_v13, %s5113_s22  ;;  %v1834_v13 = vld [vmem:[#allocation2 + $0x10a] sm:$0xff] }
 0x1ce   : > { %v1319_v18 = vpop.permute.xlu1 %1318 }
 0x1cf   : > { %1406 = vst.msk [vmem:[#allocation4 + $0x48] sm:$0xff] %vm1396_vm6, %v1319_v18  ;;  %v1325_v33 = vpop.permute.xlu0 %1324 }
 0x1d0   : > { %1886 = vrot.lane.b32.xlu1 %v1819_v17, %s5114_s28  ;;  %1409 = vst.msk [vmem:[#allocation4 + $0x60] sm:$0xff] %vm1396_vm6, %v1325_v33  ;;  %v1642_v17 = vld [vmem:[#allocation2 + $0x111] sm:$0xff] }
 0x1d1   : > { %1888 = vrot.lane.b32.xlu0 %v1820_v21, %s5114_s28  ;;  %v1643_v21 = vld [vmem:[#allocation2 + $0x121] sm:$0xff] }
 0x1d2   : > { %v1323_v46 = vpop.permute.xlu1 %1322 }
 0x1d3   : > { %1408 = vst.msk [vmem:[#allocation4 + $0x58] sm:$0xff] %vm1396_vm6, %v1323_v46  ;;  %v1329_v29 = vpop.permute.xlu0 %1328 }
 0x1d4   : > { %1697 = vrot.lane.b32.xlu1 %v1628_v22, %s5113_s22  ;;  %1411 = vst.msk [vmem:[#allocation4 + $0x70] sm:$0xff] %vm1396_vm6, %v1329_v29  ;;  %v1835_v22 = vld [vmem:[#allocation2 + $0x112] sm:$0xff] }
 0x1d5   : > { %1699 = vrot.lane.b32.xlu0 %v1629_v35, %s5113_s22  ;;  %v1836_v35 = vld [vmem:[#allocation2 + $0x122] sm:$0xff] }
 0x1d6   : > { %v1327_v49 = vpop.permute.xlu1 %1326 }
 0x1d7   : > { %1410 = vst.msk [vmem:[#allocation4 + $0x68] sm:$0xff] %vm1396_vm6, %v1327_v49  ;;  %v1333_v25 = vpop.permute.xlu0 %1332 }
 0x1d8   : > { %1890 = vrot.lane.b32.xlu1 %v1821_v34, %s5114_s28  ;;  %1413 = vst.msk [vmem:[#allocation4 + $0x80] sm:$0xff] %vm1396_vm6, %v1333_v25  ;;  %v1644_v34 = vld [vmem:[#allocation2 + $0x129] sm:$0xff] }
 0x1d9   : > { %1892 = vrot.lane.b32.xlu0 %v1822_v38, %s5114_s28  ;;  %v1645_v38 = vld [vmem:[#allocation2 + $0x139] sm:$0xff] }
 0x1da   : > { %v1331_v51 = vpop.permute.xlu1 %1330 }
 0x1db   : > { %1412 = vst.msk [vmem:[#allocation4 + $0x78] sm:$0xff] %vm1396_vm6, %v1331_v51  ;;  %v1337_v54 = vpop.permute.xlu0 %1336 }
 0x1dc   : > { %1701 = vrot.lane.b32.xlu1 %v1630_v37, %s5113_s22  ;;  %1415 = vst.msk [vmem:[#allocation4 + $0x90] sm:$0xff] %vm1396_vm6, %v1337_v54  ;;  %v1837_v37 = vld [vmem:[#allocation2 + $0x12a] sm:$0xff] }
 0x1dd   : > { %1703 = vrot.lane.b32.xlu0 %v1631_v26, %s5113_s22  ;;  %v1838_v26 = vld [vmem:[#allocation2 + $0x13a] sm:$0xff] }
 0x1de   : > { %v1335_v57 = vpop.permute.xlu1 %1334 }
 0x1df   : > { %1414 = vst.msk [vmem:[#allocation4 + $0x88] sm:$0xff] %vm1396_vm6, %v1335_v57  ;;  %v1341_v59 = vpop.permute.xlu0 %1340 }
 0x1e0   : > { %1894 = vrot.lane.b32.xlu1 %v1823_v52, %s5114_s28  ;;  %1417 = vst.msk [vmem:[#allocation4 + $0xa0] sm:$0xff] %vm1396_vm6, %v1341_v59  ;;  %v1646_v52 = vld [vmem:[#allocation2 + $0x141] sm:$0xff] }
 0x1e1   : > { %1896 = vrot.lane.b32.xlu0 %v1824_v55, %s5114_s28  ;;  %v1647_v55 = vld [vmem:[#allocation2 + $0x151] sm:$0xff] }
 0x1e2   : > { %v1339_v61 = vpop.permute.xlu1 %1338 }
 0x1e3   : > { %1416 = vst.msk [vmem:[#allocation4 + $0x98] sm:$0xff] %vm1396_vm6, %v1339_v61  ;;  %v1345_v0 = vpop.permute.xlu0 %1344 }
 0x1e4   : > { %1705 = vrot.lane.b32.xlu1 %v1632_v58, %s5113_s22  ;;  %1419 = vst.msk [vmem:[#allocation4 + $0xb0] sm:$0xff] %vm1396_vm6, %v1345_v0  ;;  %v1839_v58 = vld [vmem:[#allocation2 + $0x142] sm:$0xff] }
 0x1e5   : > { %1707 = vrot.lane.b32.xlu0 %v1633_v60, %s5113_s22  ;;  %v1840_v60 = vld [vmem:[#allocation2 + $0x152] sm:$0xff] }
 0x1e6   : > { %v1343_v2 = vpop.permute.xlu1 %1342 }
 0x1e7   : > { %1418 = vst.msk [vmem:[#allocation4 + $0xa8] sm:$0xff] %vm1396_vm6, %v1343_v2  ;;  %v1349_v4 = vpop.permute.xlu0 %1348 }
 0x1e8   : > { %1898 = vrot.lane.b32.xlu1 %v1825_v62, %s5114_s28  ;;  %1421 = vst.msk [vmem:[#allocation4 + $0xc0] sm:$0xff] %vm1396_vm6, %v1349_v4  ;;  %v1648_v62 = vld [vmem:[#allocation2 + $0x159] sm:$0xff] }
 0x1e9   : > { %1900 = vrot.lane.b32.xlu0 %v1826_v1, %s5114_s28  ;;  %v1649_v1 = vld [vmem:[#allocation2 + $0x169] sm:$0xff] }
 0x1ea   : > { %v1347_v6 = vpop.permute.xlu1 %1346 }
 0x1eb   : > { %1420 = vst.msk [vmem:[#allocation4 + $0xb8] sm:$0xff] %vm1396_vm6, %v1347_v6  ;;  %v1353_v8 = vpop.permute.xlu0 %1352 }
 0x1ec   : > { %1709 = vrot.lane.b32.xlu1 %v1634_v3, %s5113_s22  ;;  %1423 = vst.msk [vmem:[#allocation4 + $0xd0] sm:$0xff] %vm1396_vm6, %v1353_v8  ;;  %v1841_v3 = vld [vmem:[#allocation2 + $0x15a] sm:$0xff] }
 0x1ed   : > { %1711 = vrot.lane.b32.xlu0 %v1635_v5, %s5113_s22  ;;  %v1842_v5 = vld [vmem:[#allocation2 + $0x16a] sm:$0xff] }
 0x1ee   : > { %v1351_v11 = vpop.permute.xlu1 %1350 }
 0x1ef   : > { %1422 = vst.msk [vmem:[#allocation4 + $0xc8] sm:$0xff] %vm1396_vm6, %v1351_v11  ;;  %v1357_v15 = vpop.permute.xlu0 %1356 }
 0x1f0   : > { %1902 = vrot.lane.b32.xlu1 %v1827_v7, %s5114_s28  ;;  %1425 = vst.msk [vmem:[#allocation4 + $0xe0] sm:$0xff] %vm1396_vm6, %v1357_v15  ;;  %v1650_v7 = vld [vmem:[#allocation2 + $0x171] sm:$0xff] }
 0x1f1   : > { %1904 = vrot.lane.b32.xlu0 %v1828_v9, %s5114_s28  ;;  %v1458_v9 = vld [vmem:[#allocation2 + $0x180] sm:$0xff] }
 0x1f2   : > { %v1355_v12 = vpop.permute.xlu1 %1354 }
 0x1f3   : > { %1424 = vst.msk [vmem:[#allocation4 + $0xd8] sm:$0xff] %vm1396_vm6, %v1355_v12  ;;  %v1361_v30 = vpop.permute.xlu0 %1360 }
 0x1f4   : > { %1713 = vrot.lane.b32.xlu1 %v1636_v27, %s5113_s22  ;;  %1427 = vst.msk [vmem:[#allocation4 + $0xf0] sm:$0xff] %vm1396_vm6, %v1361_v30  ;;  %v1843_v27 = vld [vmem:[#allocation2 + $0x172] sm:$0xff]  ;;  %v1459_v30 = vld [vmem:[#allocation2 + $0x188] sm:$0xff] }
 0x1f5   : > { %1715 = vrot.lane.b32.xlu0 %v1637_v19, %s5113_s22 }
 0x1f6   : > { %v1359_v16 = vpop.permute.xlu1 %1358 }
 0x1f7   : > { %1426 = vst.msk [vmem:[#allocation4 + $0xe8] sm:$0xff] %vm1396_vm6, %v1359_v16  ;;  %v1495_v39 = vpop.permute.xlu0 %1494 }
 0x1f8   : > { %1906 = vrot.lane.b32.xlu1 %v1829_v31, %s5114_s28  ;;  %1591 = vst.msk [vmem:[#allocation4] sm:$0xff] %vm1590_vm8, %v1495_v39  ;;  %v1460_v39 = vld [vmem:[#allocation2 + $0x198] sm:$0xff] }
 0x1f9   : > { %1908 = vrot.lane.b32.xlu0 %v1830_v32, %s5114_s28 }
 0x1fa   : > { %v1363_v40 = vpop.permute.xlu1 %1362 }
 0x1fb   : > { %1428 = vst.msk [vmem:[#allocation4 + $0xf8] sm:$0xff] %vm1396_vm6, %v1363_v40  ;;  %v1499_v20 = vpop.permute.xlu0 %1498 }
 0x1fc   : > { %1717 = vrot.lane.b32.xlu1 %v1638_v23, %s5113_s22  ;;  %1593 = vst.msk [vmem:[#allocation4 + $0x10] sm:$0xff] %vm1590_vm8, %v1499_v20 }
 0x1fd   : > { %1719 = vrot.lane.b32.xlu0 %v1639_v41, %s5113_s22  ;;  %v1461_v41 = vld [vmem:[#allocation2 + $0x1a0] sm:$0xff] }
 0x1fe   : > { %v1497_v43 = vpop.permute.xlu1 %1496 }
 0x1ff   : > { %1592 = vst.msk [vmem:[#allocation4 + $0x8] sm:$0xff] %vm1590_vm8, %v1497_v43  ;;  %v1503_v47 = vpop.permute.xlu0 %1502 }
 0x200   : > { %1910 = vrot.lane.b32.xlu1 %v1831_v42, %s5114_s28  ;;  %1595 = vst.msk [vmem:[#allocation4 + $0x20] sm:$0xff] %vm1590_vm8, %v1503_v47 }
 0x201   : > { %1912 = vrot.lane.b32.xlu0 %v1832_v44, %s5114_s28 }
 0x202   : > { %v1501_v24 = vpop.permute.xlu1 %1500 }
 0x203   : > { %1594 = vst.msk [vmem:[#allocation4 + $0x18] sm:$0xff] %vm1590_vm8, %v1501_v24  ;;  %v1507_v56 = vpop.permute.xlu0 %1506 }
 0x204   : > { %1721 = vrot.lane.b32.xlu1 %v1640_v50, %s5113_s22  ;;  %1597 = vst.msk [vmem:[#allocation4 + $0x30] sm:$0xff] %vm1590_vm8, %v1507_v56 }
 0x205   : > { %1723 = vrot.lane.b32.xlu0 %v1641_v53, %s5113_s22 }
 0x206   : > { %v1505_v10 = vpop.permute.xlu1 %1504 }
 0x207   : > { %1596 = vst.msk [vmem:[#allocation4 + $0x28] sm:$0xff] %vm1590_vm8, %v1505_v10  ;;  %v1511_v14 = vpop.permute.xlu0 %1510 }
 0x208   : > { %1914 = vrot.lane.b32.xlu1 %v1833_v63, %s5114_s28  ;;  %1599 = vst.msk [vmem:[#allocation4 + $0x40] sm:$0xff] %vm1590_vm8, %v1511_v14 }
 0x209   : > { %1916 = vrot.lane.b32.xlu0 %v1834_v13, %s5114_s28 }
 0x20a   : > { %v1509_v18 = vpop.permute.xlu1 %1508 }
 0x20b   : > { %1598 = vst.msk [vmem:[#allocation4 + $0x38] sm:$0xff] %vm1590_vm8, %v1509_v18  ;;  %v1515_v33 = vpop.permute.xlu0 %1514 }
 0x20c   : > { %1725 = vrot.lane.b32.xlu1 %v1642_v17, %s5113_s22  ;;  %1601 = vst.msk [vmem:[#allocation4 + $0x50] sm:$0xff] %vm1590_vm8, %v1515_v33 }
 0x20d   : > { %1727 = vrot.lane.b32.xlu0 %v1643_v21, %s5113_s22 }
 0x20e   : > { %v1513_v46 = vpop.permute.xlu1 %1512 }
 0x20f   : > { %1600 = vst.msk [vmem:[#allocation4 + $0x48] sm:$0xff] %vm1590_vm8, %v1513_v46  ;;  %v1519_v29 = vpop.permute.xlu0 %1518 }
 0x210   : > { %1918 = vrot.lane.b32.xlu1 %v1835_v22, %s5114_s28  ;;  %1603 = vst.msk [vmem:[#allocation4 + $0x60] sm:$0xff] %vm1590_vm8, %v1519_v29 }
 0x211   : > { %1920 = vrot.lane.b32.xlu0 %v1836_v35, %s5114_s28 }
 0x212   : > { %v1517_v49 = vpop.permute.xlu1 %1516 }
 0x213   : > { %1602 = vst.msk [vmem:[#allocation4 + $0x58] sm:$0xff] %vm1590_vm8, %v1517_v49  ;;  %v1523_v25 = vpop.permute.xlu0 %1522 }
 0x214   : > { %1729 = vrot.lane.b32.xlu1 %v1644_v34, %s5113_s22  ;;  %1605 = vst.msk [vmem:[#allocation4 + $0x70] sm:$0xff] %vm1590_vm8, %v1523_v25 }
 0x215   : > { %1731 = vrot.lane.b32.xlu0 %v1645_v38, %s5113_s22 }
 0x216   : > { %v1521_v51 = vpop.permute.xlu1 %1520 }
 0x217   : > { %1604 = vst.msk [vmem:[#allocation4 + $0x68] sm:$0xff] %vm1590_vm8, %v1521_v51  ;;  %v1527_v54 = vpop.permute.xlu0 %1526 }
 0x218   : > { %1922 = vrot.lane.b32.xlu1 %v1837_v37, %s5114_s28  ;;  %1607 = vst.msk [vmem:[#allocation4 + $0x80] sm:$0xff] %vm1590_vm8, %v1527_v54 }
 0x219   : > { %1924 = vrot.lane.b32.xlu0 %v1838_v26, %s5114_s28 }
 0x21a   : > { %v1525_v57 = vpop.permute.xlu1 %1524 }
 0x21b   : > { %1606 = vst.msk [vmem:[#allocation4 + $0x78] sm:$0xff] %vm1590_vm8, %v1525_v57  ;;  %v1531_v59 = vpop.permute.xlu0 %1530 }
 0x21c   : > { %1733 = vrot.lane.b32.xlu1 %v1646_v52, %s5113_s22  ;;  %1609 = vst.msk [vmem:[#allocation4 + $0x90] sm:$0xff] %vm1590_vm8, %v1531_v59 }
 0x21d   : > { %1735 = vrot.lane.b32.xlu0 %v1647_v55, %s5113_s22 }
 0x21e   : > { %v1529_v61 = vpop.permute.xlu1 %1528 }
 0x21f   : > { %1608 = vst.msk [vmem:[#allocation4 + $0x88] sm:$0xff] %vm1590_vm8, %v1529_v61  ;;  %v1535_v0 = vpop.permute.xlu0 %1534 }
 0x220   : > { %1926 = vrot.lane.b32.xlu1 %v1839_v58, %s5114_s28  ;;  %1611 = vst.msk [vmem:[#allocation4 + $0xa0] sm:$0xff] %vm1590_vm8, %v1535_v0 }
 0x221   : > { %1928 = vrot.lane.b32.xlu0 %v1840_v60, %s5114_s28 }
 0x222   : > { %v1533_v2 = vpop.permute.xlu1 %1532 }
 0x223   : > { %1610 = vst.msk [vmem:[#allocation4 + $0x98] sm:$0xff] %vm1590_vm8, %v1533_v2  ;;  %v1539_v4 = vpop.permute.xlu0 %1538 }
 0x224   : > { %1737 = vrot.lane.b32.xlu1 %v1648_v62, %s5113_s22  ;;  %1613 = vst.msk [vmem:[#allocation4 + $0xb0] sm:$0xff] %vm1590_vm8, %v1539_v4 }
 0x225   : > { %1739 = vrot.lane.b32.xlu0 %v1649_v1, %s5113_s22 }
 0x226   : > { %v1537_v6 = vpop.permute.xlu1 %1536 }
 0x227   : > { %1612 = vst.msk [vmem:[#allocation4 + $0xa8] sm:$0xff] %vm1590_vm8, %v1537_v6  ;;  %v1543_v8 = vpop.permute.xlu0 %1542 }
 0x228   : > { %1930 = vrot.lane.b32.xlu1 %v1841_v3, %s5114_s28  ;;  %1615 = vst.msk [vmem:[#allocation4 + $0xc0] sm:$0xff] %vm1590_vm8, %v1543_v8 }
 0x229   : > { %1932 = vrot.lane.b32.xlu0 %v1842_v5, %s5114_s28 }
 0x22a   : > { %v1541_v11 = vpop.permute.xlu1 %1540 }
 0x22b   : > { %1614 = vst.msk [vmem:[#allocation4 + $0xb8] sm:$0xff] %vm1590_vm8, %v1541_v11  ;;  %v1547_v15 = vpop.permute.xlu0 %1546 }
 0x22c   : > { %1741 = vrot.lane.b32.xlu1 %v1650_v7, %s5113_s22  ;;  %1617 = vst.msk [vmem:[#allocation4 + $0xd0] sm:$0xff] %vm1590_vm8, %v1547_v15 }
 0x22d   : > { %1550 = vrot.lane.b32.xlu0 %v1458_v9, %s5112_s13 }
 0x22e   : > { %v1545_v12 = vpop.permute.xlu1 %1544 }
 0x22f   : > { %1616 = vst.msk [vmem:[#allocation4 + $0xc8] sm:$0xff] %vm1590_vm8, %v1545_v12  ;;  %v1688_v19 = vpop.permute.xlu0 %1687 }
 0x230   : > { %1934 = vrot.lane.b32.xlu1 %v1843_v27, %s5114_s28  ;;  %1784 = vst.msk [vmem:[#allocation4] sm:$0xff] %vm1783_vm9, %v1688_v19 }
 0x231   : > { %1743 = vrot.lane.b32.xlu0 %v6014_v28, %s5113_s22 }
 0x232   : > { %v1549_v31 = vpop.permute.xlu1 %1548 }
 0x233   : > { %1618 = vst.msk [vmem:[#allocation4 + $0xd8] sm:$0xff] %vm1590_vm8, %v1549_v31  ;;  %v1881_v16 = vpop.permute.xlu0 %1880 }
 0x234   : > { %1552 = vrot.lane.b32.xlu1 %v1459_v30, %s5112_s13  ;;  %1977 = vst.msk [vmem:[#allocation4] sm:$0xff] %vm1976_vm10, %v1881_v16 }
 0x235   : > { %1936 = vrot.lane.b32.xlu0 %v6114_v48, %s5114_s28 }
 0x236   : > { %v1690_v32 = vpop.permute.xlu1 %1689 }
 0x237   : > { %1785 = vst.msk [vmem:[#allocation4 + $0x8] sm:$0xff] %vm1783_vm9, %v1690_v32  ;;  %v1692_v23 = vpop.permute.xlu0 %1691 }
 0x238   : > { %1745 = vrot.lane.b32.xlu1 %v6024_v45, %s5113_s22  ;;  %1786 = vst.msk [vmem:[#allocation4 + $0x10] sm:$0xff] %vm1783_vm9, %v1692_v23 }
 0x239   : > { %1554 = vrot.lane.b32.xlu0 %v1460_v39, %s5112_s13 }
 0x23a   : > { %v1883_v28 = vpop.permute.xlu1 %1882 }
 0x23b   : > { %1978 = vst.msk [vmem:[#allocation4 + $0x8] sm:$0xff] %vm1976_vm10, %v1883_v28  ;;  %v1885_v40 = vpop.permute.xlu0 %1884  ;;  %v2009_v48 = vld [vmem:[#allocation4] sm:$0xff] }
 0x23c   : > { %1938 = vrot.lane.b32.xlu1 %v6124_v36, %s5114_s28  ;;  %1979 = vst.msk [vmem:[#allocation4 + $0x10] sm:$0xff] %vm1976_vm10, %v1885_v40  ;;  %4959 = vmatprep.mubr.msk.f32.mxu0 %vm2046_vm11, %v2009_v48 }
 0x23e   : > { %v1694_v45 = vpop.permute.xlu1 %1693 }
 0x23f   : > { %1787 = vst.msk [vmem:[#allocation4 + $0x18] sm:$0xff] %vm1783_vm9, %v1694_v45  ;;  %v1696_v20 = vpop.permute.xlu0 %1695 }
 0x240   : > { %1556 = vrot.lane.b32.xlu1 %v1461_v41, %s5112_s13  ;;  %1788 = vst.msk [vmem:[#allocation4 + $0x20] sm:$0xff] %vm1783_vm9, %v1696_v20 }
 0x242   : > { %v1887_v42 = vpop.permute.xlu1 %1886  ;;  %v2010_v43 = vld [vmem:[#allocation4 + $0x8] sm:$0xff] }
 0x243   : > { %1980 = vst.msk [vmem:[#allocation4 + $0x18] sm:$0xff] %vm1976_vm10, %v1887_v42  ;;  %4960 = vmatmul.mubr.msk.f32.vlgmr.msra.gmra.mrb[0].mxu0 %vm2046_vm11, %v2010_v43  ;;  %v1889_v36 = vpop.permute.xlu0 %1888  ;;  %v2011_v44 = vld [vmem:[#allocation4 + $0x10] sm:$0xff] }
 0x244   : > { %1981 = vst.msk [vmem:[#allocation4 + $0x20] sm:$0xff] %vm1976_vm10, %v1889_v36  ;;  %4962 = vmatprep.mubr.msk.f32.mxu0 %vm2046_vm11, %v2011_v44  ;;  %v1654_v36 = vld [vmem:[#allocation2 + $0x1a1] sm:$0xff]  ;;  %v1653_v44 = vld [vmem:[#allocation2 + $0x199] sm:$0xff] }
 0x245   : > { %1749 = vrot.lane.b32.xlu1 %v1654_v36, %s5113_s22  ;;  %1747 = vrot.lane.b32.xlu0 %v1653_v44, %s5113_s22 }
 0x246   : > { %v1698_v47 = vpop.permute.xlu1 %1697 }
 0x247   : > { %1789 = vst.msk [vmem:[#allocation4 + $0x28] sm:$0xff] %vm1783_vm9, %v1698_v47  ;;  %v1700_v50 = vpop.permute.xlu0 %1699 }
 0x248   : > { %1790 = vst.msk [vmem:[#allocation4 + $0x30] sm:$0xff] %vm1783_vm9, %v1700_v50 }
 0x24a   : > { %v1891_v24 = vpop.permute.xlu1 %1890  ;;  %v2012_v53 = vld [vmem:[#allocation4 + $0x18] sm:$0xff] }
 0x24b   : > { %1982 = vst.msk [vmem:[#allocation4 + $0x28] sm:$0xff] %vm1976_vm10, %v1891_v24  ;;  %4963 = vmatmul.mubr.msk.f32.gmra.mrb[2].mxu0 %vm2046_vm11, %v2012_v53  ;;  %v1893_v56 = vpop.permute.xlu0 %1892  ;;  %v2013_v63 = vld [vmem:[#allocation4 + $0x20] sm:$0xff] }
 0x24c   : > { %1983 = vst.msk [vmem:[#allocation4 + $0x30] sm:$0xff] %vm1976_vm10, %v1893_v56  ;;  %4965 = vmatprep.mubr.msk.f32.mxu0 %vm2046_vm11, %v2013_v63  ;;  %v1847_v56 = vld [vmem:[#allocation2 + $0x1a2] sm:$0xff]  ;;  %v1846_v63 = vld [vmem:[#allocation2 + $0x19a] sm:$0xff] }
 0x24d   : > { %1942 = vrot.lane.b32.xlu1 %v1847_v56, %s5114_s28  ;;  %1940 = vrot.lane.b32.xlu0 %v1846_v63, %s5114_s28 }
 0x24e   : > { %v1702_v10 = vpop.permute.xlu1 %1701 }
 0x24f   : > { %1791 = vst.msk [vmem:[#allocation4 + $0x38] sm:$0xff] %vm1783_vm9, %v1702_v10  ;;  %v1704_v13 = vpop.permute.xlu0 %1703 }
 0x250   : > { %1792 = vst.msk [vmem:[#allocation4 + $0x40] sm:$0xff] %vm1783_vm9, %v1704_v13 }
 0x252   : > { %v1895_v14 = vpop.permute.xlu1 %1894  ;;  %v2014_v17 = vld [vmem:[#allocation4 + $0x28] sm:$0xff] }
 0x253   : > { %1984 = vst.msk [vmem:[#allocation4 + $0x38] sm:$0xff] %vm1976_vm10, %v1895_v14  ;;  %4966 = vmatmul.mubr.msk.f32.gmra.mrb[4].mxu0 %vm2046_vm11, %v2014_v17  ;;  %v1897_v18 = vpop.permute.xlu0 %1896  ;;  %v2015_v21 = vld [vmem:[#allocation4 + $0x30] sm:$0xff]  ;;  %v2634_v14 = vld [vmem:[#allocation3 + $0x9] sm:$0xff] }
 0x254   : > { %1985 = vst.msk [vmem:[#allocation4 + $0x40] sm:$0xff] %vm1976_vm10, %v1897_v18  ;;  %4968 = vmatprep.mubr.msk.f32.mxu0 %vm2046_vm11, %v2015_v21  ;;  %2699 = vrot.lane.b32.xlu1 %v2634_v14, %s5107_s8  ;;  %v2633_v17 = vld [vmem:[#allocation3 + $0x1] sm:$0xff] }
 0x255   : > { %2697 = vrot.lane.b32.xlu0 %v2633_v17, %s5107_s8 }
 0x256   : > { %v1706_v33 = vpop.permute.xlu1 %1705 }
 0x257   : > { %1793 = vst.msk [vmem:[#allocation4 + $0x48] sm:$0xff] %vm1783_vm9, %v1706_v33  ;;  %v1708_v22 = vpop.permute.xlu0 %1707 }
 0x258   : > { %1794 = vst.msk [vmem:[#allocation4 + $0x50] sm:$0xff] %vm1783_vm9, %v1708_v22 }
 0x25a   : > { %v1899_v46 = vpop.permute.xlu1 %1898  ;;  %v2016_v35 = vld [vmem:[#allocation4 + $0x38] sm:$0xff] }
 0x25b   : > { %1986 = vst.msk [vmem:[#allocation4 + $0x48] sm:$0xff] %vm1976_vm10, %v1899_v46  ;;  %4969 = vmatmul.mubr.msk.f32.gmra.mrb[6].mxu0 %vm2046_vm11, %v2016_v35  ;;  %v1901_v29 = vpop.permute.xlu0 %1900  ;;  %v2017_v34 = vld [vmem:[#allocation4 + $0x40] sm:$0xff] }
 0x25c   : > { %1987 = vst.msk [vmem:[#allocation4 + $0x50] sm:$0xff] %vm1976_vm10, %v1901_v29  ;;  %4971 = vmatprep.mubr.msk.f32.mxu0 %vm2046_vm11, %v2017_v34 }
 0x25e   : > { %v1710_v49 = vpop.permute.xlu1 %1709 }
 0x25f   : > { %1795 = vst.msk [vmem:[#allocation4 + $0x58] sm:$0xff] %vm1783_vm9, %v1710_v49  ;;  %v1712_v38 = vpop.permute.xlu0 %1711 }
 0x260   : > { %1796 = vst.msk [vmem:[#allocation4 + $0x60] sm:$0xff] %vm1783_vm9, %v1712_v38 }
 0x262   : > { %v1903_v25 = vpop.permute.xlu1 %1902  ;;  %v2018_v37 = vld [vmem:[#allocation4 + $0x48] sm:$0xff] }
 0x263   : > { %1988 = vst.msk [vmem:[#allocation4 + $0x58] sm:$0xff] %vm1976_vm10, %v1903_v25  ;;  %4972 = vmatmul.mubr.msk.f32.gmra.mrb[8].mxu0 %vm2046_vm11, %v2018_v37  ;;  %v1905_v51 = vpop.permute.xlu0 %1904  ;;  %v2019_v26 = vld [vmem:[#allocation4 + $0x50] sm:$0xff] }
 0x264   : > { %1989 = vst.msk [vmem:[#allocation4 + $0x60] sm:$0xff] %vm1976_vm10, %v1905_v51  ;;  %4974 = vmatprep.mubr.msk.f32.mxu0 %vm2046_vm11, %v2019_v26 }
 0x266   : > { %v1714_v54 = vpop.permute.xlu1 %1713 }
 0x267   : > { %1797 = vst.msk [vmem:[#allocation4 + $0x68] sm:$0xff] %vm1783_vm9, %v1714_v54  ;;  %v1716_v52 = vpop.permute.xlu0 %1715 }
 0x268   : > { %1798 = vst.msk [vmem:[#allocation4 + $0x70] sm:$0xff] %vm1783_vm9, %v1716_v52 }
 0x26a   : > { %v1907_v57 = vpop.permute.xlu1 %1906  ;;  %v2020_v55 = vld [vmem:[#allocation4 + $0x58] sm:$0xff] }
 0x26b   : > { %1990 = vst.msk [vmem:[#allocation4 + $0x68] sm:$0xff] %vm1976_vm10, %v1907_v57  ;;  %4975 = vmatmul.mubr.msk.f32.gmra.mrb[10].mxu0 %vm2046_vm11, %v2020_v55  ;;  %v1909_v59 = vpop.permute.xlu0 %1908  ;;  %v2021_v58 = vld [vmem:[#allocation4 + $0x60] sm:$0xff]  ;;  %v2570_v55 = vld [vmem:[#allocation3 + $0x8] sm:$0xff] }
 0x26c   : > { %1991 = vst.msk [vmem:[#allocation4 + $0x70] sm:$0xff] %vm1976_vm10, %v1909_v59  ;;  %4977 = vmatprep.mubr.msk.f32.mxu0 %vm2046_vm11, %v2021_v58  ;;  %v2569_v59 = vld [vmem:[#allocation3] sm:$0xff] }
 0x26d   : > { %2602 = vst.msk [vmem:[#allocation4 + $0x8] sm:$0xff] %vm279_vm0, %v2570_v55  ;;  %2601 = vst.msk [vmem:[#allocation4] sm:$0xff] %vm279_vm0, %v2569_v59 }
 0x26e   : > { %v1718_v61 = vpop.permute.xlu1 %1717 }
 0x26f   : > { %1799 = vst.msk [vmem:[#allocation4 + $0x78] sm:$0xff] %vm1783_vm9, %v1718_v61  ;;  %v1720_v60 = vpop.permute.xlu0 %1719  ;;  %v6465_v61 = vld [vmem:[%s7589_s2] ss:$0 sm:$0xff] }
 0x270   : > { %1800 = vst.msk [vmem:[#allocation4 + $0x80] sm:$0xff] %vm1783_vm9, %v1720_v60 }
 0x272   : > { %v1911_v0 = vpop.permute.xlu1 %1910  ;;  %v2022_v62 = vld [vmem:[#allocation4 + $0x68] sm:$0xff] }
 0x273   : > { %1992 = vst.msk [vmem:[#allocation4 + $0x78] sm:$0xff] %vm1976_vm10, %v1911_v0  ;;  %4978 = vmatmul.mubr.msk.f32.gmra.mrb[12].mxu0 %vm2046_vm11, %v2022_v62  ;;  %v1913_v2 = vpop.permute.xlu0 %1912  ;;  %v2023_v1 = vld [vmem:[#allocation4 + $0x70] sm:$0xff]  ;;  %v6472_v62 = vld [vmem:[%s7590_s3] ss:$0 sm:$0xff] }
 0x274   : > { %1993 = vst.msk [vmem:[#allocation4 + $0x80] sm:$0xff] %vm1976_vm10, %v1913_v2  ;;  %4980 = vmatprep.mubr.msk.f32.mxu0 %vm2046_vm11, %v2023_v1 }
 0x276   : > { %v1722_v4 = vpop.permute.xlu1 %1721 }
 0x277   : > { %1801 = vst.msk [vmem:[#allocation4 + $0x88] sm:$0xff] %vm1783_vm9, %v1722_v4  ;;  %v1724_v3 = vpop.permute.xlu0 %1723 }
 0x278   : > { %1802 = vst.msk [vmem:[#allocation4 + $0x90] sm:$0xff] %vm1783_vm9, %v1724_v3 }
 0x27a   : > { %v1915_v6 = vpop.permute.xlu1 %1914  ;;  %v2024_v5 = vld [vmem:[#allocation4 + $0x78] sm:$0xff] }
 0x27b   : > { %1994 = vst.msk [vmem:[#allocation4 + $0x88] sm:$0xff] %vm1976_vm10, %v1915_v6  ;;  %4981 = vmatmul.mubr.msk.f32.gmra.mrb[14].mxu0 %vm2046_vm11, %v2024_v5  ;;  %v1917_v8 = vpop.permute.xlu0 %1916  ;;  %v2025_v7 = vld [vmem:[#allocation4 + $0x80] sm:$0xff] }
 0x27c   : > { %1995 = vst.msk [vmem:[#allocation4 + $0x90] sm:$0xff] %vm1976_vm10, %v1917_v8  ;;  %4983 = vmatprep.mubr.msk.f32.mxu0 %vm2046_vm11, %v2025_v7 }
 0x27e   : > { %v1726_v11 = vpop.permute.xlu1 %1725 }
 0x27f   : > { %1803 = vst.msk [vmem:[#allocation4 + $0x98] sm:$0xff] %vm1783_vm9, %v1726_v11  ;;  %v1728_v9 = vpop.permute.xlu0 %1727 }
 0x280   : > { %1804 = vst.msk [vmem:[#allocation4 + $0xa0] sm:$0xff] %vm1783_vm9, %v1728_v9 }
 0x282   : > { %v1919_v15 = vpop.permute.xlu1 %1918  ;;  %v2026_v27 = vld [vmem:[#allocation4 + $0x88] sm:$0xff] }
 0x283   : > { %1996 = vst.msk [vmem:[#allocation4 + $0x98] sm:$0xff] %vm1976_vm10, %v1919_v15  ;;  %4984 = vmatmul.mubr.msk.f32.gmra.mrb[16].mxu0 %vm2046_vm11, %v2026_v27  ;;  %v1921_v12 = vpop.permute.xlu0 %1920  ;;  %v2027_v19 = vld [vmem:[#allocation4 + $0x90] sm:$0xff] }
 0x284   : > { %1997 = vst.msk [vmem:[#allocation4 + $0xa0] sm:$0xff] %vm1976_vm10, %v1921_v12  ;;  %4986 = vmatprep.mubr.msk.f32.mxu0 %vm2046_vm11, %v2027_v19 }
 0x286   : > { %v1730_v30 = vpop.permute.xlu1 %1729 }
 0x287   : > { %1805 = vst.msk [vmem:[#allocation4 + $0xa8] sm:$0xff] %vm1783_vm9, %v1730_v30  ;;  %v1732_v31 = vpop.permute.xlu0 %1731 }
 0x288   : > { %1806 = vst.msk [vmem:[#allocation4 + $0xb0] sm:$0xff] %vm1783_vm9, %v1732_v31 }
 0x28a   : > { %v1923_v16 = vpop.permute.xlu1 %1922  ;;  %v2028_v32 = vld [vmem:[#allocation4 + $0x98] sm:$0xff] }
 0x28b   : > { %1998 = vst.msk [vmem:[#allocation4 + $0xa8] sm:$0xff] %vm1976_vm10, %v1923_v16  ;;  %4987 = vmatmul.mubr.msk.f32.gmra.mrb[18].mxu0 %vm2046_vm11, %v2028_v32  ;;  %v1925_v39 = vpop.permute.xlu0 %1924  ;;  %v2029_v23 = vld [vmem:[#allocation4 + $0xa0] sm:$0xff] }
 0x28c   : > { %1999 = vst.msk [vmem:[#allocation4 + $0xb0] sm:$0xff] %vm1976_vm10, %v1925_v39  ;;  %4989 = vmatprep.mubr.msk.f32.mxu0 %vm2046_vm11, %v2029_v23 }
 0x28e   : > { %v1734_v28 = vpop.permute.xlu1 %1733 }
 0x28f   : > { %1807 = vst.msk [vmem:[#allocation4 + $0xb8] sm:$0xff] %vm1783_vm9, %v1734_v28  ;;  %v1736_v40 = vpop.permute.xlu0 %1735 }
 0x290   : > { %1808 = vst.msk [vmem:[#allocation4 + $0xc0] sm:$0xff] %vm1783_vm9, %v1736_v40 }
 0x292   : > { %v1927_v48 = vpop.permute.xlu1 %1926  ;;  %v2030_v41 = vld [vmem:[#allocation4 + $0xa8] sm:$0xff] }
 0x293   : > { %2000 = vst.msk [vmem:[#allocation4 + $0xb8] sm:$0xff] %vm1976_vm10, %v1927_v48  ;;  %4990 = vmatmul.mubr.msk.f32.gmra.mrb[20].mxu0 %vm2046_vm11, %v2030_v41  ;;  %v1929_v45 = vpop.permute.xlu0 %1928  ;;  %v2031_v20 = vld [vmem:[#allocation4 + $0xb0] sm:$0xff] }
 0x294   : > { %2001 = vst.msk [vmem:[#allocation4 + $0xc0] sm:$0xff] %vm1976_vm10, %v1929_v45  ;;  %4992 = vmatprep.mubr.msk.f32.mxu0 %vm2046_vm11, %v2031_v20 }
 0x296   : > { %v1738_v42 = vpop.permute.xlu1 %1737 }
 0x297   : > { %1809 = vst.msk [vmem:[#allocation4 + $0xc8] sm:$0xff] %vm1783_vm9, %v1738_v42  ;;  %v1740_v43 = vpop.permute.xlu0 %1739 }
 0x298   : > { %1810 = vst.msk [vmem:[#allocation4 + $0xd0] sm:$0xff] %vm1783_vm9, %v1740_v43 }
 0x29a   : > { %v1931_v47 = vpop.permute.xlu1 %1930  ;;  %v2032_v50 = vld [vmem:[#allocation4 + $0xb8] sm:$0xff] }
 0x29b   : > { %2002 = vst.msk [vmem:[#allocation4 + $0xc8] sm:$0xff] %vm1976_vm10, %v1931_v47  ;;  %4993 = vmatmul.mubr.msk.f32.gmra.mrb[22].mxu0 %vm2046_vm11, %v2032_v50  ;;  %v1933_v24 = vpop.permute.xlu0 %1932  ;;  %v2033_v53 = vld [vmem:[#allocation4 + $0xc0] sm:$0xff] }
 0x29c   : > { %2003 = vst.msk [vmem:[#allocation4 + $0xd0] sm:$0xff] %vm1976_vm10, %v1933_v24  ;;  %4995 = vmatprep.mubr.msk.f32.mxu0 %vm2046_vm11, %v2033_v53 }
 0x29e   : > { %v1742_v10 = vpop.permute.xlu1 %1741 }
 0x29f   : > { %1811 = vst.msk [vmem:[#allocation4 + $0xd8] sm:$0xff] %vm1783_vm9, %v1742_v10  ;;  %v1551_v13 = vpop.permute.xlu0 %1550 }
 0x2a0   : > { %1619 = vst.msk [vmem:[#allocation4 + $0xe0] sm:$0xff] %vm1590_vm8, %v1551_v13 }
 0x2a2   : > { %v1935_v18 = vpop.permute.xlu1 %1934  ;;  %v2034_v21 = vld [vmem:[#allocation4 + $0xc8] sm:$0xff] }
 0x2a3   : > { %2004 = vst.msk [vmem:[#allocation4 + $0xd8] sm:$0xff] %vm1976_vm10, %v1935_v18  ;;  %4996 = vmatmul.mubr.msk.f32.gmra.mrb[24].mxu0 %vm2046_vm11, %v2034_v21  ;;  %v1744_v33 = vpop.permute.xlu0 %1743  ;;  %v2035_v22 = vld [vmem:[#allocation4 + $0xd0] sm:$0xff] }
 0x2a4   : > { %1812 = vst.msk [vmem:[#allocation4 + $0xe0] sm:$0xff] %vm1783_vm9, %v1744_v33  ;;  %4998 = vmatprep.mubr.msk.f32.mxu0 %vm2046_vm11, %v2035_v22 }
 0x2a6   : > { %v1553_v46 = vpop.permute.xlu1 %1552 }
 0x2a7   : > { %1620 = vst.msk [vmem:[#allocation4 + $0xe8] sm:$0xff] %vm1590_vm8, %v1553_v46  ;;  %v1937_v35 = vpop.permute.xlu0 %1936 }
 0x2a8   : > { %2005 = vst.msk [vmem:[#allocation4 + $0xe0] sm:$0xff] %vm1976_vm10, %v1937_v35 }
 0x2aa   : > { %v1746_v29 = vpop.permute.xlu1 %1745  ;;  %v2036_v34 = vld [vmem:[#allocation4 + $0xd8] sm:$0xff] }
 0x2ab   : > { %1813 = vst.msk [vmem:[#allocation4 + $0xe8] sm:$0xff] %vm1783_vm9, %v1746_v29  ;;  %4999 = vmatmul.mubr.msk.f32.gmra.mrb[26].mxu0 %vm2046_vm11, %v2036_v34  ;;  %v1555_v51 = vpop.permute.xlu0 %1554 }
 0x2ac   : > { %1621 = vst.msk [vmem:[#allocation4 + $0xf0] sm:$0xff] %vm1590_vm8, %v1555_v51 }
 0x2ae   : > { %v1939_v49 = vpop.permute.xlu1 %1938 }
 0x2af   : > { %2006 = vst.msk [vmem:[#allocation4 + $0xe8] sm:$0xff] %vm1976_vm10, %v1939_v49  ;;  %v2037_v38 = vld [vmem:[#allocation4 + $0xe0] sm:$0xff] }
 0x2b0   : > { %5001 = vmatprep.mubr.msk.f32.mxu0 %vm2046_vm11, %v2037_v38 }
 0x2b2   : > { %v1557_v37 = vpop.permute.xlu1 %1556 }
 0x2b3   : > { %1622 = vst.msk [vmem:[#allocation4 + $0xf8] sm:$0xff] %vm1590_vm8, %v1557_v37 }
 0x2b6   : > { %v2038_v25 = vld [vmem:[#allocation4 + $0xe8] sm:$0xff] }
 0x2b7   : > { %5002 = vmatmul.mubr.msk.f32.gmra.mrb[28].mxu0 %vm2046_vm11, %v2038_v25  ;;  %v1750_v26 = vpop.permute.xlu1 %1749  ;;  %v1748_v54 = vpop.permute.xlu0 %1747 }
 0x2b8   : > { %1815 = vst.msk [vmem:[#allocation4 + $0xf8] sm:$0xff] %vm1783_vm9, %v1750_v26  ;;  %1814 = vst.msk [vmem:[#allocation4 + $0xf0] sm:$0xff] %vm1783_vm9, %v1748_v54 }
 0x2bf   : > { %v1943_v52 = vpop.permute.xlu1 %1942  ;;  %v1941_v57 = vpop.permute.xlu0 %1940 }
 0x2c0   : > { %2008 = vst.msk [vmem:[#allocation4 + $0xf8] sm:$0xff] %vm1976_vm10, %v1943_v52  ;;  %2007 = vst.msk [vmem:[#allocation4 + $0xf0] sm:$0xff] %vm1976_vm10, %v1941_v57 }
 0x2c6   : > { %v2700_v58 = vpop.permute.xlu1 %2699 }
 0x2c7   : > { %2794 = vst.msk [vmem:[#allocation4 + $0x8] sm:$0xff] %vm624_vm2, %v2700_v58  ;;  %v2698_v60 = vpop.permute.xlu0 %2697  ;;  %v2039_v5 = vld [vmem:[#allocation4 + $0xf0] sm:$0xff]  ;;  %v2040_v7 = vld [vmem:[#allocation4 + $0xf8] sm:$0xff] }
 0x2c8   : > { %2793 = vst.msk [vmem:[#allocation4] sm:$0xff] %vm624_vm2, %v2698_v60  ;;  %5004 = vmatprep.mubr.msk.f32.mxu0 %vm2046_vm11, %v2039_v5 }
 0x2c9   : > { %5005 = vmatmul.mubr.msk.f32.gmra.mrb[30].mxu0 %vm2046_vm11, %v2040_v7 }
 0x316   : > { %v4961_v0 = vpop.f32.mrb[0].mxu0 }
 0x317   : > { %v2380_v2 = vmul.f32 %v4961_v0, %v6465_v61  ;;  %v2213_v1 = vpop.f32.mrb[1].mxu0 }
 0x318   : > { %v2379_v4 = vmul.f32 %v6465_v61, %v2213_v1 }
 0x319   : > { %v2419_v3 = vadd.f32 %v6472_v62, %v2380_v2 }
 0x31a   : > { %v2418_v6 = vadd.f32 %v6472_v62, %v2379_v4 }
 0x31b   : > { %v2451_v8 = vmax.f32 %v2419_v3, 0.0 }
 0x31c   : > { %v2450_v11 = vmax.f32 %v2418_v6, 0.0 }
 0x31d   : > { %2538 = vst.msk [vmem:[#allocation3 + $0x21] sm:$0xff] %vm279_vm0, %v2451_v8 }
 0x31e   : > { %2537 = vst.msk [vmem:[#allocation3 + $0x19] sm:$0xff] %vm279_vm0, %v2450_v11  ;;  %v4964_v9 = vpop.f32.mrb[2].mxu0 }
 0x31f   : > { %v2382_v15 = vmul.f32 %v4964_v9, %v6465_v61  ;;  %v2223_v27 = vpop.f32.mrb[3].mxu0 }
 0x320   : > { %v2381_v12 = vmul.f32 %v6465_v61, %v2223_v27 }
 0x321   : > { %v2421_v19 = vadd.f32 %v6472_v62, %v2382_v15 }
 0x322   : > { %v2420_v30 = vadd.f32 %v6472_v62, %v2381_v12 }
 0x323   : > { %v2453_v31 = vmax.f32 %v2421_v19, 0.0 }
 0x324   : > { %v2452_v16 = vmax.f32 %v2420_v30, 0.0  ;;  %v6486_v32 = vld [vmem:[#allocation3 + $0x21] sm:$0xff] }
 0x325   : > { %2540 = vst.msk [vmem:[#allocation3 + $0x39] sm:$0xff] %vm279_vm0, %v2453_v31  ;;  %2703 = vrot.lane.b32.xlu1 %v6486_v32, %s5107_s8  ;;  %v6491_v39 = vld [vmem:[#allocation3 + $0x19] sm:$0xff] }
 0x326   : > { %v6493_v23 = vld [vmem:[#allocation3 + $0x20] sm:$0xff]  ;;  %v6495_v28 = vld [vmem:[#allocation3 + $0x18] sm:$0xff]  ;;  %2539 = vst.msk [vmem:[#allocation3 + $0x31] sm:$0xff] %vm279_vm0, %v2452_v16  ;;  %2701 = vrot.lane.b32.xlu0 %v6491_v39, %s5107_s8  ;;  %v4967_v40 = vpop.f32.mrb[4].mxu0 }
 0x327   : > { %2604 = vst.msk [vmem:[#allocation4 + $0x18] sm:$0xff] %vm279_vm0, %v6493_v23  ;;  %2603 = vst.msk [vmem:[#allocation4 + $0x10] sm:$0xff] %vm279_vm0, %v6495_v28  ;;  %v2384_v48 = vmul.f32 %v4967_v40, %v6465_v61  ;;  %v2233_v41 = vpop.f32.mrb[5].mxu0 }
 0x328   : > { %v2383_v45 = vmul.f32 %v6465_v61, %v2233_v41 }
 0x329   : > { %v2423_v20 = vadd.f32 %v6472_v62, %v2384_v48 }
 0x32a   : > { %v2422_v42 = vadd.f32 %v6472_v62, %v2383_v45 }
 0x32b   : > { %v2455_v43 = vmax.f32 %v2423_v20, 0.0 }
 0x32c   : > { %v2454_v36 = vmax.f32 %v2422_v42, 0.0  ;;  %v6508_v44 = vld [vmem:[#allocation3 + $0x39] sm:$0xff] }
 0x32d   : > { %2542 = vst.msk [vmem:[#allocation3 + $0x51] sm:$0xff] %vm279_vm0, %v2455_v43  ;;  %2707 = vrot.lane.b32.xlu1 %v6508_v44, %s5107_s8  ;;  %v6513_v47 = vld [vmem:[#allocation3 + $0x31] sm:$0xff] }
 0x32e   : > { %v6515_v50 = vld [vmem:[#allocation3 + $0x38] sm:$0xff]  ;;  %v6517_v24 = vld [vmem:[#allocation3 + $0x30] sm:$0xff]  ;;  %2541 = vst.msk [vmem:[#allocation3 + $0x49] sm:$0xff] %vm279_vm0, %v2454_v36  ;;  %2705 = vrot.lane.b32.xlu0 %v6513_v47, %s5107_s8  ;;  %v4970_v53 = vpop.f32.mrb[6].mxu0 }
 0x32f   : > { %2606 = vst.msk [vmem:[#allocation4 + $0x28] sm:$0xff] %vm279_vm0, %v6515_v50  ;;  %2605 = vst.msk [vmem:[#allocation4 + $0x20] sm:$0xff] %vm279_vm0, %v6517_v24  ;;  %v2386_v56 = vmul.f32 %v4970_v53, %v6465_v61  ;;  %v2243_v63 = vpop.f32.mrb[7].mxu0 }
 0x330   : > { %v2385_v10 = vmul.f32 %v6465_v61, %v2243_v63 }
 0x331   : > { %v2425_v13 = vadd.f32 %v6472_v62, %v2386_v56 }
 0x332   : > { %v2424_v14 = vadd.f32 %v6472_v62, %v2385_v10 }
 0x333   : > { %v2457_v17 = vmax.f32 %v2425_v13, 0.0 }
 0x334   : > { %v2456_v18 = vmax.f32 %v2424_v14, 0.0  ;;  %v6530_v21 = vld [vmem:[#allocation3 + $0x51] sm:$0xff] }
 0x335   : > { %2544 = vst.msk [vmem:[#allocation3 + $0x69] sm:$0xff] %vm279_vm0, %v2457_v17  ;;  %2711 = vrot.lane.b32.xlu1 %v6530_v21, %s5107_s8  ;;  %v6535_v33 = vld [vmem:[#allocation3 + $0x49] sm:$0xff] }
 0x336   : > { %v6537_v22 = vld [vmem:[#allocation3 + $0x50] sm:$0xff]  ;;  %v6539_v46 = vld [vmem:[#allocation3 + $0x48] sm:$0xff]  ;;  %2543 = vst.msk [vmem:[#allocation3 + $0x61] sm:$0xff] %vm279_vm0, %v2456_v18  ;;  %2709 = vrot.lane.b32.xlu0 %v6535_v33, %s5107_s8  ;;  %v4973_v35 = vpop.f32.mrb[8].mxu0 }
 0x337   : > { %2608 = vst.msk [vmem:[#allocation4 + $0x38] sm:$0xff] %vm279_vm0, %v6537_v22  ;;  %2607 = vst.msk [vmem:[#allocation4 + $0x30] sm:$0xff] %vm279_vm0, %v6539_v46  ;;  %v2388_v29 = vmul.f32 %v4973_v35, %v6465_v61  ;;  %v2253_v34 = vpop.f32.mrb[9].mxu0 }
 0x338   : > { %v2387_v49 = vmul.f32 %v6465_v61, %v2253_v34 }
 0x339   : > { %v2427_v38 = vadd.f32 %v6472_v62, %v2388_v29 }
 0x33a   : > { %v2426_v25 = vadd.f32 %v6472_v62, %v2387_v49 }
 0x33b   : > { %v2459_v37 = vmax.f32 %v2427_v38, 0.0 }
 0x33c   : > { %v2458_v51 = vmax.f32 %v2426_v25, 0.0  ;;  %v6552_v26 = vld [vmem:[#allocation3 + $0x69] sm:$0xff] }
 0x33d   : > { %2546 = vst.msk [vmem:[#allocation3 + $0x81] sm:$0xff] %vm279_vm0, %v2459_v37  ;;  %2715 = vrot.lane.b32.xlu1 %v6552_v26, %s5107_s8  ;;  %v6557_v54 = vld [vmem:[#allocation3 + $0x61] sm:$0xff] }
 0x33e   : > { %v6559_v52 = vld [vmem:[#allocation3 + $0x68] sm:$0xff]  ;;  %2545 = vst.msk [vmem:[#allocation3 + $0x79] sm:$0xff] %vm279_vm0, %v2458_v51  ;;  %2713 = vrot.lane.b32.xlu0 %v6557_v54, %s5107_s8  ;;  %v4976_v57 = vpop.f32.mrb[10].mxu0  ;;  %v6566_v55 = vld [vmem:[#allocation3 + $0x60] sm:$0xff] }
 0x33f   : > { %2610 = vst.msk [vmem:[#allocation4 + $0x48] sm:$0xff] %vm279_vm0, %v6559_v52  ;;  %v2390_v59 = vmul.f32 %v4976_v57, %v6465_v61  ;;  %v2263_v58 = vpop.f32.mrb[11].mxu0  ;;  %2609 = vst.msk [vmem:[#allocation4 + $0x40] sm:$0xff] %vm279_vm0, %v6566_v55 }
 0x340   : > { %v2389_v60 = vmul.f32 %v6465_v61, %v2263_v58 }
 0x341   : > { %v2429_v0 = vadd.f32 %v6472_v62, %v2390_v59 }
 0x342   : > { %v2428_v2 = vadd.f32 %v6472_v62, %v2389_v60 }
 0x343   : > { %v2461_v1 = vmax.f32 %v2429_v0, 0.0 }
 0x344   : > { %v2460_v4 = vmax.f32 %v2428_v2, 0.0  ;;  %v6574_v3 = vld [vmem:[#allocation3 + $0x81] sm:$0xff] }
 0x345   : > { %2548 = vst.msk [vmem:[#allocation3 + $0x99] sm:$0xff] %vm279_vm0, %v2461_v1  ;;  %2719 = vrot.lane.b32.xlu1 %v6574_v3, %s5107_s8  ;;  %v6579_v6 = vld [vmem:[#allocation3 + $0x79] sm:$0xff] }
 0x346   : > { %v6581_v5 = vld [vmem:[#allocation3 + $0x80] sm:$0xff]  ;;  %2547 = vst.msk [vmem:[#allocation3 + $0x91] sm:$0xff] %vm279_vm0, %v2460_v4  ;;  %2717 = vrot.lane.b32.xlu0 %v6579_v6, %s5107_s8  ;;  %v4979_v8 = vpop.f32.mrb[12].mxu0  ;;  %v6588_v7 = vld [vmem:[#allocation3 + $0x78] sm:$0xff] }
 0x347   : > { %2612 = vst.msk [vmem:[#allocation4 + $0x58] sm:$0xff] %vm279_vm0, %v6581_v5  ;;  %v2392_v11 = vmul.f32 %v4979_v8, %v6465_v61  ;;  %v2273_v9 = vpop.f32.mrb[13].mxu0  ;;  %2611 = vst.msk [vmem:[#allocation4 + $0x50] sm:$0xff] %vm279_vm0, %v6588_v7 }
 0x348   : > { %v2391_v15 = vmul.f32 %v6465_v61, %v2273_v9 }
 0x349   : > { %v2431_v27 = vadd.f32 %v6472_v62, %v2392_v11 }
 0x34a   : > { %v2430_v12 = vadd.f32 %v6472_v62, %v2391_v15 }
 0x34b   : > { %v2463_v19 = vmax.f32 %v2431_v27, 0.0 }
 0x34c   : > { %v2462_v30 = vmax.f32 %v2430_v12, 0.0  ;;  %v2646_v31 = vld [vmem:[#allocation3 + $0x99] sm:$0xff] }
 0x34d   : > { %2550 = vst.msk [vmem:[#allocation3 + $0xb1] sm:$0xff] %vm279_vm0, %v2463_v19  ;;  %2723 = vrot.lane.b32.xlu1 %v2646_v31, %s5107_s8  ;;  %v2645_v16 = vld [vmem:[#allocation3 + $0x91] sm:$0xff] }
 0x34e   : > { %v6598_v40 = vld [vmem:[#allocation3 + $0x98] sm:$0xff]  ;;  %2549 = vst.msk [vmem:[#allocation3 + $0xa9] sm:$0xff] %vm279_vm0, %v2462_v30  ;;  %2721 = vrot.lane.b32.xlu0 %v2645_v16, %s5107_s8  ;;  %v4982_v48 = vpop.f32.mrb[14].mxu0  ;;  %v6604_v41 = vld [vmem:[#allocation3 + $0x90] sm:$0xff] }
 0x34f   : > { %2614 = vst.msk [vmem:[#allocation4 + $0x68] sm:$0xff] %vm279_vm0, %v6598_v40  ;;  %v2394_v45 = vmul.f32 %v4982_v48, %v6465_v61  ;;  %v2283_v20 = vpop.f32.mrb[15].mxu0  ;;  %2613 = vst.msk [vmem:[#allocation4 + $0x60] sm:$0xff] %vm279_vm0, %v6604_v41 }
 0x350   : > { %v2393_v42 = vmul.f32 %v6465_v61, %v2283_v20 }
 0x351   : > { %v2433_v43 = vadd.f32 %v6472_v62, %v2394_v45 }
 0x352   : > { %v2432_v36 = vadd.f32 %v6472_v62, %v2393_v42 }
 0x353   : > { %v2465_v53 = vmax.f32 %v2433_v43, 0.0 }
 0x354   : > { %v2464_v56 = vmax.f32 %v2432_v36, 0.0  ;;  %v2648_v63 = vld [vmem:[#allocation3 + $0xb1] sm:$0xff] }
 0x355   : > { %2552 = vst.msk [vmem:[#allocation3 + $0xc9] sm:$0xff] %vm279_vm0, %v2465_v53  ;;  %2727 = vrot.lane.b32.xlu1 %v2648_v63, %s5107_s8  ;;  %v2647_v10 = vld [vmem:[#allocation3 + $0xa9] sm:$0xff] }
 0x356   : > { %v6614_v13 = vld [vmem:[#allocation3 + $0xb0] sm:$0xff]  ;;  %2551 = vst.msk [vmem:[#allocation3 + $0xc1] sm:$0xff] %vm279_vm0, %v2464_v56  ;;  %2725 = vrot.lane.b32.xlu0 %v2647_v10, %s5107_s8  ;;  %v4985_v14 = vpop.f32.mrb[16].mxu0  ;;  %v6620_v17 = vld [vmem:[#allocation3 + $0xa8] sm:$0xff] }
 0x357   : > { %2616 = vst.msk [vmem:[#allocation4 + $0x78] sm:$0xff] %vm279_vm0, %v6614_v13  ;;  %v2396_v18 = vmul.f32 %v4985_v14, %v6465_v61  ;;  %v2293_v35 = vpop.f32.mrb[17].mxu0  ;;  %2615 = vst.msk [vmem:[#allocation4 + $0x70] sm:$0xff] %vm279_vm0, %v6620_v17 }
 0x358   : > { %v2395_v29 = vmul.f32 %v6465_v61, %v2293_v35 }
 0x359   : > { %v2435_v34 = vadd.f32 %v6472_v62, %v2396_v18 }
 0x35a   : > { %v2434_v49 = vadd.f32 %v6472_v62, %v2395_v29 }
 0x35b   : > { %v2467_v38 = vmax.f32 %v2435_v34, 0.0 }
 0x35c   : > { %v2466_v25 = vmax.f32 %v2434_v49, 0.0  ;;  %v2650_v37 = vld [vmem:[#allocation3 + $0xc9] sm:$0xff] }
 0x35d   : > { %2554 = vst.msk [vmem:[#allocation3 + $0xe1] sm:$0xff] %vm279_vm0, %v2467_v38  ;;  %2731 = vrot.lane.b32.xlu1 %v2650_v37, %s5107_s8  ;;  %v2649_v51 = vld [vmem:[#allocation3 + $0xc1] sm:$0xff] }
 0x35e   : > { %v6630_v57 = vld [vmem:[#allocation3 + $0xc8] sm:$0xff]  ;;  %2553 = vst.msk [vmem:[#allocation3 + $0xd9] sm:$0xff] %vm279_vm0, %v2466_v25  ;;  %2729 = vrot.lane.b32.xlu0 %v2649_v51, %s5107_s8  ;;  %v4988_v59 = vpop.f32.mrb[18].mxu0  ;;  %v6636_v58 = vld [vmem:[#allocation3 + $0xc0] sm:$0xff] }
 0x35f   : > { %2618 = vst.msk [vmem:[#allocation4 + $0x88] sm:$0xff] %vm279_vm0, %v6630_v57  ;;  %v2398_v60 = vmul.f32 %v4988_v59, %v6465_v61  ;;  %v2303_v0 = vpop.f32.mrb[19].mxu0  ;;  %2617 = vst.msk [vmem:[#allocation4 + $0x80] sm:$0xff] %vm279_vm0, %v6636_v58 }
 0x360   : > { %v2397_v2 = vmul.f32 %v6465_v61, %v2303_v0 }
 0x361   : > { %v2437_v1 = vadd.f32 %v6472_v62, %v2398_v60 }
 0x362   : > { %v2436_v4 = vadd.f32 %v6472_v62, %v2397_v2 }
 0x363   : > { %v2469_v8 = vmax.f32 %v2437_v1, 0.0 }
 0x364   : > { %v2468_v11 = vmax.f32 %v2436_v4, 0.0  ;;  %v2652_v9 = vld [vmem:[#allocation3 + $0xe1] sm:$0xff] }
 0x365   : > { %2556 = vst.msk [vmem:[#allocation3 + $0xf9] sm:$0xff] %vm279_vm0, %v2469_v8  ;;  %2735 = vrot.lane.b32.xlu1 %v2652_v9, %s5107_s8  ;;  %v2651_v15 = vld [vmem:[#allocation3 + $0xd9] sm:$0xff] }
 0x366   : > { %v6646_v27 = vld [vmem:[#allocation3 + $0xe0] sm:$0xff]  ;;  %2555 = vst.msk [vmem:[#allocation3 + $0xf1] sm:$0xff] %vm279_vm0, %v2468_v11  ;;  %2733 = vrot.lane.b32.xlu0 %v2651_v15, %s5107_s8  ;;  %v4991_v12 = vpop.f32.mrb[20].mxu0  ;;  %v6652_v19 = vld [vmem:[#allocation3 + $0xd8] sm:$0xff] }
 0x367   : > { %2620 = vst.msk [vmem:[#allocation4 + $0x98] sm:$0xff] %vm279_vm0, %v6646_v27  ;;  %v2400_v30 = vmul.f32 %v4991_v12, %v6465_v61  ;;  %v2313_v31 = vpop.f32.mrb[21].mxu0  ;;  %2619 = vst.msk [vmem:[#allocation4 + $0x90] sm:$0xff] %vm279_vm0, %v6652_v19 }
 0x368   : > { %v2399_v16 = vmul.f32 %v6465_v61, %v2313_v31 }
 0x369   : > { %v2439_v48 = vadd.f32 %v6472_v62, %v2400_v30 }
 0x36a   : > { %v2438_v45 = vadd.f32 %v6472_v62, %v2399_v16 }
 0x36b   : > { %v2471_v20 = vmax.f32 %v2439_v48, 0.0 }
 0x36c   : > { %v2470_v42 = vmax.f32 %v2438_v45, 0.0  ;;  %v2654_v43 = vld [vmem:[#allocation3 + $0xf9] sm:$0xff] }
 0x36d   : > { %2558 = vst.msk [vmem:[#allocation3 + $0x111] sm:$0xff] %vm279_vm0, %v2471_v20  ;;  %2739 = vrot.lane.b32.xlu1 %v2654_v43, %s5107_s8  ;;  %v2653_v36 = vld [vmem:[#allocation3 + $0xf1] sm:$0xff] }
 0x36e   : > { %v6662_v53 = vld [vmem:[#allocation3 + $0xf8] sm:$0xff]  ;;  %2557 = vst.msk [vmem:[#allocation3 + $0x109] sm:$0xff] %vm279_vm0, %v2470_v42  ;;  %2737 = vrot.lane.b32.xlu0 %v2653_v36, %s5107_s8  ;;  %v4994_v56 = vpop.f32.mrb[22].mxu0  ;;  %v6668_v63 = vld [vmem:[#allocation3 + $0xf0] sm:$0xff] }
 0x36f   : > { %2622 = vst.msk [vmem:[#allocation4 + $0xa8] sm:$0xff] %vm279_vm0, %v6662_v53  ;;  %v2402_v10 = vmul.f32 %v4994_v56, %v6465_v61  ;;  %v2323_v14 = vpop.f32.mrb[23].mxu0  ;;  %2621 = vst.msk [vmem:[#allocation4 + $0xa0] sm:$0xff] %vm279_vm0, %v6668_v63 }
 0x370   : > { %v2401_v18 = vmul.f32 %v6465_v61, %v2323_v14 }
 0x371   : > { %v2441_v35 = vadd.f32 %v6472_v62, %v2402_v10 }
 0x372   : > { %v2440_v29 = vadd.f32 %v6472_v62, %v2401_v18 }
 0x373   : > { %v2473_v34 = vmax.f32 %v2441_v35, 0.0 }
 0x374   : > { %v2472_v49 = vmax.f32 %v2440_v29, 0.0  ;;  %v2656_v38 = vld [vmem:[#allocation3 + $0x111] sm:$0xff] }
 0x375   : > { %2560 = vst.msk [vmem:[#allocation3 + $0x129] sm:$0xff] %vm279_vm0, %v2473_v34  ;;  %2743 = vrot.lane.b32.xlu1 %v2656_v38, %s5107_s8  ;;  %v2655_v25 = vld [vmem:[#allocation3 + $0x109] sm:$0xff] }
 0x376   : > { %v6678_v37 = vld [vmem:[#allocation3 + $0x110] sm:$0xff]  ;;  %2559 = vst.msk [vmem:[#allocation3 + $0x121] sm:$0xff] %vm279_vm0, %v2472_v49  ;;  %2741 = vrot.lane.b32.xlu0 %v2655_v25, %s5107_s8  ;;  %v4997_v51 = vpop.f32.mrb[24].mxu0  ;;  %v6684_v59 = vld [vmem:[#allocation3 + $0x108] sm:$0xff] }
 0x377   : > { %2624 = vst.msk [vmem:[#allocation4 + $0xb8] sm:$0xff] %vm279_vm0, %v6678_v37  ;;  %v2404_v60 = vmul.f32 %v4997_v51, %v6465_v61  ;;  %v2333_v0 = vpop.f32.mrb[25].mxu0  ;;  %2623 = vst.msk [vmem:[#allocation4 + $0xb0] sm:$0xff] %vm279_vm0, %v6684_v59 }
 0x378   : > { %v2403_v2 = vmul.f32 %v6465_v61, %v2333_v0 }
 0x379   : > { %v2443_v1 = vadd.f32 %v6472_v62, %v2404_v60 }
 0x37a   : > { %v2442_v4 = vadd.f32 %v6472_v62, %v2403_v2 }
 0x37b   : > { %v2475_v8 = vmax.f32 %v2443_v1, 0.0 }
 0x37c   : > { %v2474_v11 = vmax.f32 %v2442_v4, 0.0  ;;  %v2658_v9 = vld [vmem:[#allocation3 + $0x129] sm:$0xff] }
 0x37d   : > { %2562 = vst.msk [vmem:[#allocation3 + $0x141] sm:$0xff] %vm279_vm0, %v2475_v8  ;;  %2747 = vrot.lane.b32.xlu1 %v2658_v9, %s5107_s8  ;;  %v2657_v15 = vld [vmem:[#allocation3 + $0x121] sm:$0xff] }
 0x37e   : > { %v2594_v12 = vld [vmem:[#allocation3 + $0x128] sm:$0xff]  ;;  %2561 = vst.msk [vmem:[#allocation3 + $0x139] sm:$0xff] %vm279_vm0, %v2474_v11  ;;  %2745 = vrot.lane.b32.xlu0 %v2657_v15, %s5107_s8  ;;  %v5000_v30 = vpop.f32.mrb[26].mxu0  ;;  %v6697_v31 = vld [vmem:[#allocation3 + $0x120] sm:$0xff] }
 0x37f   : > { %2626 = vst.msk [vmem:[#allocation4 + $0xc8] sm:$0xff] %vm279_vm0, %v2594_v12  ;;  %v2406_v16 = vmul.f32 %v5000_v30, %v6465_v61  ;;  %v2343_v48 = vpop.f32.mrb[27].mxu0  ;;  %2625 = vst.msk [vmem:[#allocation4 + $0xc0] sm:$0xff] %vm279_vm0, %v6697_v31  ;;  %v2826_v30 = vld [vmem:[#allocation3 + $0xa] sm:$0xff] }
 0x380   : > { %v2405_v45 = vmul.f32 %v6465_v61, %v2343_v48  ;;  %v2825_v48 = vld [vmem:[#allocation3 + $0x2] sm:$0xff] }
 0x381   : > { %v2445_v20 = vadd.f32 %v6472_v62, %v2406_v16 }
 0x382   : > { %v2444_v42 = vadd.f32 %v6472_v62, %v2405_v45 }
 0x383   : > { %v2477_v43 = vmax.f32 %v2445_v20, 0.0 }
 0x384   : > { %v2476_v36 = vmax.f32 %v2444_v42, 0.0  ;;  %v2660_v56 = vld [vmem:[#allocation3 + $0x141] sm:$0xff] }
 0x385   : > { %2564 = vst.msk [vmem:[#allocation3 + $0x159] sm:$0xff] %vm279_vm0, %v2477_v43  ;;  %2751 = vrot.lane.b32.xlu1 %v2660_v56, %s5107_s8  ;;  %v2659_v10 = vld [vmem:[#allocation3 + $0x139] sm:$0xff]  ;;  %v6730_v42 = vld [vmem:[#allocation3 + $0x22] sm:$0xff] }
 0x386   : > { %v2596_v14 = vld [vmem:[#allocation3 + $0x140] sm:$0xff]  ;;  %2563 = vst.msk [vmem:[#allocation3 + $0x151] sm:$0xff] %vm279_vm0, %v2476_v36  ;;  %2749 = vrot.lane.b32.xlu0 %v2659_v10, %s5107_s8  ;;  %v2595_v18 = vld [vmem:[#allocation3 + $0x138] sm:$0xff] }
 0x387   : > { %2628 = vst.msk [vmem:[#allocation4 + $0xd8] sm:$0xff] %vm279_vm0, %v2596_v14  ;;  %2627 = vst.msk [vmem:[#allocation4 + $0xd0] sm:$0xff] %vm279_vm0, %v2595_v18  ;;  %v6735_v43 = vld [vmem:[#allocation3 + $0x1a] sm:$0xff]  ;;  %v6743_v56 = vld [vmem:[#allocation3 + $0x32] sm:$0xff] }
 0x388   : > { %v6739_v36 = vld [vmem:[#allocation3 + $0x3a] sm:$0xff]  ;;  %v6748_v18 = vld [vmem:[#allocation3 + $0x52] sm:$0xff] }
 0x38a   : > { %v5003_v35 = vpop.f32.mrb[28].mxu0 }
 0x38b   : > { %v2408_v29 = vmul.f32 %v5003_v35, %v6465_v61  ;;  %v2353_v34 = vpop.f32.mrb[29].mxu0  ;;  %v6753_v35 = vld [vmem:[#allocation3 + $0x4a] sm:$0xff] }
 0x38c   : > { %v2407_v49 = vmul.f32 %v6465_v61, %v2353_v34  ;;  %v2662_v38 = vld [vmem:[#allocation3 + $0x159] sm:$0xff]  ;;  %v6761_v34 = vld [vmem:[#allocation3 + $0x62] sm:$0xff] }
 0x38d   : > { %v2447_v25 = vadd.f32 %v6472_v62, %v2408_v29  ;;  %2755 = vrot.lane.b32.xlu1 %v2662_v38, %s5107_s8  ;;  %v2661_v51 = vld [vmem:[#allocation3 + $0x151] sm:$0xff] }
 0x38e   : > { %v2598_v60 = vld [vmem:[#allocation3 + $0x158] sm:$0xff]  ;;  %v2446_v0 = vadd.f32 %v6472_v62, %v2407_v49  ;;  %2753 = vrot.lane.b32.xlu0 %v2661_v51, %s5107_s8  ;;  %v2597_v2 = vld [vmem:[#allocation3 + $0x150] sm:$0xff] }
 0x38f   : > { %2630 = vst.msk [vmem:[#allocation4 + $0xe8] sm:$0xff] %vm279_vm0, %v2598_v60  ;;  %v2479_v1 = vmax.f32 %v2447_v25, 0.0  ;;  %2629 = vst.msk [vmem:[#allocation4 + $0xe0] sm:$0xff] %vm279_vm0, %v2597_v2  ;;  %v6757_v29 = vld [vmem:[#allocation3 + $0x6a] sm:$0xff]  ;;  %v6766_v25 = vld [vmem:[#allocation3 + $0x82] sm:$0xff] }
 0x390   : > { %v2478_v4 = vmax.f32 %v2446_v0, 0.0  ;;  %v6771_v51 = vld [vmem:[#allocation3 + $0x7a] sm:$0xff]  ;;  %v6779_v0 = vld [vmem:[#allocation3 + $0x92] sm:$0xff] }
 0x391   : > { %2566 = vst.msk [vmem:[#allocation3 + $0x171] sm:$0xff] %vm279_vm0, %v2479_v1  ;;  %v6775_v60 = vld [vmem:[#allocation3 + $0x9a] sm:$0xff] }
 0x392   : > { %2565 = vst.msk [vmem:[#allocation3 + $0x169] sm:$0xff] %vm279_vm0, %v2478_v4  ;;  %v6784_v4 = vld [vmem:[#allocation3 + $0xb2] sm:$0xff] }
 0x397   : > { %v2704_v8 = vpop.permute.xlu1 %2703 }
 0x398   : > { %2796 = vst.msk [vmem:[#allocation4 + $0x18] sm:$0xff] %vm624_vm2, %v2704_v8  ;;  %v2702_v11 = vpop.permute.xlu0 %2701  ;;  %v2664_v9 = vld [vmem:[#allocation3 + $0x171] sm:$0xff] }
 0x399   : > { %2795 = vst.msk [vmem:[#allocation4 + $0x10] sm:$0xff] %vm624_vm2, %v2702_v11  ;;  %2759 = vrot.lane.b32.xlu1 %v2664_v9, %s5107_s8  ;;  %v2663_v15 = vld [vmem:[#allocation3 + $0x169] sm:$0xff] }
 0x39a   : > { %v2600_v12 = vld [vmem:[#allocation3 + $0x170] sm:$0xff]  ;;  %2757 = vrot.lane.b32.xlu0 %v2663_v15, %s5107_s8  ;;  %v2599_v16 = vld [vmem:[#allocation3 + $0x168] sm:$0xff] }
 0x39b   : > { %2632 = vst.msk [vmem:[#allocation4 + $0xf8] sm:$0xff] %vm279_vm0, %v2600_v12  ;;  %2631 = vst.msk [vmem:[#allocation4 + $0xf0] sm:$0xff] %vm279_vm0, %v2599_v16  ;;  %v6789_v8 = vld [vmem:[#allocation3 + $0xaa] sm:$0xff]  ;;  %v6797_v9 = vld [vmem:[#allocation3 + $0xc2] sm:$0xff] }
 0x39c   : > { %v6793_v11 = vld [vmem:[#allocation3 + $0xca] sm:$0xff]  ;;  %v6807_v16 = vld [vmem:[#allocation3 + $0xda] sm:$0xff] }
 0x39d   : > { %2891 = vrot.lane.b32.xlu1 %v2826_v30, %s5108_s9  ;;  %v6802_v30 = vld [vmem:[#allocation3 + $0xe2] sm:$0xff] }
 0x39e   : > { %2889 = vrot.lane.b32.xlu0 %v2825_v48, %s5108_s9  ;;  %v2846_v48 = vld [vmem:[#allocation3 + $0xfa] sm:$0xff] }
 0x39f   : > { %v2708_v45 = vpop.permute.xlu1 %2707 }
 0x3a0   : > { %2798 = vst.msk [vmem:[#allocation4 + $0x28] sm:$0xff] %vm624_vm2, %v2708_v45  ;;  %v2706_v20 = vpop.permute.xlu0 %2705  ;;  %v2845_v45 = vld [vmem:[#allocation3 + $0xf2] sm:$0xff] }
 0x3a1   : > { %2797 = vst.msk [vmem:[#allocation4 + $0x20] sm:$0xff] %vm624_vm2, %v2706_v20  ;;  %2895 = vrot.lane.b32.xlu1 %v6730_v42, %s5108_s9 }
 0x3a2   : > { %2893 = vrot.lane.b32.xlu0 %v6735_v43, %s5108_s9 }
 0x3a5   : > { %2899 = vrot.lane.b32.xlu1 %v6739_v36, %s5108_s9 }
 0x3a6   : > { %2897 = vrot.lane.b32.xlu0 %v6743_v56, %s5108_s9 }
 0x3a7   : > { %v2712_v10 = vpop.permute.xlu1 %2711 }
 0x3a8   : > { %2800 = vst.msk [vmem:[#allocation4 + $0x38] sm:$0xff] %vm624_vm2, %v2712_v10  ;;  %v2710_v14 = vpop.permute.xlu0 %2709 }
 0x3a9   : > { %2799 = vst.msk [vmem:[#allocation4 + $0x30] sm:$0xff] %vm624_vm2, %v2710_v14  ;;  %2903 = vrot.lane.b32.xlu1 %v6748_v18, %s5108_s9  ;;  %v2848_v14 = vld [vmem:[#allocation3 + $0x112] sm:$0xff] }
 0x3aa   : > { %2901 = vrot.lane.b32.xlu0 %v6753_v35, %s5108_s9 }
 0x3ad   : > { %2907 = vrot.lane.b32.xlu1 %v6757_v29, %s5108_s9 }
 0x3ae   : > { %2905 = vrot.lane.b32.xlu0 %v6761_v34, %s5108_s9 }
 0x3af   : > { %v2716_v49 = vpop.permute.xlu1 %2715 }
 0x3b0   : > { %2802 = vst.msk [vmem:[#allocation4 + $0x48] sm:$0xff] %vm624_vm2, %v2716_v49  ;;  %v2714_v38 = vpop.permute.xlu0 %2713  ;;  %v2847_v49 = vld [vmem:[#allocation3 + $0x10a] sm:$0xff] }
 0x3b1   : > { %2801 = vst.msk [vmem:[#allocation4 + $0x40] sm:$0xff] %vm624_vm2, %v2714_v38  ;;  %2911 = vrot.lane.b32.xlu1 %v6766_v25, %s5108_s9  ;;  %v2850_v38 = vld [vmem:[#allocation3 + $0x12a] sm:$0xff] }
 0x3b2   : > { %2909 = vrot.lane.b32.xlu0 %v6771_v51, %s5108_s9 }
 0x3b5   : > { %2915 = vrot.lane.b32.xlu1 %v6775_v60, %s5108_s9 }
 0x3b6   : > { %2913 = vrot.lane.b32.xlu0 %v6779_v0, %s5108_s9 }
 0x3b7   : > { %v2720_v2 = vpop.permute.xlu1 %2719 }
 0x3b8   : > { %2804 = vst.msk [vmem:[#allocation4 + $0x58] sm:$0xff] %vm624_vm2, %v2720_v2  ;;  %v2718_v1 = vpop.permute.xlu0 %2717  ;;  %v2849_v2 = vld [vmem:[#allocation3 + $0x122] sm:$0xff] }
 0x3b9   : > { %2803 = vst.msk [vmem:[#allocation4 + $0x50] sm:$0xff] %vm624_vm2, %v2718_v1  ;;  %2919 = vrot.lane.b32.xlu1 %v6784_v4, %s5108_s9 }
 0x3ba   : > { %2917 = vrot.lane.b32.xlu0 %v6789_v8, %s5108_s9 }
 0x3bd   : > { %2923 = vrot.lane.b32.xlu1 %v6793_v11, %s5108_s9 }
 0x3be   : > { %2921 = vrot.lane.b32.xlu0 %v6797_v9, %s5108_s9 }
 0x3bf   : > { %v2724_v15 = vpop.permute.xlu1 %2723 }
 0x3c0   : > { %2806 = vst.msk [vmem:[#allocation4 + $0x68] sm:$0xff] %vm624_vm2, %v2724_v15  ;;  %v2722_v12 = vpop.permute.xlu0 %2721 }
 0x3c1   : > { %2805 = vst.msk [vmem:[#allocation4 + $0x60] sm:$0xff] %vm624_vm2, %v2722_v12  ;;  %2927 = vrot.lane.b32.xlu1 %v6802_v30, %s5108_s9  ;;  %v2852_v12 = vld [vmem:[#allocation3 + $0x142] sm:$0xff] }
 0x3c2   : > { %2925 = vrot.lane.b32.xlu0 %v6807_v16, %s5108_s9 }
 0x3c5   : > { %2931 = vrot.lane.b32.xlu1 %v2846_v48, %s5108_s9  ;;  %v2851_v48 = vld [vmem:[#allocation3 + $0x13a] sm:$0xff] }
 0x3c6   : > { %2929 = vrot.lane.b32.xlu0 %v2845_v45, %s5108_s9  ;;  %v2854_v45 = vld [vmem:[#allocation3 + $0x15a] sm:$0xff] }
 0x3c7   : > { %v2728_v20 = vpop.permute.xlu1 %2727 }
 0x3c8   : > { %2808 = vst.msk [vmem:[#allocation4 + $0x78] sm:$0xff] %vm624_vm2, %v2728_v20  ;;  %v2726_v10 = vpop.permute.xlu0 %2725  ;;  %v2853_v20 = vld [vmem:[#allocation3 + $0x152] sm:$0xff] }
 0x3c9   : > { %2807 = vst.msk [vmem:[#allocation4 + $0x70] sm:$0xff] %vm624_vm2, %v2726_v10  ;;  %2935 = vrot.lane.b32.xlu1 %v2848_v14, %s5108_s9 }
 0x3ca   : > { %2933 = vrot.lane.b32.xlu0 %v2847_v49, %s5108_s9  ;;  %v2856_v49 = vld [vmem:[#allocation3 + $0x172] sm:$0xff] }
 0x3cd   : > { %2939 = vrot.lane.b32.xlu1 %v2850_v38, %s5108_s9  ;;  %v2855_v38 = vld [vmem:[#allocation3 + $0x16a] sm:$0xff] }
 0x3ce   : > { %2937 = vrot.lane.b32.xlu0 %v2849_v2, %s5108_s9 }
 0x3cf   : > { %v2732_v1 = vpop.permute.xlu1 %2731 }
 0x3d0   : > { %2810 = vst.msk [vmem:[#allocation4 + $0x88] sm:$0xff] %vm624_vm2, %v2732_v1  ;;  %v2730_v15 = vpop.permute.xlu0 %2729 }
 0x3d1   : > { %2809 = vst.msk [vmem:[#allocation4 + $0x80] sm:$0xff] %vm624_vm2, %v2730_v15  ;;  %2943 = vrot.lane.b32.xlu1 %v2852_v12, %s5108_s9 }
 0x3d2   : > { %2941 = vrot.lane.b32.xlu0 %v2851_v48, %s5108_s9 }
 0x3d5   : > { %2947 = vrot.lane.b32.xlu1 %v2854_v45, %s5108_s9 }
 0x3d6   : > { %2945 = vrot.lane.b32.xlu0 %v2853_v20, %s5108_s9 }
 0x3d7   : > { %v2736_v10 = vpop.permute.xlu1 %2735 }
 0x3d8   : > { %2812 = vst.msk [vmem:[#allocation4 + $0x98] sm:$0xff] %vm624_vm2, %v2736_v10  ;;  %v2734_v14 = vpop.permute.xlu0 %2733 }
 0x3d9   : > { %2811 = vst.msk [vmem:[#allocation4 + $0x90] sm:$0xff] %vm624_vm2, %v2734_v14  ;;  %2951 = vrot.lane.b32.xlu1 %v2856_v49, %s5108_s9 }
 0x3da   : > { %2949 = vrot.lane.b32.xlu0 %v2855_v38, %s5108_s9  ;;  %v4206_v38 = vld [vmem:[%s7591_s4 + $0x20] sm:$0xf] }
 0x3dd   : > { %3083 = vrot.lane.b32.xlu1 %v6493_v23, %s5109_s10 }
 0x3de   : > { %3081 = vrot.lane.b32.xlu0 %v6495_v28, %s5109_s10 }
 0x3df   : > { %v2740_v2 = vpop.permute.xlu1 %2739 }
 0x3e0   : > { %2814 = vst.msk [vmem:[#allocation4 + $0xa8] sm:$0xff] %vm624_vm2, %v2740_v2  ;;  %v2738_v1 = vpop.permute.xlu0 %2737 }
 0x3e1   : > { %2813 = vst.msk [vmem:[#allocation4 + $0xa0] sm:$0xff] %vm624_vm2, %v2738_v1  ;;  %3087 = vrot.lane.b32.xlu1 %v6515_v50, %s5109_s10 }
 0x3e2   : > { %3085 = vrot.lane.b32.xlu0 %v6517_v24, %s5109_s10 }
 0x3e5   : > { %3091 = vrot.lane.b32.xlu1 %v6537_v22, %s5109_s10 }
 0x3e6   : > { %3089 = vrot.lane.b32.xlu0 %v6539_v46, %s5109_s10 }
 0x3e7   : > { %v2744_v23 = vpop.permute.xlu1 %2743 }
 0x3e8   : > { %2816 = vst.msk [vmem:[#allocation4 + $0xb8] sm:$0xff] %vm624_vm2, %v2744_v23  ;;  %v2742_v28 = vpop.permute.xlu0 %2741 }
 0x3e9   : > { %2815 = vst.msk [vmem:[#allocation4 + $0xb0] sm:$0xff] %vm624_vm2, %v2742_v28  ;;  %3095 = vrot.lane.b32.xlu1 %v6559_v52, %s5109_s10 }
 0x3ea   : > { %3093 = vrot.lane.b32.xlu0 %v6566_v55, %s5109_s10 }
 0x3ed   : > { %3099 = vrot.lane.b32.xlu1 %v6581_v5, %s5109_s10 }
 0x3ee   : > { %3097 = vrot.lane.b32.xlu0 %v6588_v7, %s5109_s10 }
 0x3ef   : > { %v2748_v15 = vpop.permute.xlu1 %2747 }
 0x3f0   : > { %2818 = vst.msk [vmem:[#allocation4 + $0xc8] sm:$0xff] %vm624_vm2, %v2748_v15  ;;  %v2746_v12 = vpop.permute.xlu0 %2745 }
 0x3f1   : > { %2817 = vst.msk [vmem:[#allocation4 + $0xc0] sm:$0xff] %vm624_vm2, %v2746_v12  ;;  %3103 = vrot.lane.b32.xlu1 %v6598_v40, %s5109_s10 }
 0x3f2   : > { %3101 = vrot.lane.b32.xlu0 %v6604_v41, %s5109_s10 }
 0x3f5   : > { %3107 = vrot.lane.b32.xlu1 %v6614_v13, %s5109_s10 }
 0x3f6   : > { %3105 = vrot.lane.b32.xlu0 %v6620_v17, %s5109_s10 }
 0x3f7   : > { %v2752_v48 = vpop.permute.xlu1 %2751 }
 0x3f8   : > { %2820 = vst.msk [vmem:[#allocation4 + $0xd8] sm:$0xff] %vm624_vm2, %v2752_v48  ;;  %v2750_v45 = vpop.permute.xlu0 %2749 }
 0x3f9   : > { %2819 = vst.msk [vmem:[#allocation4 + $0xd0] sm:$0xff] %vm624_vm2, %v2750_v45  ;;  %3111 = vrot.lane.b32.xlu1 %v6630_v57, %s5109_s10  ;;  %v5006_v45 = vpop.f32.mrb[30].mxu0 }
 0x3fa   : > { %3109 = vrot.lane.b32.xlu0 %v6636_v58, %s5109_s10 }
 0x3fd   : > { %3275 = vrot.lane.b32.xlu1 %v6486_v32, %s5110_s11  ;;  %v4202_v32 = vld [vmem:[%s7591_s4] sm:$0xff] }
 0x3fe   : > { %3273 = vrot.lane.b32.xlu0 %v6491_v39, %s5110_s11  ;;  %v4203_v39 = vld [vmem:[%s7591_s4 + $0x8] sm:$0xff] }
 0x3ff   : > { %v2756_v20 = vpop.permute.xlu1 %2755  ;;  %v5073_v14 = vpack.c.bf16 %v4203_v39, %v4202_v32 }
 0x400   : > { %2822 = vst.msk [vmem:[#allocation4 + $0xe8] sm:$0xff] %vm624_vm2, %v2756_v20  ;;  %v2754_v10 = vpop.permute.xlu0 %2753  ;;  %v2410_v20 = vmul.f32 %v5006_v45, %v6465_v61 }
 0x401   : > { %2821 = vst.msk [vmem:[#allocation4 + $0xe0] sm:$0xff] %vm624_vm2, %v2754_v10  ;;  %3467 = vrot.lane.b32.xlu1 %v6730_v42, %s5111_s12  ;;  %5074 = vmatprep.subr.bf16.mxu1 %v5073_v14  ;;  %v4205_v42 = vld [vmem:[%s7591_s4 + $0x18] sm:$0xff]  ;;  %v2363_v10 = vpop.f32.mrb[31].mxu0 }
 0x402   : > { %3465 = vrot.lane.b32.xlu0 %v6735_v43, %s5111_s12  ;;  %5076 = vmatpush3.bf16.msra.mxu1 %v5073_v14  ;;  %v2409_v32 = vmul.f32 %v6465_v61, %v2363_v10  ;;  %v2449_v39 = vadd.f32 %v6472_v62, %v2410_v20 }
 0x404   : > { %v2448_v14 = vadd.f32 %v6472_v62, %v2409_v32 }
 0x405   : > { %3660 = vrot.lane.b32.xlu1 %v6515_v50, %s5112_s13  ;;  %v4204_v50 = vld [vmem:[%s7591_s4 + $0x10] sm:$0xff] }
 0x406   : > { %3658 = vrot.lane.b32.xlu0 %v6517_v24, %s5112_s13  ;;  %v5077_v43 = vpack.c.bf16 %v4205_v42, %v4204_v50  ;;  %v2480_v42 = vmax.f32 %v2448_v14, 0.0  ;;  %v3223_v14 = vld [vmem:[#allocation3 + $0xc1] sm:$0xff] }
 0x408   : > { %5078 = vmatprep.subr.bf16.mxu1 %v5077_v43  ;;  %2567 = vst.msk [vmem:[#allocation3 + $0x181] sm:$0xff] %vm279_vm0, %v2480_v42 }
 0x409   : > { %3277 = vrot.lane.b32.xlu1 %v6513_v47, %s5110_s11  ;;  %5080 = vmatpush3.bf16.msra.mxu1 %v5077_v43 }
 0x40a   : > { %3850 = vrot.lane.b32.xlu0 %v6513_v47, %s5113_s22  ;;  %5015 = vmatprep.subr.msk.mxu1 %vm2143_vm7, %v4206_v38 }
 0x40b   : > { %v2760_v49 = vpop.permute.xlu1 %2759 }
 0x40c   : > { %2824 = vst.msk [vmem:[#allocation4 + $0xf8] sm:$0xff] %vm624_vm2, %v2760_v49  ;;  %v2758_v24 = vpop.permute.xlu0 %2757 }
 0x40d   : > { %2823 = vst.msk [vmem:[#allocation4 + $0xf0] sm:$0xff] %vm624_vm2, %v2758_v24  ;;  %4042 = vrot.lane.b32.xlu1 %v6743_v56, %s5114_s28  ;;  %5016 = vmatpush3.msk.msra.mxu1 %vm2143_vm7, %v4206_v38 }
 0x40e   : > { %3852 = vrot.lane.b32.xlu0 %v6508_v44, %s5113_s22 }
 0x40f   : > { %v2892_v47 = vpop.permute.xlu1 %2891 }
 0x410   : > { %2986 = vst.msk [vmem:[#allocation4 + $0x8] sm:$0xff] %vm817_vm3, %v2892_v47  ;;  %v2890_v2 = vpop.permute.xlu0 %2889 }
 0x411   : > { %2985 = vst.msk [vmem:[#allocation4] sm:$0xff] %vm817_vm3, %v2890_v2  ;;  %3469 = vrot.lane.b32.xlu1 %v6743_v56, %s5111_s12 }
 0x412   : > { %3279 = vrot.lane.b32.xlu0 %v6508_v44, %s5110_s11 }
 0x413   : > { %v2896_v1 = vpop.permute.xlu1 %2895 }
 0x414   : > { %2988 = vst.msk [vmem:[#allocation4 + $0x18] sm:$0xff] %vm817_vm3, %v2896_v1  ;;  %v2894_v23 = vpop.permute.xlu0 %2893 }
 0x415   : > { %2987 = vst.msk [vmem:[#allocation4 + $0x10] sm:$0xff] %vm817_vm3, %v2894_v23  ;;  %3471 = vrot.lane.b32.xlu1 %v6739_v36, %s5111_s12 }
 0x416   : > { %4044 = vrot.lane.b32.xlu0 %v6739_v36, %s5114_s28 }
 0x417   : > { %v2900_v28 = vpop.permute.xlu1 %2899 }
 0x418   : > { %2990 = vst.msk [vmem:[#allocation4 + $0x28] sm:$0xff] %vm817_vm3, %v2900_v28  ;;  %v2898_v56 = vpop.permute.xlu0 %2897 }
 0x419   : > { %2989 = vst.msk [vmem:[#allocation4 + $0x20] sm:$0xff] %vm817_vm3, %v2898_v56  ;;  %3664 = vrot.lane.b32.xlu1 %v6537_v22, %s5112_s13  ;;  %v3219_v56 = vld [vmem:[#allocation3 + $0x91] sm:$0xff] }
 0x41a   : > { %3662 = vrot.lane.b32.xlu0 %v6539_v46, %s5112_s13 }
 0x41b   : > { %v2904_v44 = vpop.permute.xlu1 %2903 }
 0x41c   : > { %2992 = vst.msk [vmem:[#allocation4 + $0x38] sm:$0xff] %vm817_vm3, %v2904_v44  ;;  %v2902_v15 = vpop.permute.xlu0 %2901 }
 0x41d   : > { %2991 = vst.msk [vmem:[#allocation4 + $0x30] sm:$0xff] %vm817_vm3, %v2902_v15  ;;  %3281 = vrot.lane.b32.xlu1 %v6535_v33, %s5110_s11 }
 0x41e   : > { %3854 = vrot.lane.b32.xlu0 %v6535_v33, %s5113_s22 }
 0x41f   : > { %v2908_v36 = vpop.permute.xlu1 %2907 }
 0x420   : > { %2994 = vst.msk [vmem:[#allocation4 + $0x48] sm:$0xff] %vm817_vm3, %v2908_v36  ;;  %v2906_v12 = vpop.permute.xlu0 %2905 }
 0x421   : > { %2993 = vst.msk [vmem:[#allocation4 + $0x40] sm:$0xff] %vm817_vm3, %v2906_v12  ;;  %4046 = vrot.lane.b32.xlu1 %v6753_v35, %s5114_s28 }
 0x422   : > { %3856 = vrot.lane.b32.xlu0 %v6530_v21, %s5113_s22 }
 0x423   : > { %v2912_v22 = vpop.permute.xlu1 %2911 }
 0x424   : > { %2996 = vst.msk [vmem:[#allocation4 + $0x58] sm:$0xff] %vm817_vm3, %v2912_v22  ;;  %v2910_v46 = vpop.permute.xlu0 %2909 }
 0x425   : > { %2995 = vst.msk [vmem:[#allocation4 + $0x50] sm:$0xff] %vm817_vm3, %v2910_v46  ;;  %3473 = vrot.lane.b32.xlu1 %v6753_v35, %s5111_s12 }
 0x426   : > { %3283 = vrot.lane.b32.xlu0 %v6530_v21, %s5110_s11 }
 0x427   : > { %v2916_v33 = vpop.permute.xlu1 %2915 }
 0x428   : > { %2998 = vst.msk [vmem:[#allocation4 + $0x68] sm:$0xff] %vm817_vm3, %v2916_v33  ;;  %v2914_v48 = vpop.permute.xlu0 %2913 }
 0x429   : > { %2997 = vst.msk [vmem:[#allocation4 + $0x60] sm:$0xff] %vm817_vm3, %v2914_v48  ;;  %3475 = vrot.lane.b32.xlu1 %v6748_v18, %s5111_s12  ;;  %v3221_v48 = vld [vmem:[#allocation3 + $0xa9] sm:$0xff] }
 0x42a   : > { %4048 = vrot.lane.b32.xlu0 %v6748_v18, %s5114_s28  ;;  %v2481_v18 = vmax.f32 %v2449_v39, 0.0 }
 0x42b   : > { %v2920_v35 = vpop.permute.xlu1 %2919 }
 0x42c   : > { %3000 = vst.msk [vmem:[#allocation4 + $0x78] sm:$0xff] %vm817_vm3, %v2920_v35  ;;  %v2918_v21 = vpop.permute.xlu0 %2917 }
 0x42d   : > { %2999 = vst.msk [vmem:[#allocation4 + $0x70] sm:$0xff] %vm817_vm3, %v2918_v21  ;;  %3668 = vrot.lane.b32.xlu1 %v6559_v52, %s5112_s13 }
 0x42e   : > { %3666 = vrot.lane.b32.xlu0 %v6566_v55, %s5112_s13  ;;  %2568 = vst.msk [vmem:[#allocation3 + $0x189] sm:$0xff] %vm279_vm0, %v2481_v18 }
 0x42f   : > { %v2924_v50 = vpop.permute.xlu1 %2923 }
 0x430   : > { %3002 = vst.msk [vmem:[#allocation4 + $0x88] sm:$0xff] %vm817_vm3, %v2924_v50  ;;  %v2922_v61 = vpop.permute.xlu0 %2921 }
 0x431   : > { %3001 = vst.msk [vmem:[#allocation4 + $0x80] sm:$0xff] %vm817_vm3, %v2922_v61  ;;  %3285 = vrot.lane.b32.xlu1 %v6557_v54, %s5110_s11 }
 0x432   : > { %3858 = vrot.lane.b32.xlu0 %v6557_v54, %s5113_s22 }
 0x433   : > { %v2928_v62 = vpop.permute.xlu1 %2927 }
 0x434   : > { %3004 = vst.msk [vmem:[#allocation4 + $0x98] sm:$0xff] %vm817_vm3, %v2928_v62  ;;  %v2926_v52 = vpop.permute.xlu0 %2925 }
 0x435   : > { %3003 = vst.msk [vmem:[#allocation4 + $0x90] sm:$0xff] %vm817_vm3, %v2926_v52  ;;  %4050 = vrot.lane.b32.xlu1 %v6761_v34, %s5114_s28 }
 0x436   : > { %3860 = vrot.lane.b32.xlu0 %v6552_v26, %s5113_s22 }
 0x437   : > { %v2932_v55 = vpop.permute.xlu1 %2931 }
 0x438   : > { %3006 = vst.msk [vmem:[#allocation4 + $0xa8] sm:$0xff] %vm817_vm3, %v2932_v55  ;;  %v2930_v43 = vpop.permute.xlu0 %2929 }
 0x439   : > { %3005 = vst.msk [vmem:[#allocation4 + $0xa0] sm:$0xff] %vm817_vm3, %v2930_v43  ;;  %3477 = vrot.lane.b32.xlu1 %v6761_v34, %s5111_s12 }
 0x43a   : > { %3287 = vrot.lane.b32.xlu0 %v6552_v26, %s5110_s11 }
 0x43b   : > { %v2936_v54 = vpop.permute.xlu1 %2935 }
 0x43c   : > { %3008 = vst.msk [vmem:[#allocation4 + $0xb8] sm:$0xff] %vm817_vm3, %v2936_v54  ;;  %v2934_v49 = vpop.permute.xlu0 %2933 }
 0x43d   : > { %3007 = vst.msk [vmem:[#allocation4 + $0xb0] sm:$0xff] %vm817_vm3, %v2934_v49  ;;  %3479 = vrot.lane.b32.xlu1 %v6757_v29, %s5111_s12 }
 0x43e   : > { %4052 = vrot.lane.b32.xlu0 %v6757_v29, %s5114_s28 }
 0x43f   : > { %v2940_v24 = vpop.permute.xlu1 %2939 }
 0x440   : > { %3010 = vst.msk [vmem:[#allocation4 + $0xc8] sm:$0xff] %vm817_vm3, %v2940_v24  ;;  %v2938_v38 = vpop.permute.xlu0 %2937 }
 0x441   : > { %3009 = vst.msk [vmem:[#allocation4 + $0xc0] sm:$0xff] %vm817_vm3, %v2938_v38  ;;  %3672 = vrot.lane.b32.xlu1 %v6581_v5, %s5112_s13 }
 0x442   : > { %3670 = vrot.lane.b32.xlu0 %v6588_v7, %s5112_s13 }
 0x443   : > { %v2944_v26 = vpop.permute.xlu1 %2943 }
 0x444   : > { %3012 = vst.msk [vmem:[#allocation4 + $0xd8] sm:$0xff] %vm817_vm3, %v2944_v26  ;;  %v2942_v34 = vpop.permute.xlu0 %2941 }
 0x445   : > { %3011 = vst.msk [vmem:[#allocation4 + $0xd0] sm:$0xff] %vm817_vm3, %v2942_v34  ;;  %3289 = vrot.lane.b32.xlu1 %v6579_v6, %s5110_s11  ;;  %v3801_v34 = vld [vmem:[#allocation3 + $0xe1] sm:$0xff] }
 0x446   : > { %3862 = vrot.lane.b32.xlu0 %v6579_v6, %s5113_s22  ;;  %v3218_v6 = vld [vmem:[#allocation3 + $0x81] sm:$0xff] }
 0x447   : > { %v2948_v29 = vpop.permute.xlu1 %2947 }
 0x448   : > { %3014 = vst.msk [vmem:[#allocation4 + $0xe8] sm:$0xff] %vm817_vm3, %v2948_v29  ;;  %v2946_v47 = vpop.permute.xlu0 %2945 }
 0x449   : > { %3013 = vst.msk [vmem:[#allocation4 + $0xe0] sm:$0xff] %vm817_vm3, %v2946_v47  ;;  %4054 = vrot.lane.b32.xlu1 %v6771_v51, %s5114_s28 }
 0x44a   : > { %3864 = vrot.lane.b32.xlu0 %v6574_v3, %s5113_s22 }
 0x44b   : > { %v2952_v5 = vpop.permute.xlu1 %2951 }
 0x44c   : > { %3016 = vst.msk [vmem:[#allocation4 + $0xf8] sm:$0xff] %vm817_vm3, %v2952_v5  ;;  %v2950_v7 = vpop.permute.xlu0 %2949 }
 0x44d   : > { %3015 = vst.msk [vmem:[#allocation4 + $0xf0] sm:$0xff] %vm817_vm3, %v2950_v7  ;;  %3481 = vrot.lane.b32.xlu1 %v6771_v51, %s5111_s12 }
 0x44e   : > { %3291 = vrot.lane.b32.xlu0 %v3218_v6, %s5110_s11 }
 0x44f   : > { %v3084_v2 = vpop.permute.xlu1 %3083 }
 0x450   : > { %3178 = vst.msk [vmem:[#allocation4 + $0x8] sm:$0xff] %vm1010_vm4, %v3084_v2  ;;  %v3082_v1 = vpop.permute.xlu0 %3081 }
 0x451   : > { %3177 = vst.msk [vmem:[#allocation4] sm:$0xff] %vm1010_vm4, %v3082_v1  ;;  %3483 = vrot.lane.b32.xlu1 %v6766_v25, %s5111_s12 }
 0x452   : > { %4056 = vrot.lane.b32.xlu0 %v6766_v25, %s5114_s28 }
 0x453   : > { %v3088_v3 = vpop.permute.xlu1 %3087 }
 0x454   : > { %3180 = vst.msk [vmem:[#allocation4 + $0x18] sm:$0xff] %vm1010_vm4, %v3088_v3  ;;  %v3086_v23 = vpop.permute.xlu0 %3085  ;;  %v3802_v3 = vld [vmem:[#allocation3 + $0xf1] sm:$0xff] }
 0x455   : > { %3179 = vst.msk [vmem:[#allocation4 + $0x10] sm:$0xff] %vm1010_vm4, %v3086_v23  ;;  %3676 = vrot.lane.b32.xlu1 %v6598_v40, %s5112_s13  ;;  %v3795_v40 = vld [vmem:[#allocation3 + $0x99] sm:$0xff] }
 0x456   : > { %3674 = vrot.lane.b32.xlu0 %v6604_v41, %s5112_s13 }
 0x457   : > { %v3092_v51 = vpop.permute.xlu1 %3091 }
 0x458   : > { %3182 = vst.msk [vmem:[#allocation4 + $0x28] sm:$0xff] %vm1010_vm4, %v3092_v51  ;;  %v3090_v28 = vpop.permute.xlu0 %3089 }
 0x459   : > { %3181 = vst.msk [vmem:[#allocation4 + $0x20] sm:$0xff] %vm1010_vm4, %v3090_v28  ;;  %3293 = vrot.lane.b32.xlu1 %v3219_v56, %s5110_s11 }
 0x45a   : > { %3866 = vrot.lane.b32.xlu0 %v3219_v56, %s5113_s22  ;;  %v3994_v56 = vld [vmem:[#allocation3 + $0xf2] sm:$0xff] }
 0x45b   : > { %v3096_v25 = vpop.permute.xlu1 %3095 }
 0x45c   : > { %3184 = vst.msk [vmem:[#allocation4 + $0x38] sm:$0xff] %vm1010_vm4, %v3096_v25  ;;  %v3094_v44 = vpop.permute.xlu0 %3093  ;;  %v3803_v25 = vld [vmem:[#allocation3 + $0xf9] sm:$0xff] }
 0x45d   : > { %3183 = vst.msk [vmem:[#allocation4 + $0x30] sm:$0xff] %vm1010_vm4, %v3094_v44  ;;  %4058 = vrot.lane.b32.xlu1 %v6779_v0, %s5114_s28 }
 0x45e   : > { %3868 = vrot.lane.b32.xlu0 %v3795_v40, %s5113_s22 }
 0x45f   : > { %v3100_v41 = vpop.permute.xlu1 %3099 }
 0x460   : > { %3186 = vst.msk [vmem:[#allocation4 + $0x48] sm:$0xff] %vm1010_vm4, %v3100_v41  ;;  %v3098_v15 = vpop.permute.xlu0 %3097 }
 0x461   : > { %3185 = vst.msk [vmem:[#allocation4 + $0x40] sm:$0xff] %vm1010_vm4, %v3098_v15  ;;  %3485 = vrot.lane.b32.xlu1 %v6779_v0, %s5111_s12 }
 0x462   : > { %3295 = vrot.lane.b32.xlu0 %v3795_v40, %s5110_s11 }
 0x463   : > { %v3104_v36 = vpop.permute.xlu1 %3103 }
 0x464   : > { %3188 = vst.msk [vmem:[#allocation4 + $0x58] sm:$0xff] %vm1010_vm4, %v3104_v36  ;;  %v3102_v12 = vpop.permute.xlu0 %3101  ;;  %v3420_v36 = vld [vmem:[#allocation3 + $0xfa] sm:$0xff] }
 0x465   : > { %3187 = vst.msk [vmem:[#allocation4 + $0x50] sm:$0xff] %vm1010_vm4, %v3102_v12  ;;  %3487 = vrot.lane.b32.xlu1 %v6775_v60, %s5111_s12 }
 0x466   : > { %4060 = vrot.lane.b32.xlu0 %v6775_v60, %s5114_s28 }
 0x467   : > { %v3108_v22 = vpop.permute.xlu1 %3107 }
 0x468   : > { %3190 = vst.msk [vmem:[#allocation4 + $0x68] sm:$0xff] %vm1010_vm4, %v3108_v22  ;;  %v3106_v46 = vpop.permute.xlu0 %3105 }
 0x469   : > { %3189 = vst.msk [vmem:[#allocation4 + $0x60] sm:$0xff] %vm1010_vm4, %v3106_v46  ;;  %3680 = vrot.lane.b32.xlu1 %v6614_v13, %s5112_s13  ;;  %v3797_v13 = vld [vmem:[#allocation3 + $0xb1] sm:$0xff] }
 0x46a   : > { %3678 = vrot.lane.b32.xlu0 %v6620_v17, %s5112_s13 }
 0x46b   : > { %v3112_v0 = vpop.permute.xlu1 %3111 }
 0x46c   : > { %3192 = vst.msk [vmem:[#allocation4 + $0x78] sm:$0xff] %vm1010_vm4, %v3112_v0  ;;  %v3110_v33 = vpop.permute.xlu0 %3109 }
 0x46d   : > { %3191 = vst.msk [vmem:[#allocation4 + $0x70] sm:$0xff] %vm1010_vm4, %v3110_v33  ;;  %3297 = vrot.lane.b32.xlu1 %v3221_v48, %s5110_s11 }
 0x46e   : > { %3870 = vrot.lane.b32.xlu0 %v3221_v48, %s5113_s22  ;;  %v3804_v48 = vld [vmem:[#allocation3 + $0x109] sm:$0xff] }
 0x46f   : > { %v3276_v60 = vpop.permute.xlu1 %3275 }
 0x470   : > { %3370 = vst.msk [vmem:[#allocation4 + $0x8] sm:$0xff] %vm1203_vm5, %v3276_v60  ;;  %v3274_v45 = vpop.permute.xlu0 %3273 }
 0x471   : > { %3369 = vst.msk [vmem:[#allocation4] sm:$0xff] %vm1203_vm5, %v3274_v45  ;;  %4062 = vrot.lane.b32.xlu1 %v6789_v8, %s5114_s28 }
 0x472   : > { %3872 = vrot.lane.b32.xlu0 %v3797_v13, %s5113_s22 }
 0x473   : > { %v3468_v17 = vpop.permute.xlu1 %3467 }
 0x474   : > { %3562 = vst.msk [vmem:[#allocation4 + $0x8] sm:$0xff] %vm1396_vm6, %v3468_v17  ;;  %v3466_v20 = vpop.permute.xlu0 %3465  ;;  %v3996_v17 = vld [vmem:[#allocation3 + $0x10a] sm:$0xff] }
 0x475   : > { %3561 = vst.msk [vmem:[#allocation4] sm:$0xff] %vm1396_vm6, %v3466_v20  ;;  %3489 = vrot.lane.b32.xlu1 %v6789_v8, %s5111_s12 }
 0x476   : > { %3299 = vrot.lane.b32.xlu0 %v3797_v13, %s5110_s11 }
 0x477   : > { %v3661_v10 = vpop.permute.xlu1 %3660 }
 0x478   : > { %3755 = vst.msk [vmem:[#allocation4 + $0x8] sm:$0xff] %vm1590_vm8, %v3661_v10  ;;  %v3659_v35 = vpop.permute.xlu0 %3658  ;;  %v3805_v10 = vld [vmem:[#allocation3 + $0x111] sm:$0xff] }
 0x479   : > { %3754 = vst.msk [vmem:[#allocation4] sm:$0xff] %vm1590_vm8, %v3659_v35  ;;  %3491 = vrot.lane.b32.xlu1 %v6784_v4, %s5111_s12 }
 0x47a   : > { %4064 = vrot.lane.b32.xlu0 %v6784_v4, %s5114_s28 }
 0x47b   : > { %v3278_v32 = vpop.permute.xlu1 %3277 }
 0x47c   : > { %3371 = vst.msk [vmem:[#allocation4 + $0x10] sm:$0xff] %vm1203_vm5, %v3278_v32  ;;  %v3851_v21 = vpop.permute.xlu0 %3850 }
 0x47d   : > { %3946 = vst.msk [vmem:[#allocation4] sm:$0xff] %vm1783_vm9, %v3851_v21  ;;  %3684 = vrot.lane.b32.xlu1 %v6630_v57, %s5112_s13  ;;  %v3799_v57 = vld [vmem:[#allocation3 + $0xc9] sm:$0xff] }
 0x47e   : > { %3682 = vrot.lane.b32.xlu0 %v6636_v58, %s5112_s13 }
 0x47f   : > { %v4043_v8 = vpop.permute.xlu1 %4042 }
 0x480   : > { %4138 = vst.msk [vmem:[#allocation4] sm:$0xff] %vm1976_vm10, %v4043_v8  ;;  %v3853_v39 = vpop.permute.xlu0 %3852  ;;  %v3422_v8 = vld [vmem:[#allocation3 + $0x112] sm:$0xff] }
 0x481   : > { %3947 = vst.msk [vmem:[#allocation4 + $0x8] sm:$0xff] %vm1783_vm9, %v3853_v39  ;;  %3301 = vrot.lane.b32.xlu1 %v3223_v14, %s5110_s11 }
 0x482   : > { %3874 = vrot.lane.b32.xlu0 %v3223_v14, %s5113_s22 }
 0x483   : > { %v3470_v4 = vpop.permute.xlu1 %3469 }
 0x484   : > { %3563 = vst.msk [vmem:[#allocation4 + $0x10] sm:$0xff] %vm1396_vm6, %v3470_v4  ;;  %v3280_v18 = vpop.permute.xlu0 %3279 }
 0x485   : > { %3372 = vst.msk [vmem:[#allocation4 + $0x18] sm:$0xff] %vm1203_vm5, %v3280_v18  ;;  %4066 = vrot.lane.b32.xlu1 %v6797_v9, %s5114_s28 }
 0x486   : > { %3876 = vrot.lane.b32.xlu0 %v3799_v57, %s5113_s22 }
 0x487   : > { %v3472_v58 = vpop.permute.xlu1 %3471  ;;  %v4170_v50 = vld [vmem:[#allocation4] sm:$0xff] }
 0x488   : > { %3564 = vst.msk [vmem:[#allocation4 + $0x18] sm:$0xff] %vm1396_vm6, %v3472_v58  ;;  %5017 = vmatprep.mubr.msk.f32.mxu1 %vm2046_vm11, %v4170_v50  ;;  %v4045_v42 = vpop.permute.xlu0 %4044  ;;  %v3806_v58 = vld [vmem:[#allocation3 + $0x121] sm:$0xff] }
 0x489   : > { %4139 = vst.msk [vmem:[#allocation4 + $0x8] sm:$0xff] %vm1976_vm10, %v4045_v42  ;;  %3493 = vrot.lane.b32.xlu1 %v6797_v9, %s5111_s12  ;;  %v3615_v50 = vld [vmem:[#allocation3 + $0x128] sm:$0xff] }
 0x48a   : > { %3303 = vrot.lane.b32.xlu0 %v3799_v57, %s5110_s11 }
 0x48b   : > { %v3665_v61 = vpop.permute.xlu1 %3664 }
 0x48c   : > { %3757 = vst.msk [vmem:[#allocation4 + $0x18] sm:$0xff] %vm1590_vm8, %v3665_v61  ;;  %v3663_v62 = vpop.permute.xlu0 %3662 }
 0x48d   : > { %3756 = vst.msk [vmem:[#allocation4 + $0x10] sm:$0xff] %vm1590_vm8, %v3663_v62  ;;  %3495 = vrot.lane.b32.xlu1 %v6793_v11, %s5111_s12 }
 0x48e   : > { %4068 = vrot.lane.b32.xlu0 %v6793_v11, %s5114_s28  ;;  %v3800_v11 = vld [vmem:[#allocation3 + $0xd9] sm:$0xff] }
 0x48f   : > { %v3282_v52 = vpop.permute.xlu1 %3281 }
 0x490   : > { %3373 = vst.msk [vmem:[#allocation4 + $0x20] sm:$0xff] %vm1203_vm5, %v3282_v52  ;;  %v3855_v55 = vpop.permute.xlu0 %3854  ;;  %v4171_v43 = vld [vmem:[#allocation4 + $0x8] sm:$0xff] }
 0x491   : > { %3948 = vst.msk [vmem:[#allocation4 + $0x10] sm:$0xff] %vm1783_vm9, %v3855_v55  ;;  %3113 = vrot.lane.b32.xlu1 %v6652_v19, %s5109_s10  ;;  %5018 = vmatmul.mubr.msk.f32.vlgmr.msra.gmra.mrb[0].mxu1 %vm2046_vm11, %v4171_v43  ;;  %v3998_v55 = vld [vmem:[#allocation3 + $0x122] sm:$0xff] }
 0x492   : > { %3686 = vrot.lane.b32.xlu0 %v6652_v19, %s5112_s13  ;;  %v3807_v43 = vld [vmem:[#allocation3 + $0x129] sm:$0xff] }
 0x493   : > { %v4047_v9 = vpop.permute.xlu1 %4046 }
 0x494   : > { %4140 = vst.msk [vmem:[#allocation4 + $0x10] sm:$0xff] %vm1976_vm10, %v4047_v9  ;;  %v3857_v54 = vpop.permute.xlu0 %3856 }
 0x495   : > { %3949 = vst.msk [vmem:[#allocation4 + $0x18] sm:$0xff] %vm1783_vm9, %v3857_v54  ;;  %3878 = vrot.lane.b32.xlu1 %v3800_v11, %s5113_s22 }
 0x496   : > { %3688 = vrot.lane.b32.xlu0 %v6646_v27, %s5112_s13 }
 0x497   : > { %v3474_v49 = vpop.permute.xlu1 %3473 }
 0x498   : > { %3565 = vst.msk [vmem:[#allocation4 + $0x20] sm:$0xff] %vm1396_vm6, %v3474_v49  ;;  %v3284_v24 = vpop.permute.xlu0 %3283 }
 0x499   : > { %3374 = vst.msk [vmem:[#allocation4 + $0x28] sm:$0xff] %vm1203_vm5, %v3284_v24  ;;  %3305 = vrot.lane.b32.xlu1 %v3800_v11, %s5110_s11 }
 0x49a   : > { %3115 = vrot.lane.b32.xlu0 %v6646_v27, %s5109_s10 }
 0x49b   : > { %v3476_v19 = vpop.permute.xlu1 %3475  ;;  %v4172_v38 = vld [vmem:[#allocation4 + $0x10] sm:$0xff] }
 0x49c   : > { %3566 = vst.msk [vmem:[#allocation4 + $0x28] sm:$0xff] %vm1396_vm6, %v3476_v19  ;;  %5020 = vmatprep.mubr.msk.f32.mxu1 %vm2046_vm11, %v4172_v38  ;;  %v4049_v26 = vpop.permute.xlu0 %4048  ;;  %v3424_v19 = vld [vmem:[#allocation3 + $0x12a] sm:$0xff] }
 0x49d   : > { %4141 = vst.msk [vmem:[#allocation4 + $0x18] sm:$0xff] %vm1976_vm10, %v4049_v26  ;;  %4070 = vrot.lane.b32.xlu1 %v6807_v16, %s5114_s28 }
 0x49e   : > { %3880 = vrot.lane.b32.xlu0 %v3801_v34, %s5113_s22 }
 0x49f   : > { %v3669_v29 = vpop.permute.xlu1 %3668 }
 0x4a0   : > { %3759 = vst.msk [vmem:[#allocation4 + $0x28] sm:$0xff] %vm1590_vm8, %v3669_v29  ;;  %v3667_v47 = vpop.permute.xlu0 %3666 }
 0x4a1   : > { %3758 = vst.msk [vmem:[#allocation4 + $0x20] sm:$0xff] %vm1590_vm8, %v3667_v47  ;;  %3497 = vrot.lane.b32.xlu1 %v6807_v16, %s5111_s12 }
 0x4a2   : > { %3307 = vrot.lane.b32.xlu0 %v3801_v34, %s5110_s11  ;;  %v3041_v34 = vld [vmem:[#allocation3 + $0x138] sm:$0xff] }
 0x4a3   : > { %v3286_v27 = vpop.permute.xlu1 %3285 }
 0x4a4   : > { %3375 = vst.msk [vmem:[#allocation4 + $0x30] sm:$0xff] %vm1203_vm5, %v3286_v27  ;;  %v3859_v5 = vpop.permute.xlu0 %3858  ;;  %v4173_v7 = vld [vmem:[#allocation4 + $0x18] sm:$0xff]  ;;  %v3808_v27 = vld [vmem:[#allocation3 + $0x139] sm:$0xff] }
 0x4a5   : > { %3950 = vst.msk [vmem:[#allocation4 + $0x20] sm:$0xff] %vm1783_vm9, %v3859_v5  ;;  %3499 = vrot.lane.b32.xlu1 %v6802_v30, %s5111_s12  ;;  %5021 = vmatmul.mubr.msk.f32.gmra.mrb[2].mxu1 %vm2046_vm11, %v4173_v7  ;;  %v3617_v7 = vld [vmem:[#allocation3 + $0x140] sm:$0xff] }
 0x4a6   : > { %4072 = vrot.lane.b32.xlu0 %v6802_v30, %s5114_s28 }
 0x4a7   : > { %v4051_v6 = vpop.permute.xlu1 %4050 }
 0x4a8   : > { %4142 = vst.msk [vmem:[#allocation4 + $0x20] sm:$0xff] %vm1976_vm10, %v4051_v6  ;;  %v3861_v16 = vpop.permute.xlu0 %3860 }
 0x4a9   : > { %3951 = vst.msk [vmem:[#allocation4 + $0x28] sm:$0xff] %vm1783_vm9, %v3861_v16  ;;  %3117 = vrot.lane.b32.xlu1 %v6668_v63, %s5109_s10 }
 0x4aa   : > { %3690 = vrot.lane.b32.xlu0 %v6668_v63, %s5112_s13 }
 0x4ab   : > { %v3478_v2 = vpop.permute.xlu1 %3477 }
 0x4ac   : > { %3567 = vst.msk [vmem:[#allocation4 + $0x30] sm:$0xff] %vm1396_vm6, %v3478_v2  ;;  %v3288_v1 = vpop.permute.xlu0 %3287 }
 0x4ad   : > { %3376 = vst.msk [vmem:[#allocation4 + $0x38] sm:$0xff] %vm1203_vm5, %v3288_v1  ;;  %3882 = vrot.lane.b32.xlu1 %v3802_v3, %s5113_s22 }
 0x4ae   : > { %3692 = vrot.lane.b32.xlu0 %v6662_v53, %s5112_s13 }
 0x4af   : > { %v3480_v30 = vpop.permute.xlu1 %3479  ;;  %v4174_v23 = vld [vmem:[#allocation4 + $0x20] sm:$0xff] }
 0x4b0   : > { %3568 = vst.msk [vmem:[#allocation4 + $0x38] sm:$0xff] %vm1396_vm6, %v3480_v30  ;;  %5023 = vmatprep.mubr.msk.f32.mxu1 %vm2046_vm11, %v4174_v23  ;;  %v4053_v51 = vpop.permute.xlu0 %4052  ;;  %v3809_v30 = vld [vmem:[#allocation3 + $0x141] sm:$0xff] }
 0x4b1   : > { %4143 = vst.msk [vmem:[#allocation4 + $0x28] sm:$0xff] %vm1976_vm10, %v4053_v51  ;;  %3309 = vrot.lane.b32.xlu1 %v3802_v3, %s5110_s11  ;;  %v4000_v3 = vld [vmem:[#allocation3 + $0x13a] sm:$0xff] }
 0x4b2   : > { %3119 = vrot.lane.b32.xlu0 %v6662_v53, %s5109_s10 }
 0x4b3   : > { %v3673_v63 = vpop.permute.xlu1 %3672 }
 0x4b4   : > { %3761 = vst.msk [vmem:[#allocation4 + $0x38] sm:$0xff] %vm1590_vm8, %v3673_v63  ;;  %v3671_v28 = vpop.permute.xlu0 %3670 }
 0x4b5   : > { %3760 = vst.msk [vmem:[#allocation4 + $0x30] sm:$0xff] %vm1590_vm8, %v3671_v28  ;;  %4074 = vrot.lane.b32.xlu1 %v3994_v56, %s5114_s28 }
 0x4b6   : > { %3884 = vrot.lane.b32.xlu0 %v3803_v25, %s5113_s22 }
 0x4b7   : > { %v3290_v44 = vpop.permute.xlu1 %3289 }
 0x4b8   : > { %3377 = vst.msk [vmem:[#allocation4 + $0x40] sm:$0xff] %vm1203_vm5, %v3290_v44  ;;  %v3863_v40 = vpop.permute.xlu0 %3862  ;;  %v4175_v41 = vld [vmem:[#allocation4 + $0x28] sm:$0xff] }
 0x4b9   : > { %3952 = vst.msk [vmem:[#allocation4 + $0x30] sm:$0xff] %vm1783_vm9, %v3863_v40  ;;  %3501 = vrot.lane.b32.xlu1 %v3994_v56, %s5111_s12  ;;  %5024 = vmatmul.mubr.msk.f32.gmra.mrb[4].mxu1 %vm2046_vm11, %v4175_v41  ;;  %v3043_v41 = vld [vmem:[#allocation3 + $0x150] sm:$0xff] }
 0x4ba   : > { %3311 = vrot.lane.b32.xlu0 %v3803_v25, %s5110_s11  ;;  %v3426_v25 = vld [vmem:[#allocation3 + $0x142] sm:$0xff] }
 0x4bb   : > { %v4055_v53 = vpop.permute.xlu1 %4054 }
 0x4bc   : > { %4144 = vst.msk [vmem:[#allocation4 + $0x30] sm:$0xff] %vm1976_vm10, %v4055_v53  ;;  %v3865_v15 = vpop.permute.xlu0 %3864 }
 0x4bd   : > { %3953 = vst.msk [vmem:[#allocation4 + $0x38] sm:$0xff] %vm1783_vm9, %v3865_v15  ;;  %3503 = vrot.lane.b32.xlu1 %v3420_v36, %s5111_s12 }
 0x4be   : > { %4076 = vrot.lane.b32.xlu0 %v3420_v36, %s5114_s28 }
 0x4bf   : > { %v3482_v12 = vpop.permute.xlu1 %3481 }
 0x4c0   : > { %3569 = vst.msk [vmem:[#allocation4 + $0x40] sm:$0xff] %vm1396_vm6, %v3482_v12  ;;  %v3292_v22 = vpop.permute.xlu0 %3291  ;;  %v3810_v12 = vld [vmem:[#allocation3 + $0x151] sm:$0xff] }
 0x4c1   : > { %3378 = vst.msk [vmem:[#allocation4 + $0x48] sm:$0xff] %vm1203_vm5, %v3292_v22  ;;  %3121 = vrot.lane.b32.xlu1 %v6684_v59, %s5109_s10  ;;  %v3619_v22 = vld [vmem:[#allocation3 + $0x158] sm:$0xff] }
 0x4c2   : > { %3694 = vrot.lane.b32.xlu0 %v6684_v59, %s5112_s13 }
 0x4c3   : > { %v3484_v46 = vpop.permute.xlu1 %3483  ;;  %v4176_v0 = vld [vmem:[#allocation4 + $0x30] sm:$0xff] }
 0x4c4   : > { %3570 = vst.msk [vmem:[#allocation4 + $0x48] sm:$0xff] %vm1396_vm6, %v3484_v46  ;;  %5026 = vmatprep.mubr.msk.f32.mxu1 %vm2046_vm11, %v4176_v0  ;;  %v4057_v33 = vpop.permute.xlu0 %4056 }
 0x4c5   : > { %4145 = vst.msk [vmem:[#allocation4 + $0x38] sm:$0xff] %vm1976_vm10, %v4057_v33  ;;  %3886 = vrot.lane.b32.xlu1 %v3804_v48, %s5113_s22 }
 0x4c6   : > { %3696 = vrot.lane.b32.xlu0 %v6678_v37, %s5112_s13 }
 0x4c7   : > { %v3677_v60 = vpop.permute.xlu1 %3676 }
 0x4c8   : > { %3763 = vst.msk [vmem:[#allocation4 + $0x48] sm:$0xff] %vm1590_vm8, %v3677_v60  ;;  %v3675_v45 = vpop.permute.xlu0 %3674  ;;  %v4002_v60 = vld [vmem:[#allocation3 + $0x152] sm:$0xff] }
 0x4c9   : > { %3762 = vst.msk [vmem:[#allocation4 + $0x40] sm:$0xff] %vm1590_vm8, %v3675_v45  ;;  %3313 = vrot.lane.b32.xlu1 %v3804_v48, %s5110_s11  ;;  %v3811_v45 = vld [vmem:[#allocation3 + $0x159] sm:$0xff] }
 0x4ca   : > { %3123 = vrot.lane.b32.xlu0 %v6678_v37, %s5109_s10 }
 0x4cb   : > { %v3294_v59 = vpop.permute.xlu1 %3293 }
 0x4cc   : > { %3379 = vst.msk [vmem:[#allocation4 + $0x50] sm:$0xff] %vm1203_vm5, %v3294_v59  ;;  %v3867_v13 = vpop.permute.xlu0 %3866  ;;  %v4177_v20 = vld [vmem:[#allocation4 + $0x38] sm:$0xff] }
 0x4cd   : > { %3954 = vst.msk [vmem:[#allocation4 + $0x40] sm:$0xff] %vm1783_vm9, %v3867_v13  ;;  %4078 = vrot.lane.b32.xlu1 %v3996_v17, %s5114_s28  ;;  %5027 = vmatmul.mubr.msk.f32.gmra.mrb[6].mxu1 %vm2046_vm11, %v4177_v20 }
 0x4ce   : > { %3888 = vrot.lane.b32.xlu0 %v3805_v10, %s5113_s22 }
 0x4cf   : > { %v4059_v35 = vpop.permute.xlu1 %4058 }
 0x4d0   : > { %4146 = vst.msk [vmem:[#allocation4 + $0x40] sm:$0xff] %vm1976_vm10, %v4059_v35  ;;  %v3869_v32 = vpop.permute.xlu0 %3868  ;;  %v3428_v35 = vld [vmem:[#allocation3 + $0x15a] sm:$0xff] }
 0x4d1   : > { %3955 = vst.msk [vmem:[#allocation4 + $0x48] sm:$0xff] %vm1783_vm9, %v3869_v32  ;;  %3505 = vrot.lane.b32.xlu1 %v3996_v17, %s5111_s12 }
 0x4d2   : > { %3315 = vrot.lane.b32.xlu0 %v3805_v10, %s5110_s11 }
 0x4d3   : > { %v3486_v37 = vpop.permute.xlu1 %3485 }
 0x4d4   : > { %3571 = vst.msk [vmem:[#allocation4 + $0x50] sm:$0xff] %vm1396_vm6, %v3486_v37  ;;  %v3296_v21 = vpop.permute.xlu0 %3295 }
 0x4d5   : > { %3380 = vst.msk [vmem:[#allocation4 + $0x58] sm:$0xff] %vm1203_vm5, %v3296_v21  ;;  %3507 = vrot.lane.b32.xlu1 %v3422_v8, %s5111_s12  ;;  %v3045_v21 = vld [vmem:[#allocation3 + $0x168] sm:$0xff] }
 0x4d6   : > { %4080 = vrot.lane.b32.xlu0 %v3422_v8, %s5114_s28 }
 0x4d7   : > { %v3488_v39 = vpop.permute.xlu1 %3487  ;;  %v4178_v14 = vld [vmem:[#allocation4 + $0x40] sm:$0xff] }
 0x4d8   : > { %3572 = vst.msk [vmem:[#allocation4 + $0x58] sm:$0xff] %vm1396_vm6, %v3488_v39  ;;  %5029 = vmatprep.mubr.msk.f32.mxu1 %vm2046_vm11, %v4178_v14  ;;  %v4061_v4 = vpop.permute.xlu0 %4060 }
 0x4d9   : > { %4147 = vst.msk [vmem:[#allocation4 + $0x48] sm:$0xff] %vm1976_vm10, %v4061_v4  ;;  %3125 = vrot.lane.b32.xlu1 %v6697_v31, %s5109_s10  ;;  %v3812_v4 = vld [vmem:[#allocation3 + $0x169] sm:$0xff] }
 0x4da   : > { %3698 = vrot.lane.b32.xlu0 %v6697_v31, %s5112_s13 }
 0x4db   : > { %v3681_v18 = vpop.permute.xlu1 %3680 }
 0x4dc   : > { %3765 = vst.msk [vmem:[#allocation4 + $0x58] sm:$0xff] %vm1590_vm8, %v3681_v18  ;;  %v3679_v57 = vpop.permute.xlu0 %3678  ;;  %v3621_v18 = vld [vmem:[#allocation3 + $0x170] sm:$0xff] }
 0x4dd   : > { %3764 = vst.msk [vmem:[#allocation4 + $0x50] sm:$0xff] %vm1590_vm8, %v3679_v57  ;;  %3890 = vrot.lane.b32.xlu1 %v3806_v58, %s5113_s22 }
 0x4de   : > { %3700 = vrot.lane.b32.xlu0 %v3615_v50, %s5112_s13 }
 0x4df   : > { %v3298_v42 = vpop.permute.xlu1 %3297 }
 0x4e0   : > { %3381 = vst.msk [vmem:[#allocation4 + $0x60] sm:$0xff] %vm1203_vm5, %v3298_v42  ;;  %v3871_v61 = vpop.permute.xlu0 %3870  ;;  %v4179_v62 = vld [vmem:[#allocation4 + $0x48] sm:$0xff] }
 0x4e1   : > { %3956 = vst.msk [vmem:[#allocation4 + $0x50] sm:$0xff] %vm1783_vm9, %v3871_v61  ;;  %3317 = vrot.lane.b32.xlu1 %v3806_v58, %s5110_s11  ;;  %5030 = vmatmul.mubr.msk.f32.gmra.mrb[8].mxu1 %vm2046_vm11, %v4179_v62  ;;  %v4004_v61 = vld [vmem:[#allocation3 + $0x16a] sm:$0xff] }
 0x4e2   : > { %3127 = vrot.lane.b32.xlu0 %v3615_v50, %s5109_s10  ;;  %v3813_v62 = vld [vmem:[#allocation3 + $0x171] sm:$0xff] }
 0x4e3   : > { %v4063_v31 = vpop.permute.xlu1 %4062 }
 0x4e4   : > { %4148 = vst.msk [vmem:[#allocation4 + $0x50] sm:$0xff] %vm1976_vm10, %v4063_v31  ;;  %v3873_v52 = vpop.permute.xlu0 %3872 }
 0x4e5   : > { %3957 = vst.msk [vmem:[#allocation4 + $0x58] sm:$0xff] %vm1783_vm9, %v3873_v52  ;;  %4082 = vrot.lane.b32.xlu1 %v3998_v55, %s5114_s28 }
 0x4e6   : > { %3892 = vrot.lane.b32.xlu0 %v3807_v43, %s5113_s22 }
 0x4e7   : > { %v3490_v9 = vpop.permute.xlu1 %3489 }
 0x4e8   : > { %3573 = vst.msk [vmem:[#allocation4 + $0x60] sm:$0xff] %vm1396_vm6, %v3490_v9  ;;  %v3300_v54 = vpop.permute.xlu0 %3299 }
 0x4e9   : > { %3382 = vst.msk [vmem:[#allocation4 + $0x68] sm:$0xff] %vm1203_vm5, %v3300_v54  ;;  %3509 = vrot.lane.b32.xlu1 %v3998_v55, %s5111_s12  ;;  %v3430_v54 = vld [vmem:[#allocation3 + $0x172] sm:$0xff] }
 0x4ea   : > { %3319 = vrot.lane.b32.xlu0 %v3807_v43, %s5110_s11 }
 0x4eb   : > { %v3492_v11 = vpop.permute.xlu1 %3491  ;;  %v4180_v49 = vld [vmem:[#allocation4 + $0x50] sm:$0xff] }
 0x4ec   : > { %3574 = vst.msk [vmem:[#allocation4 + $0x68] sm:$0xff] %vm1396_vm6, %v3492_v11  ;;  %5032 = vmatprep.mubr.msk.f32.mxu1 %vm2046_vm11, %v4180_v49  ;;  %v4065_v24 = vpop.permute.xlu0 %4064 }
 0x4ed   : > { %4149 = vst.msk [vmem:[#allocation4 + $0x58] sm:$0xff] %vm1976_vm10, %v4065_v24  ;;  %3511 = vrot.lane.b32.xlu1 %v3424_v19, %s5111_s12 }
 0x4ee   : > { %4084 = vrot.lane.b32.xlu0 %v3424_v19, %s5114_s28  ;;  %v3047_v19 = vld [vmem:[#allocation3 + $0x180] sm:$0xff] }
 0x4ef   : > { %v3685_v38 = vpop.permute.xlu1 %3684 }
 0x4f0   : > { %3767 = vst.msk [vmem:[#allocation4 + $0x68] sm:$0xff] %vm1590_vm8, %v3685_v38  ;;  %v3683_v26 = vpop.permute.xlu0 %3682 }
 0x4f1   : > { %3766 = vst.msk [vmem:[#allocation4 + $0x60] sm:$0xff] %vm1590_vm8, %v3683_v26  ;;  %3129 = vrot.lane.b32.xlu1 %v3041_v34, %s5109_s10 }
 0x4f2   : > { %3702 = vrot.lane.b32.xlu0 %v3041_v34, %s5112_s13  ;;  %v3814_v34 = vld [vmem:[#allocation3 + $0x181] sm:$0xff] }
 0x4f3   : > { %v3302_v29 = vpop.permute.xlu1 %3301 }
 0x4f4   : > { %3383 = vst.msk [vmem:[#allocation4 + $0x70] sm:$0xff] %vm1203_vm5, %v3302_v29  ;;  %v3875_v47 = vpop.permute.xlu0 %3874  ;;  %v4181_v5 = vld [vmem:[#allocation4 + $0x58] sm:$0xff] }
 0x4f5   : > { %3958 = vst.msk [vmem:[#allocation4 + $0x60] sm:$0xff] %vm1783_vm9, %v3875_v47  ;;  %3894 = vrot.lane.b32.xlu1 %v3808_v27, %s5113_s22  ;;  %5033 = vmatmul.mubr.msk.f32.gmra.mrb[10].mxu1 %vm2046_vm11, %v4181_v5  ;;  %v3623_v29 = vld [vmem:[#allocation3 + $0x188] sm:$0xff] }
 0x4f6   : > { %3704 = vrot.lane.b32.xlu0 %v3617_v7, %s5112_s13 }
 0x4f7   : > { %v4067_v6 = vpop.permute.xlu1 %4066 }
 0x4f8   : > { %4150 = vst.msk [vmem:[#allocation4 + $0x60] sm:$0xff] %vm1976_vm10, %v4067_v6  ;;  %v3877_v16 = vpop.permute.xlu0 %3876  ;;  %v4006_v6 = vld [vmem:[#allocation3 + $0x182] sm:$0xff] }
 0x4f9   : > { %3959 = vst.msk [vmem:[#allocation4 + $0x68] sm:$0xff] %vm1783_vm9, %v3877_v16  ;;  %3321 = vrot.lane.b32.xlu1 %v3808_v27, %s5110_s11  ;;  %v3815_v16 = vld [vmem:[#allocation3 + $0x189] sm:$0xff] }
 0x4fa   : > { %3131 = vrot.lane.b32.xlu0 %v3617_v7, %s5109_s10 }
 0x4fb   : > { %v3494_v2 = vpop.permute.xlu1 %3493 }
 0x4fc   : > { %3575 = vst.msk [vmem:[#allocation4 + $0x70] sm:$0xff] %vm1396_vm6, %v3494_v2  ;;  %v3304_v1 = vpop.permute.xlu0 %3303 }
 0x4fd   : > { %3384 = vst.msk [vmem:[#allocation4 + $0x78] sm:$0xff] %vm1203_vm5, %v3304_v1  ;;  %4086 = vrot.lane.b32.xlu1 %v4000_v3, %s5114_s28 }
 0x4fe   : > { %3896 = vrot.lane.b32.xlu0 %v3809_v30, %s5113_s22 }
 0x4ff   : > { %v3496_v23 = vpop.permute.xlu1 %3495  ;;  %v4182_v51 = vld [vmem:[#allocation4 + $0x60] sm:$0xff] }
 0x500   : > { %3576 = vst.msk [vmem:[#allocation4 + $0x78] sm:$0xff] %vm1396_vm6, %v3496_v23  ;;  %5035 = vmatprep.mubr.msk.f32.mxu1 %vm2046_vm11, %v4182_v51  ;;  %v4069_v63 = vpop.permute.xlu0 %4068  ;;  %v3432_v51 = vld [vmem:[#allocation3 + $0x18a] sm:$0xff] }
 0x501   : > { %4151 = vst.msk [vmem:[#allocation4 + $0x68] sm:$0xff] %vm1976_vm10, %v4069_v63  ;;  %3513 = vrot.lane.b32.xlu1 %v4000_v3, %s5111_s12  ;;  %v3625_v63 = vld [vmem:[#allocation3 + $0x1a0] sm:$0xff] }
 0x502   : > { %3323 = vrot.lane.b32.xlu0 %v3809_v30, %s5110_s11 }
 0x503   : > { %v3114_v28 = vpop.permute.xlu1 %3113 }
 0x504   : > { %3193 = vst.msk [vmem:[#allocation4 + $0x80] sm:$0xff] %vm1010_vm4, %v3114_v28  ;;  %v3687_v56 = vpop.permute.xlu0 %3686 }
 0x505   : > { %3768 = vst.msk [vmem:[#allocation4 + $0x70] sm:$0xff] %vm1590_vm8, %v3687_v56  ;;  %3515 = vrot.lane.b32.xlu1 %v3426_v25, %s5111_s12  ;;  %v3624_v56 = vld [vmem:[#allocation3 + $0x198] sm:$0xff] }
 0x506   : > { %4088 = vrot.lane.b32.xlu0 %v3426_v25, %s5114_s28 }
 0x507   : > { %v3879_v44 = vpop.permute.xlu1 %3878 }
 0x508   : > { %3960 = vst.msk [vmem:[#allocation4 + $0x70] sm:$0xff] %vm1783_vm9, %v3879_v44  ;;  %v3689_v40 = vpop.permute.xlu0 %3688  ;;  %v4183_v53 = vld [vmem:[#allocation4 + $0x68] sm:$0xff] }
 0x509   : > { %3769 = vst.msk [vmem:[#allocation4 + $0x78] sm:$0xff] %vm1590_vm8, %v3689_v40  ;;  %3133 = vrot.lane.b32.xlu1 %v3043_v41, %s5109_s10  ;;  %5036 = vmatmul.mubr.msk.f32.gmra.mrb[12].mxu1 %vm2046_vm11, %v4183_v53  ;;  %v3817_v40 = vld [vmem:[#allocation3 + $0x1a1] sm:$0xff]  ;;  %v3816_v53 = vld [vmem:[#allocation3 + $0x199] sm:$0xff] }
 0x50a   : > { %3706 = vrot.lane.b32.xlu0 %v3043_v41, %s5112_s13 }
 0x50b   : > { %v3306_v15 = vpop.permute.xlu1 %3305 }
 0x50c   : > { %3385 = vst.msk [vmem:[#allocation4 + $0x80] sm:$0xff] %vm1203_vm5, %v3306_v15  ;;  %v3116_v36 = vpop.permute.xlu0 %3115 }
 0x50d   : > { %3194 = vst.msk [vmem:[#allocation4 + $0x88] sm:$0xff] %vm1010_vm4, %v3116_v36  ;;  %3898 = vrot.lane.b32.xlu1 %v3810_v12, %s5113_s22  ;;  %v4009_v36 = vld [vmem:[#allocation3 + $0x1a2] sm:$0xff] }
 0x50e   : > { %3708 = vrot.lane.b32.xlu0 %v3619_v22, %s5112_s13 }
 0x50f   : > { %v4071_v46 = vpop.permute.xlu1 %4070 }
 0x510   : > { %4152 = vst.msk [vmem:[#allocation4 + $0x70] sm:$0xff] %vm1976_vm10, %v4071_v46  ;;  %v3881_v0 = vpop.permute.xlu0 %3880 }
 0x511   : > { %3961 = vst.msk [vmem:[#allocation4 + $0x78] sm:$0xff] %vm1783_vm9, %v3881_v0  ;;  %3325 = vrot.lane.b32.xlu1 %v3810_v12, %s5110_s11 }
 0x512   : > { %3135 = vrot.lane.b32.xlu0 %v3619_v22, %s5109_s10  ;;  %v4008_v22 = vld [vmem:[#allocation3 + $0x19a] sm:$0xff] }
 0x513   : > { %v3498_v33 = vpop.permute.xlu1 %3497 }
 0x514   : > { %3577 = vst.msk [vmem:[#allocation4 + $0x80] sm:$0xff] %vm1396_vm6, %v3498_v33  ;;  %v3308_v48 = vpop.permute.xlu0 %3307 }
 0x515   : > { %3386 = vst.msk [vmem:[#allocation4 + $0x88] sm:$0xff] %vm1203_vm5, %v3308_v48  ;;  %4090 = vrot.lane.b32.xlu1 %v4002_v60, %s5114_s28 }
 0x516   : > { %3900 = vrot.lane.b32.xlu0 %v3811_v45, %s5113_s22 }
 0x517   : > { %v3500_v59 = vpop.permute.xlu1 %3499  ;;  %v4184_v13 = vld [vmem:[#allocation4 + $0x70] sm:$0xff] }
 0x518   : > { %3578 = vst.msk [vmem:[#allocation4 + $0x88] sm:$0xff] %vm1396_vm6, %v3500_v59  ;;  %5038 = vmatprep.mubr.msk.f32.mxu1 %vm2046_vm11, %v4184_v13  ;;  %v4073_v17 = vpop.permute.xlu0 %4072  ;;  %v7345_v59 = vld [vmem:[%s7592_s5] ss:$0 sm:$0xff] }
 0x519   : > { %4153 = vst.msk [vmem:[#allocation4 + $0x78] sm:$0xff] %vm1976_vm10, %v4073_v17  ;;  %3517 = vrot.lane.b32.xlu1 %v4002_v60, %s5111_s12 }
 0x51a   : > { %3327 = vrot.lane.b32.xlu0 %v3811_v45, %s5110_s11 }
 0x51b   : > { %v3118_v20 = vpop.permute.xlu1 %3117 }
 0x51c   : > { %3195 = vst.msk [vmem:[#allocation4 + $0x90] sm:$0xff] %vm1010_vm4, %v3118_v20  ;;  %v3691_v10 = vpop.permute.xlu0 %3690  ;;  %v7351_v20 = vld [vmem:[%s7593_s6] ss:$0 sm:$0xff] }
 0x51d   : > { %3770 = vst.msk [vmem:[#allocation4 + $0x80] sm:$0xff] %vm1590_vm8, %v3691_v10  ;;  %3519 = vrot.lane.b32.xlu1 %v3428_v35, %s5111_s12 }
 0x51e   : > { %4092 = vrot.lane.b32.xlu0 %v3428_v35, %s5114_s28 }
 0x51f   : > { %v3883_v32 = vpop.permute.xlu1 %3882 }
 0x520   : > { %3962 = vst.msk [vmem:[#allocation4 + $0x80] sm:$0xff] %vm1783_vm9, %v3883_v32  ;;  %v3693_v37 = vpop.permute.xlu0 %3692  ;;  %v4185_v8 = vld [vmem:[#allocation4 + $0x78] sm:$0xff] }
 0x521   : > { %3771 = vst.msk [vmem:[#allocation4 + $0x88] sm:$0xff] %vm1590_vm8, %v3693_v37  ;;  %3137 = vrot.lane.b32.xlu1 %v3045_v21, %s5109_s10  ;;  %5039 = vmatmul.mubr.msk.f32.gmra.mrb[14].mxu1 %vm2046_vm11, %v4185_v8  ;;  %v4610_v37 = vld [vmem:[%s5397_s30 + $0x8] sm:$0xff] }
 0x522   : > { %3710 = vrot.lane.b32.xlu0 %v3045_v21, %s5112_s13 }
 0x523   : > { %v3310_v39 = vpop.permute.xlu1 %3309 }
 0x524   : > { %3387 = vst.msk [vmem:[#allocation4 + $0x90] sm:$0xff] %vm1203_vm5, %v3310_v39  ;;  %v3120_v14 = vpop.permute.xlu0 %3119  ;;  %v4609_v39 = vld [vmem:[%s5397_s30] sm:$0xff] }
 0x525   : > { %3196 = vst.msk [vmem:[#allocation4 + $0x98] sm:$0xff] %vm1010_vm4, %v3120_v14  ;;  %3902 = vrot.lane.b32.xlu1 %v3812_v4, %s5113_s22 }
 0x526   : > { %3712 = vrot.lane.b32.xlu0 %v3621_v18, %s5112_s13 }
 0x527   : > { %v4075_v57 = vpop.permute.xlu1 %4074 }
 0x528   : > { %4154 = vst.msk [vmem:[#allocation4 + $0x80] sm:$0xff] %vm1976_vm10, %v4075_v57  ;;  %v3885_v58 = vpop.permute.xlu0 %3884 }
 0x529   : > { %3963 = vst.msk [vmem:[#allocation4 + $0x88] sm:$0xff] %vm1783_vm9, %v3885_v58  ;;  %3329 = vrot.lane.b32.xlu1 %v3812_v4, %s5110_s11 }
 0x52a   : > { %3139 = vrot.lane.b32.xlu0 %v3621_v18, %s5109_s10 }
 0x52b   : > { %v3502_v50 = vpop.permute.xlu1 %3501 }
 0x52c   : > { %3579 = vst.msk [vmem:[#allocation4 + $0x90] sm:$0xff] %vm1396_vm6, %v3502_v50  ;;  %v3312_v42 = vpop.permute.xlu0 %3311 }
 0x52d   : > { %3388 = vst.msk [vmem:[#allocation4 + $0x98] sm:$0xff] %vm1203_vm5, %v3312_v42  ;;  %4094 = vrot.lane.b32.xlu1 %v4004_v61, %s5114_s28 }
 0x52e   : > { %3904 = vrot.lane.b32.xlu0 %v3813_v62, %s5113_s22 }
 0x52f   : > { %v3504_v31 = vpop.permute.xlu1 %3503  ;;  %v4186_v52 = vld [vmem:[#allocation4 + $0x80] sm:$0xff] }
 0x530   : > { %3580 = vst.msk [vmem:[#allocation4 + $0x98] sm:$0xff] %vm1396_vm6, %v3504_v31  ;;  %5041 = vmatprep.mubr.msk.f32.mxu1 %vm2046_vm11, %v4186_v52  ;;  %v4077_v55 = vpop.permute.xlu0 %4076 }
 0x531   : > { %4155 = vst.msk [vmem:[#allocation4 + $0x88] sm:$0xff] %vm1976_vm10, %v4077_v55  ;;  %3521 = vrot.lane.b32.xlu1 %v4004_v61, %s5111_s12 }
 0x532   : > { %3331 = vrot.lane.b32.xlu0 %v3813_v62, %s5110_s11 }
 0x533   : > { %v3122_v43 = vpop.permute.xlu1 %3121 }
 0x534   : > { %3197 = vst.msk [vmem:[#allocation4 + $0xa0] sm:$0xff] %vm1010_vm4, %v3122_v43  ;;  %v3695_v9 = vpop.permute.xlu0 %3694 }
 0x535   : > { %3772 = vst.msk [vmem:[#allocation4 + $0x90] sm:$0xff] %vm1590_vm8, %v3695_v9  ;;  %3523 = vrot.lane.b32.xlu1 %v3430_v54, %s5111_s12 }
 0x536   : > { %4096 = vrot.lane.b32.xlu0 %v3430_v54, %s5114_s28 }
 0x537   : > { %v3887_v11 = vpop.permute.xlu1 %3886 }
 0x538   : > { %3964 = vst.msk [vmem:[#allocation4 + $0x90] sm:$0xff] %vm1783_vm9, %v3887_v11  ;;  %v3697_v49 = vpop.permute.xlu0 %3696  ;;  %v4187_v24 = vld [vmem:[#allocation4 + $0x88] sm:$0xff] }
 0x539   : > { %3773 = vst.msk [vmem:[#allocation4 + $0x98] sm:$0xff] %vm1590_vm8, %v3697_v49  ;;  %5042 = vmatmul.mubr.msk.f32.gmra.mrb[16].mxu1 %vm2046_vm11, %v4187_v24  ;;  %3141 = vrot.lane.b32.xlu1 %v3047_v19, %s5109_s10 }
 0x53a   : > { %3714 = vrot.lane.b32.xlu0 %v3047_v19, %s5112_s13 }
 0x53b   : > { %v3314_v38 = vpop.permute.xlu1 %3313 }
 0x53c   : > { %3389 = vst.msk [vmem:[#allocation4 + $0xa0] sm:$0xff] %vm1203_vm5, %v3314_v38  ;;  %v3124_v26 = vpop.permute.xlu0 %3123 }
 0x53d   : > { %3198 = vst.msk [vmem:[#allocation4 + $0xa8] sm:$0xff] %vm1010_vm4, %v3124_v26  ;;  %3906 = vrot.lane.b32.xlu1 %v3814_v34, %s5113_s22  ;;  %v4612_v26 = vld [vmem:[%s5397_s30 + $0x18] sm:$0xff] }
 0x53e   : > { %3716 = vrot.lane.b32.xlu0 %v3623_v29, %s5112_s13 }
 0x53f   : > { %v4079_v47 = vpop.permute.xlu1 %4078 }
 0x540   : > { %4156 = vst.msk [vmem:[#allocation4 + $0x90] sm:$0xff] %vm1976_vm10, %v4079_v47  ;;  %v3889_v27 = vpop.permute.xlu0 %3888  ;;  %v4611_v47 = vld [vmem:[%s5397_s30 + $0x10] sm:$0xff] }
 0x541   : > { %3965 = vst.msk [vmem:[#allocation4 + $0x98] sm:$0xff] %vm1783_vm9, %v3889_v27  ;;  %3333 = vrot.lane.b32.xlu1 %v3814_v34, %s5110_s11 }
 0x542   : > { %3143 = vrot.lane.b32.xlu0 %v3623_v29, %s5109_s10 }
 0x543   : > { %v3506_v5 = vpop.permute.xlu1 %3505 }
 0x544   : > { %3581 = vst.msk [vmem:[#allocation4 + $0xa0] sm:$0xff] %vm1396_vm6, %v3506_v5  ;;  %v3316_v7 = vpop.permute.xlu0 %3315 }
 0x545   : > { %3390 = vst.msk [vmem:[#allocation4 + $0xa8] sm:$0xff] %vm1203_vm5, %v3316_v7  ;;  %4098 = vrot.lane.b32.xlu1 %v4006_v6, %s5114_s28 }
 0x546   : > { %3908 = vrot.lane.b32.xlu0 %v3815_v16, %s5113_s22 }
 0x547   : > { %v3508_v2 = vpop.permute.xlu1 %3507  ;;  %v4188_v1 = vld [vmem:[#allocation4 + $0x90] sm:$0xff] }
 0x548   : > { %3582 = vst.msk [vmem:[#allocation4 + $0xa8] sm:$0xff] %vm1396_vm6, %v3508_v2  ;;  %5044 = vmatprep.mubr.msk.f32.mxu1 %vm2046_vm11, %v4188_v1  ;;  %v4081_v3 = vpop.permute.xlu0 %4080 }
 0x549   : > { %4157 = vst.msk [vmem:[#allocation4 + $0x98] sm:$0xff] %vm1976_vm10, %v4081_v3  ;;  %3525 = vrot.lane.b32.xlu1 %v4006_v6, %s5111_s12 }
 0x54a   : > { %3335 = vrot.lane.b32.xlu0 %v3815_v16, %s5110_s11 }
 0x54b   : > { %v3126_v30 = vpop.permute.xlu1 %3125 }
 0x54c   : > { %3199 = vst.msk [vmem:[#allocation4 + $0xb0] sm:$0xff] %vm1010_vm4, %v3126_v30  ;;  %v3699_v23 = vpop.permute.xlu0 %3698 }
 0x54d   : > { %3774 = vst.msk [vmem:[#allocation4 + $0xa0] sm:$0xff] %vm1590_vm8, %v3699_v23  ;;  %3527 = vrot.lane.b32.xlu1 %v3432_v51, %s5111_s12 }
 0x54e   : > { %4100 = vrot.lane.b32.xlu0 %v3432_v51, %s5114_s28 }
 0x54f   : > { %v3891_v28 = vpop.permute.xlu1 %3890 }
 0x550   : > { %3966 = vst.msk [vmem:[#allocation4 + $0xa0] sm:$0xff] %vm1783_vm9, %v3891_v28  ;;  %v3701_v25 = vpop.permute.xlu0 %3700  ;;  %v4189_v44 = vld [vmem:[#allocation4 + $0x98] sm:$0xff] }
 0x551   : > { %3775 = vst.msk [vmem:[#allocation4 + $0xa8] sm:$0xff] %vm1590_vm8, %v3701_v25  ;;  %5045 = vmatmul.mubr.msk.f32.gmra.mrb[18].mxu1 %vm2046_vm11, %v4189_v44  ;;  %3720 = vrot.lane.b32.xlu1 %v3625_v63, %s5112_s13 }
 0x552   : > { %3718 = vrot.lane.b32.xlu0 %v3624_v56, %s5112_s13 }
 0x553   : > { %v3318_v41 = vpop.permute.xlu1 %3317 }
 0x554   : > { %3391 = vst.msk [vmem:[#allocation4 + $0xb0] sm:$0xff] %vm1203_vm5, %v3318_v41  ;;  %v3128_v15 = vpop.permute.xlu0 %3127 }
 0x555   : > { %3200 = vst.msk [vmem:[#allocation4 + $0xb8] sm:$0xff] %vm1010_vm4, %v3128_v15  ;;  %3912 = vrot.lane.b32.xlu1 %v3817_v40, %s5113_s22  ;;  %v4614_v15 = vld [vmem:[%s5397_s30 + $0x28] sm:$0xff] }
 0x556   : > { %3910 = vrot.lane.b32.xlu0 %v3816_v53, %s5113_s22 }
 0x557   : > { %v4083_v12 = vpop.permute.xlu1 %4082 }
 0x558   : > { %4158 = vst.msk [vmem:[#allocation4 + $0xa0] sm:$0xff] %vm1976_vm10, %v4083_v12  ;;  %v3893_v46 = vpop.permute.xlu0 %3892 }
 0x559   : > { %3967 = vst.msk [vmem:[#allocation4 + $0xa8] sm:$0xff] %vm1783_vm9, %v3893_v46  ;;  %4104 = vrot.lane.b32.xlu1 %v4009_v36, %s5114_s28 }
 0x55a   : > { %4102 = vrot.lane.b32.xlu0 %v4008_v22, %s5114_s28  ;;  %v4613_v22 = vld [vmem:[%s5397_s30 + $0x20] sm:$0xff] }
 0x55b   : > { %v3510_v0 = vpop.permute.xlu1 %3509 }
 0x55c   : > { %3583 = vst.msk [vmem:[#allocation4 + $0xb0] sm:$0xff] %vm1396_vm6, %v3510_v0  ;;  %v3320_v33 = vpop.permute.xlu0 %3319 }
 0x55d   : > { %3392 = vst.msk [vmem:[#allocation4 + $0xb8] sm:$0xff] %vm1203_vm5, %v3320_v33 }
 0x55f   : > { %v3512_v48 = vpop.permute.xlu1 %3511  ;;  %v4190_v60 = vld [vmem:[#allocation4 + $0xa0] sm:$0xff] }
 0x560   : > { %3584 = vst.msk [vmem:[#allocation4 + $0xb8] sm:$0xff] %vm1396_vm6, %v3512_v48  ;;  %5047 = vmatprep.mubr.msk.f32.mxu1 %vm2046_vm11, %v4190_v60  ;;  %v4085_v45 = vpop.permute.xlu0 %4084 }
 0x561   : > { %4159 = vst.msk [vmem:[#allocation4 + $0xa8] sm:$0xff] %vm1976_vm10, %v4085_v45 }
 0x563   : > { %v3130_v13 = vpop.permute.xlu1 %3129 }
 0x564   : > { %3201 = vst.msk [vmem:[#allocation4 + $0xc0] sm:$0xff] %vm1010_vm4, %v3130_v13  ;;  %v5019_v17 = vpop.f32.mrb[0].mxu1  ;;  %v3703_v10 = vpop.permute.xlu0 %3702 }
 0x565   : > { %v4539_v35 = vmul.f32 %v5019_v17, %v7345_v59  ;;  %3776 = vst.msk [vmem:[#allocation4 + $0xb0] sm:$0xff] %vm1590_vm8, %v3703_v10  ;;  %v4372_v32 = vpop.f32.mrb[1].mxu1 }
 0x566   : > { %v4538_v21 = vmul.f32 %v7345_v59, %v4372_v32 }
 0x567   : > { %v4578_v8 = vadd.f32 %v7351_v20, %v4539_v35  ;;  %v3895_v14 = vpop.permute.xlu1 %3894 }
 0x568   : > { %v4577_v4 = vadd.f32 %v7351_v20, %v4538_v21  ;;  %3968 = vst.msk [vmem:[#allocation4 + $0xb0] sm:$0xff] %vm1783_vm9, %v3895_v14  ;;  %v3705_v18 = vpop.permute.xlu0 %3704  ;;  %v4191_v57 = vld [vmem:[#allocation4 + $0xa8] sm:$0xff] }
 0x569   : > { %v4642_v58 = vadd.f32 %v4610_v37, %v4578_v8  ;;  %3777 = vst.msk [vmem:[#allocation4 + $0xb8] sm:$0xff] %vm1590_vm8, %v3705_v18  ;;  %5048 = vmatmul.mubr.msk.f32.gmra.mrb[20].mxu1 %vm2046_vm11, %v4191_v57 }
 0x56a   : > { %v4641_v50 = vadd.f32 %v4609_v39, %v4577_v4 }
 0x56b   : > { %v4674_v42 = vmax.f32 %v4642_v58, 0.0  ;;  %v3322_v61 = vpop.permute.xlu1 %3321 }
 0x56c   : > { %v4673_v62 = vmax.f32 %v4641_v50, 0.0  ;;  %3393 = vst.msk [vmem:[#allocation4 + $0xc0] sm:$0xff] %vm1203_vm5, %v3322_v61  ;;  %v3132_v31 = vpop.permute.xlu0 %3131  ;;  %v4616_v50 = vld [vmem:[%s5397_s30 + $0x38] sm:$0xff] }
 0x56d   : > { %4706 = vst.msk [vmem:[%s7368_s14 + $0x8] sm:$0xff] %vm279_vm0, %v4674_v42 }
 0x56e   : > { %3202 = vst.msk [vmem:[#allocation4 + $0xc8] sm:$0xff] %vm1010_vm4, %v3132_v31 }
 0x56f   : > { %4705 = vst.msk [vmem:[%s7368_s14] sm:$0xff] %vm279_vm0, %v4673_v62  ;;  %v4087_v52 = vpop.permute.xlu1 %4086  ;;  %v4615_v62 = vld [vmem:[%s5397_s30 + $0x30] sm:$0xff] }
 0x570   : > { %4160 = vst.msk [vmem:[#allocation4 + $0xb0] sm:$0xff] %vm1976_vm10, %v4087_v52  ;;  %v3897_v55 = vpop.permute.xlu0 %3896 }
 0x571   : > { %3969 = vst.msk [vmem:[#allocation4 + $0xb8] sm:$0xff] %vm1783_vm9, %v3897_v55 }
 0x573   : > { %v3514_v43 = vpop.permute.xlu1 %3513 }
 0x574   : > { %3585 = vst.msk [vmem:[#allocation4 + $0xc0] sm:$0xff] %vm1396_vm6, %v3514_v43  ;;  %v3324_v9 = vpop.permute.xlu0 %3323 }
 0x575   : > { %3394 = vst.msk [vmem:[#allocation4 + $0xc8] sm:$0xff] %vm1203_vm5, %v3324_v9 }
 0x577   : > { %v3516_v54 = vpop.permute.xlu1 %3515  ;;  %v4192_v11 = vld [vmem:[#allocation4 + $0xb0] sm:$0xff] }
 0x578   : > { %3586 = vst.msk [vmem:[#allocation4 + $0xc8] sm:$0xff] %vm1396_vm6, %v3516_v54  ;;  %v5022_v49 = vpop.f32.mrb[2].mxu1  ;;  %5050 = vmatprep.mubr.msk.f32.mxu1 %vm2046_vm11, %v4192_v11  ;;  %v4089_v24 = vpop.permute.xlu0 %4088 }
 0x579   : > { %v4541_v19 = vmul.f32 %v5022_v49, %v7345_v59  ;;  %4161 = vst.msk [vmem:[#allocation4 + $0xb8] sm:$0xff] %vm1976_vm10, %v4089_v24  ;;  %v4382_v38 = vpop.f32.mrb[3].mxu1 }
 0x57a   : > { %v4540_v34 = vmul.f32 %v7345_v59, %v4382_v38 }
 0x57b   : > { %v4580_v29 = vadd.f32 %v7351_v20, %v4541_v19  ;;  %v3134_v27 = vpop.permute.xlu1 %3133 }
 0x57c   : > { %v4579_v5 = vadd.f32 %v7351_v20, %v4540_v34  ;;  %3203 = vst.msk [vmem:[#allocation4 + $0xd0] sm:$0xff] %vm1010_vm4, %v3134_v27  ;;  %v3707_v7 = vpop.permute.xlu0 %3706 }
 0x57d   : > { %v4644_v6 = vadd.f32 %v4612_v26, %v4580_v29  ;;  %3778 = vst.msk [vmem:[#allocation4 + $0xc0] sm:$0xff] %vm1590_vm8, %v3707_v7 }
 0x57e   : > { %v4643_v16 = vadd.f32 %v4611_v47, %v4579_v5 }
 0x57f   : > { %v4676_v2 = vmax.f32 %v4644_v6, 0.0  ;;  %v3899_v1 = vpop.permute.xlu1 %3898 }
 0x580   : > { %v4675_v3 = vmax.f32 %v4643_v16, 0.0  ;;  %3970 = vst.msk [vmem:[#allocation4 + $0xc0] sm:$0xff] %vm1783_vm9, %v3899_v1  ;;  %v3709_v30 = vpop.permute.xlu0 %3708  ;;  %v4193_v23 = vld [vmem:[#allocation4 + $0xb8] sm:$0xff] }
 0x581   : > { %4708 = vst.msk [vmem:[%s7368_s14 + $0x18] sm:$0xff] %vm279_vm0, %v4676_v2  ;;  %5051 = vmatmul.mubr.msk.f32.gmra.mrb[22].mxu1 %vm2046_vm11, %v4193_v23  ;;  %v4618_v2 = vld [vmem:[%s5397_s30 + $0x48] sm:$0xff] }
 0x582   : > { %3779 = vst.msk [vmem:[#allocation4 + $0xc8] sm:$0xff] %vm1590_vm8, %v3709_v30  ;;  %v4617_v30 = vld [vmem:[%s5397_s30 + $0x40] sm:$0xff] }
 0x583   : > { %4707 = vst.msk [vmem:[%s7368_s14 + $0x10] sm:$0xff] %vm279_vm0, %v4675_v3  ;;  %v3326_v51 = vpop.permute.xlu1 %3325 }
 0x584   : > { %3395 = vst.msk [vmem:[#allocation4 + $0xd0] sm:$0xff] %vm1203_vm5, %v3326_v51  ;;  %v3136_v63 = vpop.permute.xlu0 %3135 }
 0x585   : > { %3204 = vst.msk [vmem:[#allocation4 + $0xd8] sm:$0xff] %vm1010_vm4, %v3136_v63 }
 0x587   : > { %v4091_v28 = vpop.permute.xlu1 %4090 }
 0x588   : > { %4162 = vst.msk [vmem:[#allocation4 + $0xc0] sm:$0xff] %vm1976_vm10, %v4091_v28  ;;  %v3901_v56 = vpop.permute.xlu0 %3900 }
 0x589   : > { %3971 = vst.msk [vmem:[#allocation4 + $0xc8] sm:$0xff] %vm1783_vm9, %v3901_v56 }
 0x58b   : > { %v3518_v25 = vpop.permute.xlu1 %3517 }
 0x58c   : > { %3587 = vst.msk [vmem:[#allocation4 + $0xd0] sm:$0xff] %vm1396_vm6, %v3518_v25  ;;  %v5025_v44 = vpop.f32.mrb[4].mxu1  ;;  %v3328_v40 = vpop.permute.xlu0 %3327 }
 0x58d   : > { %v4543_v41 = vmul.f32 %v5025_v44, %v7345_v59  ;;  %3396 = vst.msk [vmem:[#allocation4 + $0xd8] sm:$0xff] %vm1203_vm5, %v3328_v40  ;;  %v4392_v53 = vpop.f32.mrb[5].mxu1 }
 0x58e   : > { %v4542_v36 = vmul.f32 %v7345_v59, %v4392_v53 }
 0x58f   : > { %v4582_v12 = vadd.f32 %v7351_v20, %v4543_v41  ;;  %v3520_v46 = vpop.permute.xlu1 %3519  ;;  %v4194_v0 = vld [vmem:[#allocation4 + $0xc0] sm:$0xff] }
 0x590   : > { %v4581_v33 = vadd.f32 %v7351_v20, %v4542_v36  ;;  %3588 = vst.msk [vmem:[#allocation4 + $0xd8] sm:$0xff] %vm1396_vm6, %v3520_v46  ;;  %5053 = vmatprep.mubr.msk.f32.mxu1 %vm2046_vm11, %v4194_v0  ;;  %v4093_v48 = vpop.permute.xlu0 %4092 }
 0x591   : > { %v4646_v60 = vadd.f32 %v4614_v15, %v4582_v12  ;;  %4163 = vst.msk [vmem:[#allocation4 + $0xc8] sm:$0xff] %vm1976_vm10, %v4093_v48 }
 0x592   : > { %v4645_v45 = vadd.f32 %v4613_v22, %v4581_v33 }
 0x593   : > { %v4678_v13 = vmax.f32 %v4646_v60, 0.0  ;;  %v3138_v17 = vpop.permute.xlu1 %3137 }
 0x594   : > { %v4677_v10 = vmax.f32 %v4645_v45, 0.0  ;;  %3205 = vst.msk [vmem:[#allocation4 + $0xe0] sm:$0xff] %vm1010_vm4, %v3138_v17  ;;  %v3711_v35 = vpop.permute.xlu0 %3710 }
 0x595   : > { %4710 = vst.msk [vmem:[%s7368_s14 + $0x28] sm:$0xff] %vm279_vm0, %v4678_v13  ;;  %v4620_v13 = vld [vmem:[%s5397_s30 + $0x58] sm:$0xff] }
 0x596   : > { %3780 = vst.msk [vmem:[#allocation4 + $0xd0] sm:$0xff] %vm1590_vm8, %v3711_v35  ;;  %v4619_v35 = vld [vmem:[%s5397_s30 + $0x50] sm:$0xff] }
 0x597   : > { %4709 = vst.msk [vmem:[%s7368_s14 + $0x20] sm:$0xff] %vm279_vm0, %v4677_v10  ;;  %v3903_v32 = vpop.permute.xlu1 %3902 }
 0x598   : > { %3972 = vst.msk [vmem:[#allocation4 + $0xd0] sm:$0xff] %vm1783_vm9, %v3903_v32  ;;  %v3713_v37 = vpop.permute.xlu0 %3712  ;;  %v4195_v21 = vld [vmem:[#allocation4 + $0xc8] sm:$0xff] }
 0x599   : > { %3781 = vst.msk [vmem:[#allocation4 + $0xd8] sm:$0xff] %vm1590_vm8, %v3713_v37  ;;  %5054 = vmatmul.mubr.msk.f32.gmra.mrb[24].mxu1 %vm2046_vm11, %v4195_v21 }
 0x59b   : > { %v3330_v8 = vpop.permute.xlu1 %3329 }
 0x59c   : > { %3397 = vst.msk [vmem:[#allocation4 + $0xe0] sm:$0xff] %vm1203_vm5, %v3330_v8  ;;  %v3140_v39 = vpop.permute.xlu0 %3139 }
 0x59d   : > { %3206 = vst.msk [vmem:[#allocation4 + $0xe8] sm:$0xff] %vm1010_vm4, %v3140_v39 }
 0x59f   : > { %v4095_v14 = vpop.permute.xlu1 %4094 }
 0x5a0   : > { %4164 = vst.msk [vmem:[#allocation4 + $0xd0] sm:$0xff] %vm1976_vm10, %v4095_v14  ;;  %v5028_v4 = vpop.f32.mrb[6].mxu1  ;;  %v3905_v18 = vpop.permute.xlu0 %3904 }
 0x5a1   : > { %v4545_v57 = vmul.f32 %v5028_v4, %v7345_v59  ;;  %3973 = vst.msk [vmem:[#allocation4 + $0xd8] sm:$0xff] %vm1783_vm9, %v3905_v18  ;;  %v4402_v58 = vpop.f32.mrb[7].mxu1 }
 0x5a2   : > { %v4544_v42 = vmul.f32 %v7345_v59, %v4402_v58 }
 0x5a3   : > { %v4584_v61 = vadd.f32 %v7351_v20, %v4545_v57  ;;  %v3522_v31 = vpop.permute.xlu1 %3521 }
 0x5a4   : > { %v4583_v52 = vadd.f32 %v7351_v20, %v4544_v42  ;;  %3589 = vst.msk [vmem:[#allocation4 + $0xe0] sm:$0xff] %vm1396_vm6, %v3522_v31  ;;  %v3332_v55 = vpop.permute.xlu0 %3331 }
 0x5a5   : > { %v4648_v43 = vadd.f32 %v4616_v50, %v4584_v61  ;;  %3398 = vst.msk [vmem:[#allocation4 + $0xe8] sm:$0xff] %vm1203_vm5, %v3332_v55  ;;  %v4622_v61 = vld [vmem:[%s5397_s30 + $0x68] sm:$0xff] }
 0x5a6   : > { %v4647_v9 = vadd.f32 %v4615_v62, %v4583_v52  ;;  %v4621_v52 = vld [vmem:[%s5397_s30 + $0x60] sm:$0xff] }
 0x5a7   : > { %v4680_v54 = vmax.f32 %v4648_v43, 0.0  ;;  %v3524_v11 = vpop.permute.xlu1 %3523  ;;  %v4196_v49 = vld [vmem:[#allocation4 + $0xd0] sm:$0xff] }
 0x5a8   : > { %v4679_v24 = vmax.f32 %v4647_v9, 0.0  ;;  %3590 = vst.msk [vmem:[#allocation4 + $0xe8] sm:$0xff] %vm1396_vm6, %v3524_v11  ;;  %5056 = vmatprep.mubr.msk.f32.mxu1 %vm2046_vm11, %v4196_v49  ;;  %v4097_v19 = vpop.permute.xlu0 %4096 }
 0x5a9   : > { %4712 = vst.msk [vmem:[%s7368_s14 + $0x38] sm:$0xff] %vm279_vm0, %v4680_v54 }
 0x5aa   : > { %4165 = vst.msk [vmem:[#allocation4 + $0xd8] sm:$0xff] %vm1976_vm10, %v4097_v19 }
 0x5ab   : > { %4711 = vst.msk [vmem:[%s7368_s14 + $0x30] sm:$0xff] %vm279_vm0, %v4679_v24  ;;  %v3142_v38 = vpop.permute.xlu1 %3141 }
 0x5ac   : > { %3207 = vst.msk [vmem:[#allocation4 + $0xf0] sm:$0xff] %vm1010_vm4, %v3142_v38  ;;  %v3715_v26 = vpop.permute.xlu0 %3714  ;;  %v4624_v38 = vld [vmem:[%s5397_s30 + $0x78] sm:$0xff] }
 0x5ad   : > { %3782 = vst.msk [vmem:[#allocation4 + $0xe0] sm:$0xff] %vm1590_vm8, %v3715_v26 }
 0x5af   : > { %v3907_v34 = vpop.permute.xlu1 %3906 }
 0x5b0   : > { %3974 = vst.msk [vmem:[#allocation4 + $0xe0] sm:$0xff] %vm1783_vm9, %v3907_v34  ;;  %v3717_v29 = vpop.permute.xlu0 %3716 }
 0x5b1   : > { %v4197_v47 = vld [vmem:[#allocation4 + $0xd8] sm:$0xff]  ;;  %3783 = vst.msk [vmem:[#allocation4 + $0xe8] sm:$0xff] %vm1590_vm8, %v3717_v29  ;;  %v4623_v29 = vld [vmem:[%s5397_s30 + $0x70] sm:$0xff] }
 0x5b2   : > { %5057 = vmatmul.mubr.msk.f32.gmra.mrb[26].mxu1 %vm2046_vm11, %v4197_v47 }
 0x5b3   : > { %v3334_v27 = vpop.permute.xlu1 %3333 }
 0x5b4   : > { %3399 = vst.msk [vmem:[#allocation4 + $0xf0] sm:$0xff] %vm1203_vm5, %v3334_v27  ;;  %v5031_v5 = vpop.f32.mrb[8].mxu1  ;;  %v3144_v7 = vpop.permute.xlu0 %3143 }
 0x5b5   : > { %v4547_v6 = vmul.f32 %v5031_v5, %v7345_v59  ;;  %3208 = vst.msk [vmem:[#allocation4 + $0xf8] sm:$0xff] %vm1010_vm4, %v3144_v7  ;;  %v4412_v16 = vpop.f32.mrb[9].mxu1 }
 0x5b6   : > { %v4546_v1 = vmul.f32 %v7345_v59, %v4412_v16 }
 0x5b7   : > { %v4586_v3 = vadd.f32 %v7351_v20, %v4547_v6  ;;  %v4099_v23 = vpop.permute.xlu1 %4098 }
 0x5b8   : > { %v4585_v51 = vadd.f32 %v7351_v20, %v4546_v1  ;;  %4166 = vst.msk [vmem:[#allocation4 + $0xe0] sm:$0xff] %vm1976_vm10, %v4099_v23  ;;  %v3909_v63 = vpop.permute.xlu0 %3908 }
 0x5b9   : > { %v4650_v28 = vadd.f32 %v4618_v2, %v4586_v3  ;;  %3975 = vst.msk [vmem:[#allocation4 + $0xe8] sm:$0xff] %vm1783_vm9, %v3909_v63  ;;  %v4626_v3 = vld [vmem:[%s5397_s30 + $0x88] sm:$0xff] }
 0x5ba   : > { %v4649_v56 = vadd.f32 %v4617_v30, %v4585_v51  ;;  %v4625_v51 = vld [vmem:[%s5397_s30 + $0x80] sm:$0xff] }
 0x5bb   : > { %v4682_v25 = vmax.f32 %v4650_v28, 0.0  ;;  %v3526_v44 = vpop.permute.xlu1 %3525 }
 0x5bc   : > { %v4681_v40 = vmax.f32 %v4649_v56, 0.0  ;;  %3591 = vst.msk [vmem:[#allocation4 + $0xf0] sm:$0xff] %vm1396_vm6, %v3526_v44  ;;  %v3336_v41 = vpop.permute.xlu0 %3335 }
 0x5bd   : > { %4714 = vst.msk [vmem:[%s7368_s14 + $0x48] sm:$0xff] %vm279_vm0, %v4682_v25 }
 0x5be   : > { %3400 = vst.msk [vmem:[#allocation4 + $0xf8] sm:$0xff] %vm1203_vm5, %v3336_v41 }
 0x5bf   : > { %4713 = vst.msk [vmem:[%s7368_s14 + $0x40] sm:$0xff] %vm279_vm0, %v4681_v40  ;;  %v3528_v53 = vpop.permute.xlu1 %3527  ;;  %v4198_v15 = vld [vmem:[#allocation4 + $0xe0] sm:$0xff] }
 0x5c0   : > { %3592 = vst.msk [vmem:[#allocation4 + $0xf8] sm:$0xff] %vm1396_vm6, %v3528_v53  ;;  %v4101_v36 = vpop.permute.xlu0 %4100  ;;  %5059 = vmatprep.mubr.msk.f32.mxu1 %vm2046_vm11, %v4198_v15  ;;  %v4628_v15 = vld [vmem:[%s5397_s30 + $0x98] sm:$0xff] }
 0x5c1   : > { %4167 = vst.msk [vmem:[#allocation4 + $0xe8] sm:$0xff] %vm1976_vm10, %v4101_v36 }
 0x5c3   : > { %v3721_v12 = vpop.permute.xlu1 %3720 }
 0x5c4   : > { %v3719_v22 = vpop.permute.xlu0 %3718  ;;  %3785 = vst.msk [vmem:[#allocation4 + $0xf8] sm:$0xff] %vm1590_vm8, %v3721_v12 }
 0x5c5   : > { %3784 = vst.msk [vmem:[#allocation4 + $0xf0] sm:$0xff] %vm1590_vm8, %v3719_v22  ;;  %v4627_v22 = vld [vmem:[%s5397_s30 + $0x90] sm:$0xff] }
 0x5c7   : > { %v3913_v46 = vpop.permute.xlu1 %3912 }
 0x5c8   : > { %v5034_v0 = vpop.f32.mrb[10].mxu1  ;;  %v3911_v33 = vpop.permute.xlu0 %3910  ;;  %v4199_v48 = vld [vmem:[#allocation4 + $0xe8] sm:$0xff]  ;;  %3977 = vst.msk [vmem:[#allocation4 + $0xf8] sm:$0xff] %vm1783_vm9, %v3913_v46 }
 0x5c9   : > { %v4549_v60 = vmul.f32 %v5034_v0, %v7345_v59  ;;  %3976 = vst.msk [vmem:[#allocation4 + $0xf0] sm:$0xff] %vm1783_vm9, %v3911_v33  ;;  %v4422_v45 = vpop.f32.mrb[11].mxu1  ;;  %5060 = vmatmul.mubr.msk.f32.gmra.mrb[28].mxu1 %vm2046_vm11, %v4199_v48 }
 0x5ca   : > { %v4548_v17 = vmul.f32 %v7345_v59, %v4422_v45 }
 0x5cb   : > { %v4588_v10 = vadd.f32 %v7351_v20, %v4549_v60  ;;  %v4105_v32 = vpop.permute.xlu1 %4104 }
 0x5cc   : > { %v4587_v37 = vadd.f32 %v7351_v20, %v4548_v17  ;;  %v4103_v21 = vpop.permute.xlu0 %4102  ;;  %4169 = vst.msk [vmem:[#allocation4 + $0xf8] sm:$0xff] %vm1976_vm10, %v4105_v32 }
 0x5cd   : > { %v4652_v8 = vadd.f32 %v4620_v13, %v4588_v10  ;;  %4168 = vst.msk [vmem:[#allocation4 + $0xf0] sm:$0xff] %vm1976_vm10, %v4103_v21  ;;  %v4630_v10 = vld [vmem:[%s5397_s30 + $0xa8] sm:$0xff] }
 0x5ce   : > { %v4651_v39 = vadd.f32 %v4619_v35, %v4587_v37  ;;  %v4629_v37 = vld [vmem:[%s5397_s30 + $0xa0] sm:$0xff] }
 0x5cf   : > { %v4684_v14 = vmax.f32 %v4652_v8, 0.0 }
 0x5d0   : > { %v4683_v4 = vmax.f32 %v4651_v39, 0.0 }
 0x5d1   : > { %4716 = vst.msk [vmem:[%s7368_s14 + $0x58] sm:$0xff] %vm279_vm0, %v4684_v14 }
 0x5d2   : > { %4715 = vst.msk [vmem:[%s7368_s14 + $0x50] sm:$0xff] %vm279_vm0, %v4683_v4 }
 0x5d3   : > { %v4201_v18 = vld [vmem:[#allocation4 + $0xf8] sm:$0xff] }
 0x5d4   : > { %v4200_v57 = vld [vmem:[#allocation4 + $0xf0] sm:$0xff] }
 0x5d5   : > { %5062 = vmatprep.mubr.msk.f32.mxu1 %vm2046_vm11, %v4200_v57 }
 0x5d6   : > { %5063 = vmatmul.mubr.msk.f32.gmra.mrb[30].mxu1 %vm2046_vm11, %v4201_v18 }
 0x5dc   : > { %v5037_v58 = vpop.f32.mrb[12].mxu1 }
 0x5dd   : > { %v4551_v50 = vmul.f32 %v5037_v58, %v7345_v59  ;;  %v4432_v42 = vpop.f32.mrb[13].mxu1 }
 0x5de   : > { %v4550_v62 = vmul.f32 %v7345_v59, %v4432_v42 }
 0x5df   : > { %v4590_v31 = vadd.f32 %v7351_v20, %v4551_v50  ;;  %v4632_v50 = vld [vmem:[%s5397_s30 + $0xb8] sm:$0xff] }
 0x5e0   : > { %v4589_v55 = vadd.f32 %v7351_v20, %v4550_v62  ;;  %v4631_v62 = vld [vmem:[%s5397_s30 + $0xb0] sm:$0xff] }
 0x5e1   : > { %v4654_v43 = vadd.f32 %v4622_v61, %v4590_v31 }
 0x5e2   : > { %v4653_v9 = vadd.f32 %v4621_v52, %v4589_v55 }
 0x5e3   : > { %v4686_v54 = vmax.f32 %v4654_v43, 0.0 }
 0x5e4   : > { %v4685_v11 = vmax.f32 %v4653_v9, 0.0 }
 0x5e5   : > { %4718 = vst.msk [vmem:[%s7368_s14 + $0x68] sm:$0xff] %vm279_vm0, %v4686_v54 }
 0x5e6   : > { %4717 = vst.msk [vmem:[%s7368_s14 + $0x60] sm:$0xff] %vm279_vm0, %v4685_v11 }
 0x5f4   : > { %v5040_v49 = vpop.f32.mrb[14].mxu1 }
 0x5f5   : > { %v4553_v24 = vmul.f32 %v5040_v49, %v7345_v59  ;;  %v4442_v19 = vpop.f32.mrb[15].mxu1 }
 0x5f6   : > { %v4552_v26 = vmul.f32 %v7345_v59, %v4442_v19 }
 0x5f7   : > { %v4592_v34 = vadd.f32 %v7351_v20, %v4553_v24  ;;  %v4634_v24 = vld [vmem:[%s5397_s30 + $0xc8] sm:$0xff] }
 0x5f8   : > { %v4591_v47 = vadd.f32 %v7351_v20, %v4552_v26  ;;  %v4633_v26 = vld [vmem:[%s5397_s30 + $0xc0] sm:$0xff] }
 0x5f9   : > { %v4656_v27 = vadd.f32 %v4624_v38, %v4592_v34 }
 0x5fa   : > { %v4655_v5 = vadd.f32 %v4623_v29, %v4591_v47 }
 0x5fb   : > { %v4688_v7 = vmax.f32 %v4656_v27, 0.0 }
 0x5fc   : > { %v4687_v6 = vmax.f32 %v4655_v5, 0.0 }
 0x5fd   : > { %4720 = vst.msk [vmem:[%s7368_s14 + $0x78] sm:$0xff] %vm279_vm0, %v4688_v7 }
 0x5fe   : > { %4719 = vst.msk [vmem:[%s7368_s14 + $0x70] sm:$0xff] %vm279_vm0, %v4687_v6 }
 0x60c   : > { %v5043_v16 = vpop.f32.mrb[16].mxu1 }
 0x60d   : > { %v4555_v2 = vmul.f32 %v5043_v16, %v7345_v59  ;;  %v4452_v1 = vpop.f32.mrb[17].mxu1 }
 0x60e   : > { %v4554_v30 = vmul.f32 %v7345_v59, %v4452_v1 }
 0x60f   : > { %v4594_v23 = vadd.f32 %v7351_v20, %v4555_v2  ;;  %v4636_v2 = vld [vmem:[%s5397_s30 + $0xd8] sm:$0xff] }
 0x610   : > { %v4593_v63 = vadd.f32 %v7351_v20, %v4554_v30  ;;  %v4635_v30 = vld [vmem:[%s5397_s30 + $0xd0] sm:$0xff] }
 0x611   : > { %v4658_v28 = vadd.f32 %v4626_v3, %v4594_v23 }
 0x612   : > { %v4657_v56 = vadd.f32 %v4625_v51, %v4593_v63 }
 0x613   : > { %v4690_v25 = vmax.f32 %v4658_v28, 0.0 }
 0x614   : > { %v4689_v44 = vmax.f32 %v4657_v56, 0.0 }
 0x615   : > { %4722 = vst.msk [vmem:[%s7368_s14 + $0x88] sm:$0xff] %vm279_vm0, %v4690_v25 }
 0x616   : > { %4721 = vst.msk [vmem:[%s7368_s14 + $0x80] sm:$0xff] %vm279_vm0, %v4689_v44 }
 0x624   : > { %v5046_v40 = vpop.f32.mrb[18].mxu1 }
 0x625   : > { %v4557_v41 = vmul.f32 %v5046_v40, %v7345_v59  ;;  %v4462_v53 = vpop.f32.mrb[19].mxu1 }
 0x626   : > { %v4556_v36 = vmul.f32 %v7345_v59, %v4462_v53 }
 0x627   : > { %v4596_v12 = vadd.f32 %v7351_v20, %v4557_v41  ;;  %v4638_v41 = vld [vmem:[%s5397_s30 + $0xe8] sm:$0xff] }
 0x628   : > { %v4595_v46 = vadd.f32 %v7351_v20, %v4556_v36  ;;  %v4637_v36 = vld [vmem:[%s5397_s30 + $0xe0] sm:$0xff] }
 0x629   : > { %v4660_v0 = vadd.f32 %v4628_v15, %v4596_v12 }
 0x62a   : > { %v4659_v33 = vadd.f32 %v4627_v22, %v4595_v46 }
 0x62b   : > { %v4692_v48 = vmax.f32 %v4660_v0, 0.0 }
 0x62c   : > { %v4691_v60 = vmax.f32 %v4659_v33, 0.0 }
 0x62d   : > { %4724 = vst.msk [vmem:[%s7368_s14 + $0x98] sm:$0xff] %vm279_vm0, %v4692_v48 }
 0x62e   : > { %4723 = vst.msk [vmem:[%s7368_s14 + $0x90] sm:$0xff] %vm279_vm0, %v4691_v60 }
 0x63c   : > { %v5049_v45 = vpop.f32.mrb[20].mxu1 }
 0x63d   : > { %v4559_v13 = vmul.f32 %v5049_v45, %v7345_v59  ;;  %v4472_v17 = vpop.f32.mrb[21].mxu1 }
 0x63e   : > { %v4558_v35 = vmul.f32 %v7345_v59, %v4472_v17 }
 0x63f   : > { %v4598_v32 = vadd.f32 %v7351_v20, %v4559_v13  ;;  %v4640_v13 = vld [vmem:[%s5397_s30 + $0xf8] sm:$0xff] }
 0x640   : > { %v4597_v21 = vadd.f32 %v7351_v20, %v4558_v35  ;;  %v4639_v35 = vld [vmem:[%s5397_s30 + $0xf0] sm:$0xff] }
 0x641   : > { %v4662_v8 = vadd.f32 %v4630_v10, %v4598_v32 }
 0x642   : > { %v4661_v39 = vadd.f32 %v4629_v37, %v4597_v21 }
 0x643   : > { %v4694_v14 = vmax.f32 %v4662_v8, 0.0 }
 0x644   : > { %v4693_v4 = vmax.f32 %v4661_v39, 0.0 }
 0x645   : > { %4726 = vst.msk [vmem:[%s7368_s14 + $0xa8] sm:$0xff] %vm279_vm0, %v4694_v14 }
 0x646   : > { %4725 = vst.msk [vmem:[%s7368_s14 + $0xa0] sm:$0xff] %vm279_vm0, %v4693_v4 }
 0x654   : > { %v5052_v18 = vpop.f32.mrb[22].mxu1 }
 0x655   : > { %v4561_v57 = vmul.f32 %v5052_v18, %v7345_v59  ;;  %v4482_v58 = vpop.f32.mrb[23].mxu1 }
 0x656   : > { %v4560_v42 = vmul.f32 %v7345_v59, %v4482_v58 }
 0x657   : > { %v4600_v61 = vadd.f32 %v7351_v20, %v4561_v57 }
 0x658   : > { %v4599_v31 = vadd.f32 %v7351_v20, %v4560_v42 }
 0x659   : > { %v4664_v52 = vadd.f32 %v4632_v50, %v4600_v61 }
 0x65a   : > { %v4663_v55 = vadd.f32 %v4631_v62, %v4599_v31 }
 0x65b   : > { %v4696_v43 = vmax.f32 %v4664_v52, 0.0 }
 0x65c   : > { %v4695_v9 = vmax.f32 %v4663_v55, 0.0 }
 0x65d   : > { %4728 = vst.msk [vmem:[%s7368_s14 + $0xb8] sm:$0xff] %vm279_vm0, %v4696_v43 }
 0x65e   : > { %4727 = vst.msk [vmem:[%s7368_s14 + $0xb0] sm:$0xff] %vm279_vm0, %v4695_v9 }
 0x66c   : > { %v5055_v54 = vpop.f32.mrb[24].mxu1 }
 0x66d   : > { %v4563_v11 = vmul.f32 %v5055_v54, %v7345_v59  ;;  %v4492_v49 = vpop.f32.mrb[25].mxu1 }
 0x66e   : > { %v4562_v19 = vmul.f32 %v7345_v59, %v4492_v49 }
 0x66f   : > { %v4602_v38 = vadd.f32 %v7351_v20, %v4563_v11 }
 0x670   : > { %v4601_v34 = vadd.f32 %v7351_v20, %v4562_v19 }
 0x671   : > { %v4666_v29 = vadd.f32 %v4634_v24, %v4602_v38 }
 0x672   : > { %v4665_v47 = vadd.f32 %v4633_v26, %v4601_v34 }
 0x673   : > { %v4698_v27 = vmax.f32 %v4666_v29, 0.0 }
 0x674   : > { %v4697_v5 = vmax.f32 %v4665_v47, 0.0 }
 0x675   : > { %4730 = vst.msk [vmem:[%s7368_s14 + $0xc8] sm:$0xff] %vm279_vm0, %v4698_v27 }
 0x676   : > { %4729 = vst.msk [vmem:[%s7368_s14 + $0xc0] sm:$0xff] %vm279_vm0, %v4697_v5 }
 0x685   : > { %v5058_v7 = vpop.f32.mrb[26].mxu1 }
 0x686   : > { %v4565_v6 = vmul.f32 %v5058_v7, %v7345_v59  ;;  %v4502_v16 = vpop.f32.mrb[27].mxu1 }
 0x687   : > { %v4564_v1 = vmul.f32 %v7345_v59, %v4502_v16 }
 0x688   : > { %v4604_v3 = vadd.f32 %v7351_v20, %v4565_v6 }
 0x689   : > { %v4603_v23 = vadd.f32 %v7351_v20, %v4564_v1 }
 0x68a   : > { %v4668_v51 = vadd.f32 %v4636_v2, %v4604_v3 }
 0x68b   : > { %v4667_v63 = vadd.f32 %v4635_v30, %v4603_v23 }
 0x68c   : > { %v4700_v28 = vmax.f32 %v4668_v51, 0.0 }
 0x68d   : > { %v4699_v56 = vmax.f32 %v4667_v63, 0.0 }
 0x68e   : > { %4732 = vst.msk [vmem:[%s7368_s14 + $0xd8] sm:$0xff] %vm279_vm0, %v4700_v28 }
 0x68f   : > { %4731 = vst.msk [vmem:[%s7368_s14 + $0xd0] sm:$0xff] %vm279_vm0, %v4699_v56 }
 0x69c   : > { %v5061_v25 = vpop.f32.mrb[28].mxu1 }
 0x69d   : > { %v4567_v44 = vmul.f32 %v5061_v25, %v7345_v59  ;;  %v4512_v40 = vpop.f32.mrb[29].mxu1 }
 0x69e   : > { %v4566_v53 = vmul.f32 %v7345_v59, %v4512_v40 }
 0x69f   : > { %v4606_v15 = vadd.f32 %v7351_v20, %v4567_v44 }
 0x6a0   : > { %v4605_v12 = vadd.f32 %v7351_v20, %v4566_v53 }
 0x6a1   : > { %v4670_v22 = vadd.f32 %v4638_v41, %v4606_v15 }
 0x6a2   : > { %v4669_v46 = vadd.f32 %v4637_v36, %v4605_v12 }
 0x6a3   : > { %v4702_v0 = vmax.f32 %v4670_v22, 0.0 }
 0x6a4   : > { %v4701_v33 = vmax.f32 %v4669_v46, 0.0 }
 0x6a5   : > { %4734 = vst.msk [vmem:[%s7368_s14 + $0xe8] sm:$0xff] %vm279_vm0, %v4702_v0 }
 0x6a6   : > { %4733 = vst.msk [vmem:[%s7368_s14 + $0xe0] sm:$0xff] %vm279_vm0, %v4701_v33 }
 0x6a9   : > { %v5064_v48 = vpop.f32.mrb[30].mxu1 }
 0x6aa   : > { %v4569_v60 = vmul.f32 %v5064_v48, %v7345_v59  ;;  %v4522_v45 = vpop.f32.mrb[31].mxu1 }
 0x6ab   : > { %v4568_v17 = vmul.f32 %v7345_v59, %v4522_v45 }
 0x6ac   : > { %v4608_v10 = vadd.f32 %v7351_v20, %v4569_v60 }
 0x6ad   : > { %v4607_v32 = vadd.f32 %v7351_v20, %v4568_v17 }
 0x6ae   : > { %v4672_v37 = vadd.f32 %v4640_v13, %v4608_v10 }
 0x6af   : > { %v4671_v21 = vadd.f32 %v4639_v35, %v4607_v32 }
 0x6b0   : > { %v4704_v8 = vmax.f32 %v4672_v37, 0.0 }
 0x6b1   : > { %v4703_v39 = vmax.f32 %v4671_v21, 0.0 }
 0x6b2   : > { %4736 = vst.msk [vmem:[%s7368_s14 + $0xf8] sm:$0xff] %vm279_vm0, %v4704_v8 }
 0x6b3   : > { %4735 = vst.msk [vmem:[%s7368_s14 + $0xf0] sm:$0xff] %vm279_vm0, %v4703_v39 }
 0x6b4 PF: > { %s17_s24 = sadd.s32 1, %s5104_s24  }
 0x6b5   : > { %p14_p4 = scmp.ge.s32.totalorder %s17_s24, 4  }
 0x6b7   :  { %16 = sbr.rel (!%p14_p4) target bundleno = 1 (0x1), region = 82 }

</bundles_post_ra>
